<compile_context>
chip_gen: v6e
topology: v6e:2x2x1
jax: 0.10.0
libtpu: 0.0.40
codegen_flags: <defaults>
</compile_context>

<pallas_src>
import jax
import jax.numpy as jnp
from jax import lax
from jax.experimental import pallas as pl
from jax.experimental.pallas import tpu as pltpu

BN_EPS = 1e-5


def _round_up(x, m):
    return ((x + m - 1) // m) * m


def _make_kernel(L, n_valid, tile_n, needs_mask):
    L2 = L // 2
    inv_n = 1.0 / float(n_valid)

    def kernel(x_ref,                                   # (4, tile_n)
               w1_ref, b1_ref, g1_ref, be1_ref,          # (L,4),(L,1),(L,1),(L,1)
               w2_ref, b2_ref, g2_ref, be2_ref,          # (L2,L),(L2,1),...
               w3_ref, b3_ref,                           # (3,L2),(3,1)
               o_ref,                                    # (3, tile_n)
               mu1_ref, r1_ref, mu2_ref, r2_ref):        # VMEM stats scratch
        p = pl.program_id(0)       # phase: 0=BN1 stats, 1=BN2 stats, 2=apply
        t = pl.program_id(1)       # batch tile
        nt = pl.num_programs(1)

        x = x_ref[...]             # (4, tile_n)
        w1 = w1_ref[...]           # (L, 4)

        # ---- layer1 on the VPU: K=4 outer-product FMAs (too small for MXU) --
        z1 = b1_ref[...] + w1[:, 0:1] * x[0:1, :]
        for k in range(1, 4):
            z1 = z1 + w1[:, k:k + 1] * x[k:k + 1, :]     # (L, tile_n)

        # lane mask for the padded tail of the batch (only if N % tile_n != 0)
        if needs_mask:
            col = t * tile_n + lax.broadcasted_iota(jnp.int32, (1, tile_n), 1)
            mask = (col < n_valid).astype(jnp.float32)   # (1, tile_n)
        else:
            mask = None

        # ------------------- phase 0: BN1 batch statistics -------------------
        @pl.when(p == 0)
        def _():
            @pl.when(t == 0)
            def _():
                mu1_ref[...] = jnp.zeros_like(mu1_ref)
                r1_ref[...] = jnp.zeros_like(r1_ref)
                mu2_ref[...] = jnp.zeros_like(mu2_ref)
                r2_ref[...] = jnp.zeros_like(r2_ref)

            zm = z1 if mask is None else z1 * mask
            mu1_ref[...] += jnp.sum(zm, axis=1, keepdims=True)        # sum
            r1_ref[...] += jnp.sum(z1 * zm, axis=1, keepdims=True)    # sum sq

            @pl.when(t == nt - 1)
            def _():
                m = mu1_ref[...] * inv_n
                v = r1_ref[...] * inv_n - m * m
                mu1_ref[...] = m                       # now holds mean1
                r1_ref[...] = lax.rsqrt(v + BN_EPS)    # now holds rstd1

        # --------- phases 1 & 2: BN1 -> sin -> layer2 (+ BN2 stats / out) ----
        @pl.when(p >= 1)
        def _():
            a1 = jnp.sin((z1 - mu1_ref[...]) * r1_ref[...] * g1_ref[...]
                         + be1_ref[...])                               # (L, tile_n)
            # layer2 on the MXU
            z2 = jnp.dot(w2_ref[...], a1,
                         preferred_element_type=jnp.float32) + b2_ref[...]  # (L2, tile_n)

            @pl.when(p == 1)
            def _():
                zm2 = z2 if mask is None else z2 * mask
                mu2_ref[...] += jnp.sum(zm2, axis=1, keepdims=True)
                r2_ref[...] += jnp.sum(z2 * zm2, axis=1, keepdims=True)

                @pl.when(t == nt - 1)
                def _():
                    m2 = mu2_ref[...] * inv_n
                    v2 = r2_ref[...] * inv_n - m2 * m2
                    mu2_ref[...] = m2                      # mean2
                    r2_ref[...] = lax.rsqrt(v2 + BN_EPS)   # rstd2

            @pl.when(p == 2)
            def _():
                a2 = jnp.sin((z2 - mu2_ref[...]) * r2_ref[...] * g2_ref[...]
                             + be2_ref[...])                           # (L2, tile_n)
                # layer3 on the VPU: 3 output rows, K=L/2 outer-product FMAs
                w3 = w3_ref[...]                                       # (3, L2)
                z3 = b3_ref[...] + w3[:, 0:1] * a2[0:1, :]
                for k in range(1, L2):
                    z3 = z3 + w3[:, k:k + 1] * a2[k:k + 1, :]          # (3, tile_n)
                o_ref[...] = z3.astype(o_ref.dtype)

    return kernel


def streamfunction_forward(x, params, tile_n=512):
    """x: (N, 4) float32 (PyTorch batch-major layout).  Returns (N, 3)."""
    n, f = x.shape
    assert f == 4
    L = params["w1"].shape[0]
    L2 = L // 2

    # feature-major / lane-dense layout: features on sublanes, batch on lanes
    xt = x.T                                              # (4, N)
    tn = min(int(tile_n), _round_up(n, 128))              # lane tile, mult of 128
    n_pad = _round_up(n, tn)
    if n_pad != n:
        xt = jnp.pad(xt, ((0, 0), (0, n_pad - n)))
    num_tiles = n_pad // tn

    kernel = _make_kernel(L=L, n_valid=n, tile_n=tn, needs_mask=(n_pad != n))

    def resident(shape):
        return pl.BlockSpec(shape, lambda p, t: (0, 0))

    grid_spec = pltpu.PrefetchScalarGridSpec(
        num_scalar_prefetch=0,
        grid=(3, num_tiles),                 # (phase, batch-tile)
        in_specs=[
            pl.BlockSpec((4, tn), lambda p, t: (0, t)),   # x tile
            resident((L, 4)),                             # W1
            resident((L, 1)), resident((L, 1)), resident((L, 1)),   # b1, g1, be1
            resident((L2, L)),                            # W2
            resident((L2, 1)), resident((L2, 1)), resident((L2, 1)),  # b2, g2, be2
            resident((3, L2)),                            # W3
            resident((3, 1)),                             # b3
        ],
        out_specs=pl.BlockSpec((3, tn), lambda p, t: (0, t)),
        scratch_shapes=[
            pltpu.VMEM((L, 1), jnp.float32),   # mean1 (sum during phase 0)
            pltpu.VMEM((L, 1), jnp.float32),   # rstd1 (sum of squares during phase 0)
            pltpu.VMEM((L2, 1), jnp.float32),  # mean2
            pltpu.VMEM((L2, 1), jnp.float32),  # rstd2
        ],
    )

    out_t = pl.pallas_call(
        kernel,
        out_shape=jax.ShapeDtypeStruct((3, n_pad), jnp.float32),
        grid_spec=grid_spec,
        # Both axes are sequential: phase ordering + cross-tile stats
        # accumulation.  (A megacore "parallel" batch axis would need a
        # cross-core stats combine to keep exact full-batch BN statistics.)
        compiler_params=pltpu.CompilerParams(
            dimension_semantics=("arbitrary", "arbitrary")),
    )(xt, params["w1"], params["b1"], params["g1"], params["be1"],
      params["w2"], params["b2"], params["g2"], params["be2"],
      params["w3"], params["b3"])

    return out_t[:, :n].T                                  # (N, 3)


def init_params(key, L):
    """Weights in native PyTorch (out_features, in_features) layout.
    Linear weights ~ N(0, 5^2) as in initialize_weights(); BN gamma=1, beta=0."""
    L2 = L // 2
    ks = jax.random.split(key, 6)
    std = 5.0
    return dict(
        w1=std * jax.random.normal(ks[0], (L, 4), jnp.float32),
        b1=0.1 * jax.random.normal(ks[1], (L, 1), jnp.float32),
        g1=jnp.ones((L, 1), jnp.float32), be1=jnp.zeros((L, 1), jnp.float32),
        w2=std * jax.random.normal(ks[2], (L2, L), jnp.float32),
        b2=0.1 * jax.random.normal(ks[3], (L2, 1), jnp.float32),
        g2=jnp.ones((L2, 1), jnp.float32), be2=jnp.zeros((L2, 1), jnp.float32),
        w3=std * jax.random.normal(ks[4], (3, L2), jnp.float32),
        b3=0.1 * jax.random.normal(ks[5], (3, 1), jnp.float32),
    )


def reference_forward(x, p):
    """Plain-JAX reference mirroring the PyTorch forward (training-mode BN)."""
    hi = lax.Precision.HIGHEST

    def bn(y, g, be):
        m = jnp.mean(y, axis=0, keepdims=True)
        v = jnp.mean((y - m) ** 2, axis=0, keepdims=True)
        return (y - m) / jnp.sqrt(v + BN_EPS) * g + be

    y = jnp.dot(x, p["w1"].T, precision=hi) + p["b1"].T
    y = jnp.sin(bn(y, p["g1"].T, p["be1"].T))
    y = jnp.dot(y, p["w2"].T, precision=hi) + p["b2"].T
    y = jnp.sin(bn(y, p["g2"].T, p["be2"].T))
    return jnp.dot(y, p["w3"].T, precision=hi) + p["b3"].T


if __name__ == "__main__":
    L = 32          # hidden width
    N = 1000        # batch of (x, y, z, t) points; not a multiple of 128 ->
                    # exercises the padded-tail masking path

    key = jax.random.PRNGKey(0)
    k_x, k_p = jax.random.split(key)
    x = jax.random.normal(k_x, (N, 4), jnp.float32)
    params = init_params(k_p, L)

    out = streamfunction_forward(x, params, tile_n=256)
    out = jax.block_until_ready(out)

    ref = reference_forward(x, params)
    assert out.shape == (N, 3)
    max_err = float(jnp.max(jnp.abs(out - ref)))
    assert jnp.allclose(out, ref, atol=1e-3, rtol=1e-3), (
        f"mismatch vs reference, max abs err={max_err}")

    print("KERNEL_OK")
</pallas_src>

<mosaic_0001>
module attributes {stable_mosaic.version = 11 : i64} {
  func.func @kernel(%arg0: i32, %arg1: i32, %arg2: memref<4x256xf32, #tpu.memory_space<vmem>>, %arg3: memref<32x4xf32, #tpu.memory_space<vmem>>, %arg4: memref<32x1xf32, #tpu.memory_space<vmem>>, %arg5: memref<32x1xf32, #tpu.memory_space<vmem>>, %arg6: memref<32x1xf32, #tpu.memory_space<vmem>>, %arg7: memref<16x32xf32, #tpu.memory_space<vmem>>, %arg8: memref<16x1xf32, #tpu.memory_space<vmem>>, %arg9: memref<16x1xf32, #tpu.memory_space<vmem>>, %arg10: memref<16x1xf32, #tpu.memory_space<vmem>>, %arg11: memref<3x16xf32, #tpu.memory_space<vmem>>, %arg12: memref<3x1xf32, #tpu.memory_space<vmem>>, %arg13: memref<3x256xf32, #tpu.memory_space<vmem>>, %arg14: memref<32x1xf32, #tpu.memory_space<vmem>>, %arg15: memref<32x1xf32, #tpu.memory_space<vmem>>, %arg16: memref<16x1xf32, #tpu.memory_space<vmem>>, %arg17: memref<16x1xf32, #tpu.memory_space<vmem>>) attributes {dimension_semantics = [#tpu.dimension_semantics<arbitrary>, #tpu.dimension_semantics<arbitrary>], iteration_bounds = array<i64: 3, 4>, scalar_prefetch = 0 : i64, scratch_operands = 4 : i64, tpu.core_type = #tpu.core_type<tc>, window_params = [{transform_indices = @transform_0, window_bounds = array<i64: 4, 256>}, {pipeline_mode = #tpu.pipeline_mode<synchronous>, transform_indices = @transform_1, window_bounds = array<i64: 32, 4>}, {pipeline_mode = #tpu.pipeline_mode<synchronous>, transform_indices = @transform_2, window_bounds = array<i64: 32, 1>}, {pipeline_mode = #tpu.pipeline_mode<synchronous>, transform_indices = @transform_3, window_bounds = array<i64: 32, 1>}, {pipeline_mode = #tpu.pipeline_mode<synchronous>, transform_indices = @transform_4, window_bounds = array<i64: 32, 1>}, {pipeline_mode = #tpu.pipeline_mode<synchronous>, transform_indices = @transform_5, window_bounds = array<i64: 16, 32>}, {pipeline_mode = #tpu.pipeline_mode<synchronous>, transform_indices = @transform_6, window_bounds = array<i64: 16, 1>}, {pipeline_mode = #tpu.pipeline_mode<synchronous>, transform_indices = @transform_7, window_bounds = array<i64: 16, 1>}, {pipeline_mode = #tpu.pipeline_mode<synchronous>, transform_indices = @transform_8, window_bounds = array<i64: 16, 1>}, {pipeline_mode = #tpu.pipeline_mode<synchronous>, transform_indices = @transform_9, window_bounds = array<i64: 3, 16>}, {pipeline_mode = #tpu.pipeline_mode<synchronous>, transform_indices = @transform_10, window_bounds = array<i64: 3, 1>}, {transform_indices = @transform_11, window_bounds = array<i64: 3, 256>}]} {
    %c0 = arith.constant 0 : index
    %c0_0 = arith.constant 0 : index
    %0 = vector.load %arg2[%c0, %c0_0] : memref<4x256xf32, #tpu.memory_space<vmem>>, vector<4x256xf32>
    %c0_1 = arith.constant 0 : index
    %c0_2 = arith.constant 0 : index
    %1 = vector.load %arg3[%c0_1, %c0_2] : memref<32x4xf32, #tpu.memory_space<vmem>>, vector<32x4xf32>
    %c0_3 = arith.constant 0 : index
    %c0_4 = arith.constant 0 : index
    %2 = vector.load %arg4[%c0_3, %c0_4] : memref<32x1xf32, #tpu.memory_space<vmem>>, vector<32x1xf32>
    %3 = vector.extract_strided_slice %1 {offsets = [0, 0], sizes = [32, 1], strides = [1, 1]} : vector<32x4xf32> to vector<32x1xf32>
    %4 = vector.extract_strided_slice %0 {offsets = [0, 0], sizes = [1, 256], strides = [1, 1]} : vector<4x256xf32> to vector<1x256xf32>
    %5 = vector.broadcast %3 : vector<32x1xf32> to vector<32x256xf32>
    %6 = vector.broadcast %4 : vector<1x256xf32> to vector<32x256xf32>
    %7 = arith.mulf %5, %6 : vector<32x256xf32>
    %8 = vector.broadcast %2 : vector<32x1xf32> to vector<32x256xf32>
    %9 = arith.addf %8, %7 : vector<32x256xf32>
    %10 = vector.extract_strided_slice %1 {offsets = [0, 1], sizes = [32, 1], strides = [1, 1]} : vector<32x4xf32> to vector<32x1xf32>
    %11 = vector.extract_strided_slice %0 {offsets = [1, 0], sizes = [1, 256], strides = [1, 1]} : vector<4x256xf32> to vector<1x256xf32>
    %12 = vector.broadcast %10 : vector<32x1xf32> to vector<32x256xf32>
    %13 = vector.broadcast %11 : vector<1x256xf32> to vector<32x256xf32>
    %14 = arith.mulf %12, %13 : vector<32x256xf32>
    %15 = arith.addf %9, %14 : vector<32x256xf32>
    %16 = vector.extract_strided_slice %1 {offsets = [0, 2], sizes = [32, 1], strides = [1, 1]} : vector<32x4xf32> to vector<32x1xf32>
    %17 = vector.extract_strided_slice %0 {offsets = [2, 0], sizes = [1, 256], strides = [1, 1]} : vector<4x256xf32> to vector<1x256xf32>
    %18 = vector.broadcast %16 : vector<32x1xf32> to vector<32x256xf32>
    %19 = vector.broadcast %17 : vector<1x256xf32> to vector<32x256xf32>
    %20 = arith.mulf %18, %19 : vector<32x256xf32>
    %21 = arith.addf %15, %20 : vector<32x256xf32>
    %22 = vector.extract_strided_slice %1 {offsets = [0, 3], sizes = [32, 1], strides = [1, 1]} : vector<32x4xf32> to vector<32x1xf32>
    %23 = vector.extract_strided_slice %0 {offsets = [3, 0], sizes = [1, 256], strides = [1, 1]} : vector<4x256xf32> to vector<1x256xf32>
    %24 = vector.broadcast %22 : vector<32x1xf32> to vector<32x256xf32>
    %25 = vector.broadcast %23 : vector<1x256xf32> to vector<32x256xf32>
    %26 = arith.mulf %24, %25 : vector<32x256xf32>
    %27 = arith.addf %21, %26 : vector<32x256xf32>
    %c256_i32 = arith.constant 256 : i32
    %28 = arith.muli %arg1, %c256_i32 : i32
    %29 = tpu.iota {dimensions = array<i32: 1>} : vector<1x256xi32>
    %30 = vector.broadcast %28 : i32 to vector<1x256xi32>
    %31 = arith.addi %30, %29 : vector<1x256xi32>
    %c1000_i32 = arith.constant 1000 : i32
    %32 = vector.broadcast %c1000_i32 : i32 to vector<1x256xi32>
    %33 = arith.cmpi slt, %31, %32 : vector<1x256xi32>
    %34 = arith.extui %33 : vector<1x256xi1> to vector<1x256xi32>
    %35 = arith.sitofp %34 : vector<1x256xi32> to vector<1x256xf32>
    %c0_i32 = arith.constant 0 : i32
    %36 = arith.cmpi eq, %arg0, %c0_i32 : i32
    %37 = arith.extui %36 : i1 to i32
    %c0_i32_5 = arith.constant 0 : i32
    %38 = arith.cmpi ne, %37, %c0_i32_5 : i32
    scf.if %38 {
      %c0_i32_7 = arith.constant 0 : i32
      %42 = arith.cmpi eq, %arg1, %c0_i32_7 : i32
      %43 = arith.extui %42 : i1 to i32
      %c0_i32_8 = arith.constant 0 : i32
      %44 = arith.cmpi ne, %43, %c0_i32_8 : i32
      scf.if %44 {
        %cst_19 = arith.constant 0.000000e+00 : f32
        %61 = vector.broadcast %cst_19 : f32 to vector<32x1xf32>
        %c0_20 = arith.constant 0 : index
        %c0_21 = arith.constant 0 : index
        %62 = vector.load %arg14[%c0_20, %c0_21] : memref<32x1xf32, #tpu.memory_space<vmem>>, vector<32x1xf32>
        tpu.vector_store %arg14[%c0_20, %c0_21], %61 {strides = array<i32>} : memref<32x1xf32, #tpu.memory_space<vmem>>, vector<32x1xf32>,
        %cst_22 = arith.constant 0.000000e+00 : f32
        %63 = vector.broadcast %cst_22 : f32 to vector<32x1xf32>
        %c0_23 = arith.constant 0 : index
        %c0_24 = arith.constant 0 : index
        %64 = vector.load %arg15[%c0_23, %c0_24] : memref<32x1xf32, #tpu.memory_space<vmem>>, vector<32x1xf32>
        tpu.vector_store %arg15[%c0_23, %c0_24], %63 {strides = array<i32>} : memref<32x1xf32, #tpu.memory_space<vmem>>, vector<32x1xf32>,
        %cst_25 = arith.constant 0.000000e+00 : f32
        %65 = vector.broadcast %cst_25 : f32 to vector<16x1xf32>
        %c0_26 = arith.constant 0 : index
        %c0_27 = arith.constant 0 : index
        %66 = vector.load %arg16[%c0_26, %c0_27] : memref<16x1xf32, #tpu.memory_space<vmem>>, vector<16x1xf32>
        tpu.vector_store %arg16[%c0_26, %c0_27], %65 {strides = array<i32>} : memref<16x1xf32, #tpu.memory_space<vmem>>, vector<16x1xf32>,
        %cst_28 = arith.constant 0.000000e+00 : f32
        %67 = vector.broadcast %cst_28 : f32 to vector<16x1xf32>
        %c0_29 = arith.constant 0 : index
        %c0_30 = arith.constant 0 : index
        %68 = vector.load %arg17[%c0_29, %c0_30] : memref<16x1xf32, #tpu.memory_space<vmem>>, vector<16x1xf32>
        tpu.vector_store %arg17[%c0_29, %c0_30], %67 {strides = array<i32>} : memref<16x1xf32, #tpu.memory_space<vmem>>, vector<16x1xf32>,
      } else {
      }
      %45 = vector.broadcast %35 : vector<1x256xf32> to vector<32x256xf32>
      %46 = arith.mulf %27, %45 : vector<32x256xf32>
      %c0_9 = arith.constant 0 : index
      %c0_10 = arith.constant 0 : index
      %47 = vector.load %arg14[%c0_9, %c0_10] : memref<32x1xf32, #tpu.memory_space<vmem>>, vector<32x1xf32>
      %cst = arith.constant dense<0.000000e+00> : vector<32xf32>
      %48 = vector.multi_reduction <add>, %46, %cst [1] : vector<32x256xf32> to vector<32xf32>
      %49 = vector.shape_cast %48 : vector<32xf32> to vector<32x1xf32>
      %50 = arith.addf %47, %49 : vector<32x1xf32>
      %c0_11 = arith.constant 0 : index
      %c0_12 = arith.constant 0 : index
      %51 = vector.load %arg14[%c0_11, %c0_12] : memref<32x1xf32, #tpu.memory_space<vmem>>, vector<32x1xf32>
      tpu.vector_store %arg14[%c0_11, %c0_12], %50 {strides = array<i32>} : memref<32x1xf32, #tpu.memory_space<vmem>>, vector<32x1xf32>,
      %c0_13 = arith.constant 0 : index
      %c0_14 = arith.constant 0 : index
      %52 = vector.load %arg15[%c0_13, %c0_14] : memref<32x1xf32, #tpu.memory_space<vmem>>, vector<32x1xf32>
      %53 = arith.mulf %27, %46 : vector<32x256xf32>
      %cst_15 = arith.constant dense<0.000000e+00> : vector<32xf32>
      %54 = vector.multi_reduction <add>, %53, %cst_15 [1] : vector<32x256xf32> to vector<32xf32>
      %55 = vector.shape_cast %54 : vector<32xf32> to vector<32x1xf32>
      %56 = arith.addf %52, %55 : vector<32x1xf32>
      %c0_16 = arith.constant 0 : index
      %c0_17 = arith.constant 0 : index
      %57 = vector.load %arg15[%c0_16, %c0_17] : memref<32x1xf32, #tpu.memory_space<vmem>>, vector<32x1xf32>
      tpu.vector_store %arg15[%c0_16, %c0_17], %56 {strides = array<i32>} : memref<32x1xf32, #tpu.memory_space<vmem>>, vector<32x1xf32>,
      %c3_i32 = arith.constant 3 : i32
      %58 = arith.cmpi eq, %arg1, %c3_i32 : i32
      %59 = arith.extui %58 : i1 to i32
      %c0_i32_18 = arith.constant 0 : i32
      %60 = arith.cmpi ne, %59, %c0_i32_18 : i32
      scf.if %60 {
        %c0_19 = arith.constant 0 : index
        %c0_20 = arith.constant 0 : index
        %61 = vector.load %arg14[%c0_19, %c0_20] : memref<32x1xf32, #tpu.memory_space<vmem>>, vector<32x1xf32>
        %cst_21 = arith.constant 1.000000e-03 : f32
        %62 = vector.broadcast %cst_21 : f32 to vector<32x1xf32>
        %63 = arith.mulf %61, %62 : vector<32x1xf32>
        %c0_22 = arith.constant 0 : index
        %c0_23 = arith.constant 0 : index
        %64 = vector.load %arg15[%c0_22, %c0_23] : memref<32x1xf32, #tpu.memory_space<vmem>>, vector<32x1xf32>
        %cst_24 = arith.constant 1.000000e-03 : f32
        %65 = vector.broadcast %cst_24 : f32 to vector<32x1xf32>
        %66 = arith.mulf %64, %65 : vector<32x1xf32>
        %67 = arith.mulf %63, %63 : vector<32x1xf32>
        %68 = arith.subf %66, %67 : vector<32x1xf32>
        %c0_25 = arith.constant 0 : index
        %c0_26 = arith.constant 0 : index
        %69 = vector.load %arg14[%c0_25, %c0_26] : memref<32x1xf32, #tpu.memory_space<vmem>>, vector<32x1xf32>
        tpu.vector_store %arg14[%c0_25, %c0_26], %63 {strides = array<i32>} : memref<32x1xf32, #tpu.memory_space<vmem>>, vector<32x1xf32>,
        %cst_27 = arith.constant 9.99999974E-6 : f32
        %70 = vector.broadcast %cst_27 : f32 to vector<32x1xf32>
        %71 = arith.addf %68, %70 : vector<32x1xf32>
        %72 = math.rsqrt %71 : vector<32x1xf32>
        %c0_28 = arith.constant 0 : index
        %c0_29 = arith.constant 0 : index
        %73 = vector.load %arg15[%c0_28, %c0_29] : memref<32x1xf32, #tpu.memory_space<vmem>>, vector<32x1xf32>
        tpu.vector_store %arg15[%c0_28, %c0_29], %72 {strides = array<i32>} : memref<32x1xf32, #tpu.memory_space<vmem>>, vector<32x1xf32>,
      } else {
      }
    } else {
    }
    %c1_i32 = arith.constant 1 : i32
    %39 = arith.cmpi sge, %arg0, %c1_i32 : i32
    %40 = arith.extui %39 : i1 to i32
    %c0_i32_6 = arith.constant 0 : i32
    %41 = arith.cmpi ne, %40, %c0_i32_6 : i32
    scf.if %41 {
      %c0_7 = arith.constant 0 : index
      %c0_8 = arith.constant 0 : index
      %42 = vector.load %arg14[%c0_7, %c0_8] : memref<32x1xf32, #tpu.memory_space<vmem>>, vector<32x1xf32>
      %43 = vector.broadcast %42 : vector<32x1xf32> to vector<32x256xf32>
      %44 = arith.subf %27, %43 : vector<32x256xf32>
      %c0_9 = arith.constant 0 : index
      %c0_10 = arith.constant 0 : index
      %45 = vector.load %arg15[%c0_9, %c0_10] : memref<32x1xf32, #tpu.memory_space<vmem>>, vector<32x1xf32>
      %46 = vector.broadcast %45 : vector<32x1xf32> to vector<32x256xf32>
      %47 = arith.mulf %44, %46 : vector<32x256xf32>
      %c0_11 = arith.constant 0 : index
      %c0_12 = arith.constant 0 : index
      %48 = vector.load %arg5[%c0_11, %c0_12] : memref<32x1xf32, #tpu.memory_space<vmem>>, vector<32x1xf32>
      %49 = vector.broadcast %48 : vector<32x1xf32> to vector<32x256xf32>
      %50 = arith.mulf %47, %49 : vector<32x256xf32>
      %c0_13 = arith.constant 0 : index
      %c0_14 = arith.constant 0 : index
      %51 = vector.load %arg6[%c0_13, %c0_14] : memref<32x1xf32, #tpu.memory_space<vmem>>, vector<32x1xf32>
      %52 = vector.broadcast %51 : vector<32x1xf32> to vector<32x256xf32>
      %53 = arith.addf %50, %52 : vector<32x256xf32>
      %54 = math.sin %53 : vector<32x256xf32>
      %c0_15 = arith.constant 0 : index
      %c0_16 = arith.constant 0 : index
      %55 = vector.load %arg7[%c0_15, %c0_16] : memref<16x32xf32, #tpu.memory_space<vmem>>, vector<16x32xf32>
      %cst = arith.constant dense<0.000000e+00> : vector<16x256xf32>
      %56 = tpu.matmul %55, %54, %cst {dimension_numbers = #tpu.dot_dimension_numbers<[1], [0], [0], [1], [0, 0, 1, 1], [], []>} : vector<16x32xf32>, vector<32x256xf32>, vector<16x256xf32> -> vector<16x256xf32>
      %c0_17 = arith.constant 0 : index
      %c0_18 = arith.constant 0 : index
      %57 = vector.load %arg8[%c0_17, %c0_18] : memref<16x1xf32, #tpu.memory_space<vmem>>, vector<16x1xf32>
      %58 = vector.broadcast %57 : vector<16x1xf32> to vector<16x256xf32>
      %59 = arith.addf %56, %58 : vector<16x256xf32>
      %c1_i32_19 = arith.constant 1 : i32
      %60 = arith.cmpi eq, %arg0, %c1_i32_19 : i32
      %61 = arith.extui %60 : i1 to i32
      %c0_i32_20 = arith.constant 0 : i32
      %62 = arith.cmpi ne, %61, %c0_i32_20 : i32
      scf.if %62 {
        %66 = vector.broadcast %35 : vector<1x256xf32> to vector<16x256xf32>
        %67 = arith.mulf %59, %66 : vector<16x256xf32>
        %c0_22 = arith.constant 0 : index
        %c0_23 = arith.constant 0 : index
        %68 = vector.load %arg16[%c0_22, %c0_23] : memref<16x1xf32, #tpu.memory_space<vmem>>, vector<16x1xf32>
        %cst_24 = arith.constant dense<0.000000e+00> : vector<16xf32>
        %69 = vector.multi_reduction <add>, %67, %cst_24 [1] : vector<16x256xf32> to vector<16xf32>
        %70 = vector.shape_cast %69 : vector<16xf32> to vector<16x1xf32>
        %71 = arith.addf %68, %70 : vector<16x1xf32>
        %c0_25 = arith.constant 0 : index
        %c0_26 = arith.constant 0 : index
        %72 = vector.load %arg16[%c0_25, %c0_26] : memref<16x1xf32, #tpu.memory_space<vmem>>, vector<16x1xf32>
        tpu.vector_store %arg16[%c0_25, %c0_26], %71 {strides = array<i32>} : memref<16x1xf32, #tpu.memory_space<vmem>>, vector<16x1xf32>,
        %c0_27 = arith.constant 0 : index
        %c0_28 = arith.constant 0 : index
        %73 = vector.load %arg17[%c0_27, %c0_28] : memref<16x1xf32, #tpu.memory_space<vmem>>, vector<16x1xf32>
        %74 = arith.mulf %59, %67 : vector<16x256xf32>
        %cst_29 = arith.constant dense<0.000000e+00> : vector<16xf32>
        %75 = vector.multi_reduction <add>, %74, %cst_29 [1] : vector<16x256xf32> to vector<16xf32>
        %76 = vector.shape_cast %75 : vector<16xf32> to vector<16x1xf32>
        %77 = arith.addf %73, %76 : vector<16x1xf32>
        %c0_30 = arith.constant 0 : index
        %c0_31 = arith.constant 0 : index
        %78 = vector.load %arg17[%c0_30, %c0_31] : memref<16x1xf32, #tpu.memory_space<vmem>>, vector<16x1xf32>
        tpu.vector_store %arg17[%c0_30, %c0_31], %77 {strides = array<i32>} : memref<16x1xf32, #tpu.memory_space<vmem>>, vector<16x1xf32>,
        %c3_i32 = arith.constant 3 : i32
        %79 = arith.cmpi eq, %arg1, %c3_i32 : i32
        %80 = arith.extui %79 : i1 to i32
        %c0_i32_32 = arith.constant 0 : i32
        %81 = arith.cmpi ne, %80, %c0_i32_32 : i32
        scf.if %81 {
          %c0_33 = arith.constant 0 : index
          %c0_34 = arith.constant 0 : index
          %82 = vector.load %arg16[%c0_33, %c0_34] : memref<16x1xf32, #tpu.memory_space<vmem>>, vector<16x1xf32>
          %cst_35 = arith.constant 1.000000e-03 : f32
          %83 = vector.broadcast %cst_35 : f32 to vector<16x1xf32>
          %84 = arith.mulf %82, %83 : vector<16x1xf32>
          %c0_36 = arith.constant 0 : index
          %c0_37 = arith.constant 0 : index
          %85 = vector.load %arg17[%c0_36, %c0_37] : memref<16x1xf32, #tpu.memory_space<vmem>>, vector<16x1xf32>
          %cst_38 = arith.constant 1.000000e-03 : f32
          %86 = vector.broadcast %cst_38 : f32 to vector<16x1xf32>
          %87 = arith.mulf %85, %86 : vector<16x1xf32>
          %88 = arith.mulf %84, %84 : vector<16x1xf32>
          %89 = arith.subf %87, %88 : vector<16x1xf32>
          %c0_39 = arith.constant 0 : index
          %c0_40 = arith.constant 0 : index
          %90 = vector.load %arg16[%c0_39, %c0_40] : memref<16x1xf32, #tpu.memory_space<vmem>>, vector<16x1xf32>
          tpu.vector_store %arg16[%c0_39, %c0_40], %84 {strides = array<i32>} : memref<16x1xf32, #tpu.memory_space<vmem>>, vector<16x1xf32>,
          %cst_41 = arith.constant 9.99999974E-6 : f32
          %91 = vector.broadcast %cst_41 : f32 to vector<16x1xf32>
          %92 = arith.addf %89, %91 : vector<16x1xf32>
          %93 = math.rsqrt %92 : vector<16x1xf32>
          %c0_42 = arith.constant 0 : index
          %c0_43 = arith.constant 0 : index
          %94 = vector.load %arg17[%c0_42, %c0_43] : memref<16x1xf32, #tpu.memory_space<vmem>>, vector<16x1xf32>
          tpu.vector_store %arg17[%c0_42, %c0_43], %93 {strides = array<i32>} : memref<16x1xf32, #tpu.memory_space<vmem>>, vector<16x1xf32>,
        } else {
        }
      } else {
      }
      %c2_i32 = arith.constant 2 : i32
      %63 = arith.cmpi eq, %arg0, %c2_i32 : i32
      %64 = arith.extui %63 : i1 to i32
      %c0_i32_21 = arith.constant 0 : i32
      %65 = arith.cmpi ne, %64, %c0_i32_21 : i32
      scf.if %65 {
        %c0_22 = arith.constant 0 : index
        %c0_23 = arith.constant 0 : index
        %66 = vector.load %arg16[%c0_22, %c0_23] : memref<16x1xf32, #tpu.memory_space<vmem>>, vector<16x1xf32>
        %67 = vector.broadcast %66 : vector<16x1xf32> to vector<16x256xf32>
        %68 = arith.subf %59, %67 : vector<16x256xf32>
        %c0_24 = arith.constant 0 : index
        %c0_25 = arith.constant 0 : index
        %69 = vector.load %arg17[%c0_24, %c0_25] : memref<16x1xf32, #tpu.memory_space<vmem>>, vector<16x1xf32>
        %70 = vector.broadcast %69 : vector<16x1xf32> to vector<16x256xf32>
        %71 = arith.mulf %68, %70 : vector<16x256xf32>
        %c0_26 = arith.constant 0 : index
        %c0_27 = arith.constant 0 : index
        %72 = vector.load %arg9[%c0_26, %c0_27] : memref<16x1xf32, #tpu.memory_space<vmem>>, vector<16x1xf32>
        %73 = vector.broadcast %72 : vector<16x1xf32> to vector<16x256xf32>
        %74 = arith.mulf %71, %73 : vector<16x256xf32>
        %c0_28 = arith.constant 0 : index
        %c0_29 = arith.constant 0 : index
        %75 = vector.load %arg10[%c0_28, %c0_29] : memref<16x1xf32, #tpu.memory_space<vmem>>, vector<16x1xf32>
        %76 = vector.broadcast %75 : vector<16x1xf32> to vector<16x256xf32>
        %77 = arith.addf %74, %76 : vector<16x256xf32>
        %78 = math.sin %77 : vector<16x256xf32>
        %c0_30 = arith.constant 0 : index
        %c0_31 = arith.constant 0 : index
        %79 = vector.load %arg11[%c0_30, %c0_31] : memref<3x16xf32, #tpu.memory_space<vmem>>, vector<3x16xf32>
        %c0_32 = arith.constant 0 : index
        %c0_33 = arith.constant 0 : index
        %80 = vector.load %arg12[%c0_32, %c0_33] : memref<3x1xf32, #tpu.memory_space<vmem>>, vector<3x1xf32>
        %81 = vector.extract_strided_slice %79 {offsets = [0, 0], sizes = [3, 1], strides = [1, 1]} : vector<3x16xf32> to vector<3x1xf32>
        %82 = vector.extract_strided_slice %78 {offsets = [0, 0], sizes = [1, 256], strides = [1, 1]} : vector<16x256xf32> to vector<1x256xf32>
        %83 = vector.broadcast %81 : vector<3x1xf32> to vector<3x256xf32>
        %84 = vector.broadcast %82 : vector<1x256xf32> to vector<3x256xf32>
        %85 = arith.mulf %83, %84 : vector<3x256xf32>
        %86 = vector.broadcast %80 : vector<3x1xf32> to vector<3x256xf32>
        %87 = arith.addf %86, %85 : vector<3x256xf32>
        %88 = vector.extract_strided_slice %79 {offsets = [0, 1], sizes = [3, 1], strides = [1, 1]} : vector<3x16xf32> to vector<3x1xf32>
        %89 = vector.extract_strided_slice %78 {offsets = [1, 0], sizes = [1, 256], strides = [1, 1]} : vector<16x256xf32> to vector<1x256xf32>
        %90 = vector.broadcast %88 : vector<3x1xf32> to vector<3x256xf32>
        %91 = vector.broadcast %89 : vector<1x256xf32> to vector<3x256xf32>
        %92 = arith.mulf %90, %91 : vector<3x256xf32>
        %93 = arith.addf %87, %92 : vector<3x256xf32>
        %94 = vector.extract_strided_slice %79 {offsets = [0, 2], sizes = [3, 1], strides = [1, 1]} : vector<3x16xf32> to vector<3x1xf32>
        %95 = vector.extract_strided_slice %78 {offsets = [2, 0], sizes = [1, 256], strides = [1, 1]} : vector<16x256xf32> to vector<1x256xf32>
        %96 = vector.broadcast %94 : vector<3x1xf32> to vector<3x256xf32>
        %97 = vector.broadcast %95 : vector<1x256xf32> to vector<3x256xf32>
        %98 = arith.mulf %96, %97 : vector<3x256xf32>
        %99 = arith.addf %93, %98 : vector<3x256xf32>
        %100 = vector.extract_strided_slice %79 {offsets = [0, 3], sizes = [3, 1], strides = [1, 1]} : vector<3x16xf32> to vector<3x1xf32>
        %101 = vector.extract_strided_slice %78 {offsets = [3, 0], sizes = [1, 256], strides = [1, 1]} : vector<16x256xf32> to vector<1x256xf32>
        %102 = vector.broadcast %100 : vector<3x1xf32> to vector<3x256xf32>
        %103 = vector.broadcast %101 : vector<1x256xf32> to vector<3x256xf32>
        %104 = arith.mulf %102, %103 : vector<3x256xf32>
        %105 = arith.addf %99, %104 : vector<3x256xf32>
        %106 = vector.extract_strided_slice %79 {offsets = [0, 4], sizes = [3, 1], strides = [1, 1]} : vector<3x16xf32> to vector<3x1xf32>
        %107 = vector.extract_strided_slice %78 {offsets = [4, 0], sizes = [1, 256], strides = [1, 1]} : vector<16x256xf32> to vector<1x256xf32>
        %108 = vector.broadcast %106 : vector<3x1xf32> to vector<3x256xf32>
        %109 = vector.broadcast %107 : vector<1x256xf32> to vector<3x256xf32>
        %110 = arith.mulf %108, %109 : vector<3x256xf32>
        %111 = arith.addf %105, %110 : vector<3x256xf32>
        %112 = vector.extract_strided_slice %79 {offsets = [0, 5], sizes = [3, 1], strides = [1, 1]} : vector<3x16xf32> to vector<3x1xf32>
        %113 = vector.extract_strided_slice %78 {offsets = [5, 0], sizes = [1, 256], strides = [1, 1]} : vector<16x256xf32> to vector<1x256xf32>
        %114 = vector.broadcast %112 : vector<3x1xf32> to vector<3x256xf32>
        %115 = vector.broadcast %113 : vector<1x256xf32> to vector<3x256xf32>
        %116 = arith.mulf %114, %115 : vector<3x256xf32>
        %117 = arith.addf %111, %116 : vector<3x256xf32>
        %118 = vector.extract_strided_slice %79 {offsets = [0, 6], sizes = [3, 1], strides = [1, 1]} : vector<3x16xf32> to vector<3x1xf32>
        %119 = vector.extract_strided_slice %78 {offsets = [6, 0], sizes = [1, 256], strides = [1, 1]} : vector<16x256xf32> to vector<1x256xf32>
        %120 = vector.broadcast %118 : vector<3x1xf32> to vector<3x256xf32>
        %121 = vector.broadcast %119 : vector<1x256xf32> to vector<3x256xf32>
        %122 = arith.mulf %120, %121 : vector<3x256xf32>
        %123 = arith.addf %117, %122 : vector<3x256xf32>
        %124 = vector.extract_strided_slice %79 {offsets = [0, 7], sizes = [3, 1], strides = [1, 1]} : vector<3x16xf32> to vector<3x1xf32>
        %125 = vector.extract_strided_slice %78 {offsets = [7, 0], sizes = [1, 256], strides = [1, 1]} : vector<16x256xf32> to vector<1x256xf32>
        %126 = vector.broadcast %124 : vector<3x1xf32> to vector<3x256xf32>
        %127 = vector.broadcast %125 : vector<1x256xf32> to vector<3x256xf32>
        %128 = arith.mulf %126, %127 : vector<3x256xf32>
        %129 = arith.addf %123, %128 : vector<3x256xf32>
        %130 = vector.extract_strided_slice %79 {offsets = [0, 8], sizes = [3, 1], strides = [1, 1]} : vector<3x16xf32> to vector<3x1xf32>
        %131 = vector.extract_strided_slice %78 {offsets = [8, 0], sizes = [1, 256], strides = [1, 1]} : vector<16x256xf32> to vector<1x256xf32>
        %132 = vector.broadcast %130 : vector<3x1xf32> to vector<3x256xf32>
        %133 = vector.broadcast %131 : vector<1x256xf32> to vector<3x256xf32>
        %134 = arith.mulf %132, %133 : vector<3x256xf32>
        %135 = arith.addf %129, %134 : vector<3x256xf32>
        %136 = vector.extract_strided_slice %79 {offsets = [0, 9], sizes = [3, 1], strides = [1, 1]} : vector<3x16xf32> to vector<3x1xf32>
        %137 = vector.extract_strided_slice %78 {offsets = [9, 0], sizes = [1, 256], strides = [1, 1]} : vector<16x256xf32> to vector<1x256xf32>
        %138 = vector.broadcast %136 : vector<3x1xf32> to vector<3x256xf32>
        %139 = vector.broadcast %137 : vector<1x256xf32> to vector<3x256xf32>
        %140 = arith.mulf %138, %139 : vector<3x256xf32>
        %141 = arith.addf %135, %140 : vector<3x256xf32>
        %142 = vector.extract_strided_slice %79 {offsets = [0, 10], sizes = [3, 1], strides = [1, 1]} : vector<3x16xf32> to vector<3x1xf32>
        %143 = vector.extract_strided_slice %78 {offsets = [10, 0], sizes = [1, 256], strides = [1, 1]} : vector<16x256xf32> to vector<1x256xf32>
        %144 = vector.broadcast %142 : vector<3x1xf32> to vector<3x256xf32>
        %145 = vector.broadcast %143 : vector<1x256xf32> to vector<3x256xf32>
        %146 = arith.mulf %144, %145 : vector<3x256xf32>
        %147 = arith.addf %141, %146 : vector<3x256xf32>
        %148 = vector.extract_strided_slice %79 {offsets = [0, 11], sizes = [3, 1], strides = [1, 1]} : vector<3x16xf32> to vector<3x1xf32>
        %149 = vector.extract_strided_slice %78 {offsets = [11, 0], sizes = [1, 256], strides = [1, 1]} : vector<16x256xf32> to vector<1x256xf32>
        %150 = vector.broadcast %148 : vector<3x1xf32> to vector<3x256xf32>
        %151 = vector.broadcast %149 : vector<1x256xf32> to vector<3x256xf32>
        %152 = arith.mulf %150, %151 : vector<3x256xf32>
        %153 = arith.addf %147, %152 : vector<3x256xf32>
        %154 = vector.extract_strided_slice %79 {offsets = [0, 12], sizes = [3, 1], strides = [1, 1]} : vector<3x16xf32> to vector<3x1xf32>
        %155 = vector.extract_strided_slice %78 {offsets = [12, 0], sizes = [1, 256], strides = [1, 1]} : vector<16x256xf32> to vector<1x256xf32>
        %156 = vector.broadcast %154 : vector<3x1xf32> to vector<3x256xf32>
        %157 = vector.broadcast %155 : vector<1x256xf32> to vector<3x256xf32>
        %158 = arith.mulf %156, %157 : vector<3x256xf32>
        %159 = arith.addf %153, %158 : vector<3x256xf32>
        %160 = vector.extract_strided_slice %79 {offsets = [0, 13], sizes = [3, 1], strides = [1, 1]} : vector<3x16xf32> to vector<3x1xf32>
        %161 = vector.extract_strided_slice %78 {offsets = [13, 0], sizes = [1, 256], strides = [1, 1]} : vector<16x256xf32> to vector<1x256xf32>
        %162 = vector.broadcast %160 : vector<3x1xf32> to vector<3x256xf32>
        %163 = vector.broadcast %161 : vector<1x256xf32> to vector<3x256xf32>
        %164 = arith.mulf %162, %163 : vector<3x256xf32>
        %165 = arith.addf %159, %164 : vector<3x256xf32>
        %166 = vector.extract_strided_slice %79 {offsets = [0, 14], sizes = [3, 1], strides = [1, 1]} : vector<3x16xf32> to vector<3x1xf32>
        %167 = vector.extract_strided_slice %78 {offsets = [14, 0], sizes = [1, 256], strides = [1, 1]} : vector<16x256xf32> to vector<1x256xf32>
        %168 = vector.broadcast %166 : vector<3x1xf32> to vector<3x256xf32>
        %169 = vector.broadcast %167 : vector<1x256xf32> to vector<3x256xf32>
        %170 = arith.mulf %168, %169 : vector<3x256xf32>
        %171 = arith.addf %165, %170 : vector<3x256xf32>
        %172 = vector.extract_strided_slice %79 {offsets = [0, 15], sizes = [3, 1], strides = [1, 1]} : vector<3x16xf32> to vector<3x1xf32>
        %173 = vector.extract_strided_slice %78 {offsets = [15, 0], sizes = [1, 256], strides = [1, 1]} : vector<16x256xf32> to vector<1x256xf32>
        %174 = vector.broadcast %172 : vector<3x1xf32> to vector<3x256xf32>
        %175 = vector.broadcast %173 : vector<1x256xf32> to vector<3x256xf32>
        %176 = arith.mulf %174, %175 : vector<3x256xf32>
        %177 = arith.addf %171, %176 : vector<3x256xf32>
        %c0_34 = arith.constant 0 : index
        %c0_35 = arith.constant 0 : index
        %178 = vector.load %arg13[%c0_34, %c0_35] : memref<3x256xf32, #tpu.memory_space<vmem>>, vector<3x256xf32>
        tpu.vector_store %arg13[%c0_34, %c0_35], %177 {strides = array<i32>} : memref<3x256xf32, #tpu.memory_space<vmem>>, vector<3x256xf32>,
      } else {
      }
    } else {
    }
    return
  }
  func.func @transform_0(%arg0: i32, %arg1: i32) -> (i32, i32) {
    %c0_i32 = arith.constant 0 : i32
    %c0_i32_0 = arith.constant 0 : i32
    return %c0_i32, %arg1 : i32, i32
  }
  func.func @transform_1(%arg0: i32, %arg1: i32) -> (i32, i32) {
    %c0_i32 = arith.constant 0 : i32
    %c0_i32_0 = arith.constant 0 : i32
    %c0_i32_1 = arith.constant 0 : i32
    return %c0_i32, %c0_i32_0 : i32, i32
  }
  func.func @transform_2(%arg0: i32, %arg1: i32) -> (i32, i32) {
    %c0_i32 = arith.constant 0 : i32
    %c0_i32_0 = arith.constant 0 : i32
    %c0_i32_1 = arith.constant 0 : i32
    return %c0_i32, %c0_i32_0 : i32, i32
  }
  func.func @transform_3(%arg0: i32, %arg1: i32) -> (i32, i32) {
    %c0_i32 = arith.constant 0 : i32
    %c0_i32_0 = arith.constant 0 : i32
    %c0_i32_1 = arith.constant 0 : i32
    return %c0_i32, %c0_i32_0 : i32, i32
  }
  func.func @transform_4(%arg0: i32, %arg1: i32) -> (i32, i32) {
    %c0_i32 = arith.constant 0 : i32
    %c0_i32_0 = arith.constant 0 : i32
    %c0_i32_1 = arith.constant 0 : i32
    return %c0_i32, %c0_i32_0 : i32, i32
  }
  func.func @transform_5(%arg0: i32, %arg1: i32) -> (i32, i32) {
    %c0_i32 = arith.constant 0 : i32
    %c0_i32_0 = arith.constant 0 : i32
    %c0_i32_1 = arith.constant 0 : i32
    return %c0_i32, %c0_i32_0 : i32, i32
  }
  func.func @transform_6(%arg0: i32, %arg1: i32) -> (i32, i32) {
    %c0_i32 = arith.constant 0 : i32
    %c0_i32_0 = arith.constant 0 : i32
    %c0_i32_1 = arith.constant 0 : i32
    return %c0_i32, %c0_i32_0 : i32, i32
  }
  func.func @transform_7(%arg0: i32, %arg1: i32) -> (i32, i32) {
    %c0_i32 = arith.constant 0 : i32
    %c0_i32_0 = arith.constant 0 : i32
    %c0_i32_1 = arith.constant 0 : i32
    return %c0_i32, %c0_i32_0 : i32, i32
  }
  func.func @transform_8(%arg0: i32, %arg1: i32) -> (i32, i32) {
    %c0_i32 = arith.constant 0 : i32
    %c0_i32_0 = arith.constant 0 : i32
    %c0_i32_1 = arith.constant 0 : i32
    return %c0_i32, %c0_i32_0 : i32, i32
  }
  func.func @transform_9(%arg0: i32, %arg1: i32) -> (i32, i32) {
    %c0_i32 = arith.constant 0 : i32
    %c0_i32_0 = arith.constant 0 : i32
    %c0_i32_1 = arith.constant 0 : i32
    return %c0_i32, %c0_i32_0 : i32, i32
  }
  func.func @transform_10(%arg0: i32, %arg1: i32) -> (i32, i32) {
    %c0_i32 = arith.constant 0 : i32
    %c0_i32_0 = arith.constant 0 : i32
    %c0_i32_1 = arith.constant 0 : i32
    return %c0_i32, %c0_i32_0 : i32, i32
  }
  func.func @transform_11(%arg0: i32, %arg1: i32) -> (i32, i32) {
    %c0_i32 = arith.constant 0 : i32
    %c0_i32_0 = arith.constant 0 : i32
    return %c0_i32, %arg1 : i32, i32
  }
}

</mosaic_0001>

<bundles_post_ra>
// kernel: tpu_custom_call.1
= control target key start
LH: loop header
LB: loop body
LE: loop exit
PB: predicated region body
PF: predicated region fallthrough
CT: control target
= control target key end

     0   :  { %s4889_s0 = inlined_call_operand.vmem [shape: f32[4,1024], index: 0, kind: input, shape index: {}]   ;;  %s4890_s1 = inlined_call_operand.vmem [shape: f32[32,4], index: 1, kind: input, shape index: {}]   ;;  %s4891_s2 = inlined_call_operand.vmem [shape: f32[32,1], index: 2, kind: input, shape index: {}]   ;;  %s4892_s3 = inlined_call_operand.vmem [shape: f32[32,1], index: 3, kind: input, shape index: {}]   ;;  %s4893_s4 = inlined_call_operand.vmem [shape: f32[32,1], index: 4, kind: input, shape index: {}]   ;;  %s4894_s5 = inlined_call_operand.vmem [shape: f32[16,32], index: 5, kind: input, shape index: {}]   ;;  %s4895_s6 = inlined_call_operand.vmem [shape: f32[16,1], index: 6, kind: input, shape index: {}]   ;;  %s4896_s7 = inlined_call_operand.vmem [shape: f32[16,1], index: 7, kind: input, shape index: {}]   ;;  %s4897_s8 = inlined_call_operand.vmem [shape: f32[16,1], index: 8, kind: input, shape index: {}]   ;;  %s4898_s9 = inlined_call_operand.vmem [shape: f32[3,16], index: 9, kind: input, shape index: {}]   ;;  %s4899_s10 = inlined_call_operand.vmem [shape: f32[3,1], index: 10, kind: input, shape index: {}]   ;;  %s4900_s11 = inlined_call_operand.hbm [shape: f32[3,1024], index: 11, kind: output, shape index: {}]  }
   0x1   :  { %4956 = sst [smem:[#allocation34_spill]] %s4889_s0 }
   0x2   :  { %4957 = sst [smem:[#allocation35_spill]] %s4890_s1 }
   0x3   :  { %4958 = sst [smem:[#allocation36_spill]] %s4891_s2 }
   0x4   :  { %4959 = sst [smem:[#allocation37_spill]] %s4892_s3 }
   0x5   :  { %16 = vsyncpa [#allocation7], 0 }
   0x6   :  { %18 = vsyncpa [#allocation7 + $0x1], 0  ;;  %s3254_s17 = smov 0   ;;  %s3256_s18 = smov 0  }
   0x7   :  { %s3258_s19 = smov 0   ;;  %s3260_s20 = smov 0  }
   0x8   :  { %s3262_s21 = smov 0   ;;  %s3264_s22 = smov 0  }
   0x9   :  { %s3266_s23 = smov 0   ;;  %s3268_s24 = smov 0  }
   0xa LB: > { %s2738_s25 = sadd.s32 4294967295, %s3155_s24   ;;  %s2739_s26 = sadd.s32 4294967294, %s3155_s24   ;;  %s3155_s24 = sphi %s3268_s24, %s24_s24   ;;  %s3151_s23 = sphi %s3266_s23, %s5059_s23   ;;  %s3147_s22 = sphi %s3264_s22, %s5058_s22   ;;  %s3143_s21 = sphi %s3262_s21, %s5057_s21   ;;  %s3139_s20 = sphi %s3260_s20, %s5056_s20   ;;  %s3135_s19 = sphi %s3258_s19, %s5055_s19   ;;  %s3131_s18 = sphi %s3256_s18, %s5054_s18   ;;  %s3127_s17 = sphi %s3254_s17, %s5053_s17  }
   0xb   : > { %s33_s27 = sadd.s32 1, %s3147_s22  ;;  %s36_s28 = sadd.s32 1, %s3151_s23 }
   0xc   : > { %p34_p0 = scmp.ge.s32.totalorder %s33_s27, 4  ;;  %s279_s29 = sadd.s32 1, %s3135_s19 }
   0xd   : > { %p289_p1 = scmp.ne.s32.totalorder %s3135_s19, %s3131_s18  ;;  %p290_p2 = scmp.eq.s32.totalorder %s2738_s25, 11 }
   0xe   : > { %s5061_s27 = smov (%p34_p0, %s33_s27), 0  ;;  %s5063_s28 = smov (!%p34_p0, %s36_s28), %s3151_s23 }
   0xf   : > { %4960 = sst [smem:[#allocation9_spill]] %s5061_s27  ;;  %s276_s30 = ssub.s32 %s3147_s22, %s5061_s27 }
  0x10   : > { %p3306_p3 = por %p290_p2, %p289_p1  ;;  %p38_p4 = scmp.ge.s32.totalorder %s5063_s28, 3 }
  0x11   : > { %p277_p5 = scmp.eq.s32.totalorder %s276_s30, 0  ;;  %p295_p6 = scmp.ne.s32.totalorder %s3131_s18, %s3127_s17 }
  0x12   : > { %p296_p7 = scmp.eq.s32.totalorder %s2739_s26, 11  ;;  %s5065_s28 = smov (%p38_p4, %s5063_s28), 0 }
  0x13   : > { %4962 = sst [smem:[#allocation10_spill]] %s5065_s28  ;;  %p2742_p9 = scmp.ge.s32.totalorder %s3155_s24, 1 }
  0x14   : > { %s3315_s13 = scalar_select %p277_p5, %s3135_s19, %s279_s29  }
  0x15   : > { %p3317_p8 = por %p296_p7, %p295_p6  ;;  %p353_p10 = scmp.lt.s32.totalorder %s3155_s24, 13 }
  0x17   : > { %p354_p11 = pnand %p2742_p9, %p353_p10 }
  0x19   : > { %357 = sbr.rel (%p354_p11) target bundleno = 1500 (0x5dc), region = 64 }
  0x1e   : > { %s4964_s1 = sld [smem:[#allocation35_spill]]  ;;  %v430_v2 = vlaneseq  ;;  %v3157_v3 = vmov 0   ;;  %s2746_s26 = sshll.u32 %s3139_s20, 8  ;;  %v3158_v13 = vmov 0.0   ;;  %v3159_v18 = vmov 1  }
  0x1f   : > { %2976 = vset.pattern.permute.xlu1 %v3157_v3  ;;  %2975 = vset.pattern.permute.xlu0 %v3157_v3  ;;  %v638_v5 = vstv %s2746_s26  ;;  %s4965_s2 = sld [smem:[#allocation36_spill]]  ;;  %v3160_v19 = vmov 2   ;;  %v3161_v20 = vmov 3   ;;  %s4902_s27 = sand.u32 1, %s3131_s18  }
  0x20   : > { %v636_v4 = vand.u32 127, %v430_v2  ;;  %s3355_s25 = sshll.u32 %s4902_s27, 3  ;;  %s2744_s30 = sshll.u32 %s3139_s20, 1  ;;  %v431_v27 = vshrl.u32 %v430_v2, 7 }
  0x21   : > { %p394_p12 = scmp.lt.s32.totalorder %s2744_s30, 7  ;;  %s4968_s0 = sld [smem:[#allocation34_spill]] }
  0x22   : > { %v637_v8 = vadd.s32 128, %v636_v4  ;;  %v639_v9 = vadd.s32 %v638_v5, %v636_v4  ;;  %v3367_v30 = vsub.s32 0, %v431_v27  ;;  %v3369_v31 = vsub.s32 4, %v431_v27  ;;  %p2749_p13 = scmp.ne.s32.totalorder %s3143_s21, 0 }
  0x23   : > { %s5067_s30 = smov (!%p394_p12, %s2744_s30), 7  ;;  %v3371_v32 = vsub.s32 1, %v431_v27  ;;  %v3373_v33 = vsub.s32 5, %v431_v27  ;;  %v3375_v35 = vsub.s32 2, %v431_v27  ;;  %v3377_v36 = vsub.s32 6, %v431_v27  ;;  %p2750_p0 = scmp.ne.s32.totalorder (!%p2749_p13), %s3139_s20, 0 }
  0x24   : > { %v403_v0 = vld [vmem:[%s4964_s1 + $0x10] sm:$0xff]  ;;  %v401_v1 = vld [vmem:[%s4964_s1] sm:$0xff]  ;;  %v404_v6 = vld [vmem:[%s4964_s1 + $0x18] sm:$0xff]  ;;  %v640_v10 = vadd.s32 %v638_v5, %v637_v8  ;;  %vm641_vm0 = vcmp.lt.s32.totalorder %v639_v9, 1000  ;;  %s2745_s26 = sshll.u32 %s5067_s30, 2  ;;  %4969 = vst [vmem:[#allocation13_spill] sm:$0xff] %v3367_v30 }
  0x25   : > { %421 = vperm.xlu1 %2976, %v403_v0   ;;  %411 = vperm.xlu0 %2975, %v401_v1   ;;  %v402_v7 = vld [vmem:[%s4964_s1 + $0x8] sm:$0xff]  ;;  %v405_v12 = vld [vmem:[%s4965_s2] sm:$0xff]  ;;  %v3342_v14 = vsel %vm641_vm0, 1.0, %v3158_v13  ;;  %v408_v16 = vld [vmem:[%s4965_s2 + $0x18] sm:$0xff]  ;;  %4970 = vst [vmem:[#allocation14_spill] sm:$0xff] %v3369_v31  ;;  %v3383_v43 = vsub.s32 3, %v431_v27 }
  0x26   : > { %v406_v11 = vld [vmem:[%s4965_s2 + $0x8] sm:$0xff]  ;;  %4966 = vst [vmem:[#allocation11_spill] sm:$0xff] %v3342_v14  ;;  %vm642_vm1 = vcmp.lt.s32.totalorder %v640_v10, 1000  ;;  %v407_v17 = vld [vmem:[%s4965_s2 + $0x10] sm:$0xff]  ;;  %4971 = vst [vmem:[#allocation15_spill] sm:$0xff] %v3371_v32  ;;  %v3385_v44 = vsub.s32 7, %v431_v27 }
  0x27   : > { %v3344_v15 = vsel %vm642_vm1, 1.0, %v3158_v13  ;;  %s397_s15 = scalar_lea.vmem %s4968_s0, %s2745_s26  ;;  %4972 = vst [vmem:[#allocation16_spill] sm:$0xff] %v3373_v33  ;;  %4973 = vst [vmem:[#allocation17_spill] sm:$0xff] %v3375_v35 }
  0x28   : > { %4967 = vst [vmem:[#allocation12_spill] sm:$0xff] %v3344_v15  ;;  %v400_v34 = vld [vmem:[%s397_s15] sm:$0xff]  ;;  %4974 = vst [vmem:[#allocation18_spill] sm:$0xff] %v3377_v36 }
  0x29   : > { %426 = vperm.xlu1 %2976, %v404_v6   ;;  %416 = vperm.xlu0 %2975, %v402_v7   ;;  %v433_v39 = vrot.slane %v400_v34, %v3367_v30  ;;  %v437_v40 = vrot.slane %v400_v34, %v3369_v31  ;;  %v503_v41 = vrot.slane %v400_v34, %v3371_v32 }
  0x2a   : > { %v507_v42 = vrot.slane %v400_v34, %v3373_v33  ;;  %4975 = vst [vmem:[#allocation19_spill] sm:$0xff] %v3383_v43  ;;  %4976 = vst [vmem:[#allocation20_spill] sm:$0xff] %v3385_v44  ;;  %v553_v45 = vrot.slane %v400_v34, %v3375_v35  ;;  %v557_v46 = vrot.slane %v400_v34, %v3377_v36 }
  0x2b   : > { %v443_v49 = vrot.slane %v433_v39, %v3367_v30  ;;  %v447_v50 = vrot.slane %v437_v40, %v3367_v30  ;;  %v513_v51 = vrot.slane %v503_v41, %v3371_v32  ;;  %v603_v53 = vrot.slane %v400_v34, %v3383_v43 }
  0x2c   : > { %v517_v52 = vrot.slane %v507_v42, %v3371_v32  ;;  %v607_v54 = vrot.slane %v400_v34, %v3385_v44  ;;  %v563_v57 = vrot.slane %v553_v45, %v3375_v35  ;;  %v567_v58 = vrot.slane %v557_v46, %v3375_v35 }
  0x2d   : > { %463 = vperm.xlu1 %2976, %v406_v11   ;;  %458 = vperm.xlu0 %2975, %v405_v12   ;;  %v3400_v63 = vrot.slane %v603_v53, %v3383_v43 }
  0x31   : > { %473 = vperm.xlu1 %2976, %v408_v16   ;;  %468 = vperm.xlu0 %2975, %v407_v17  }
  0x35   : > { %2978 = vset.pattern.permute.xlu1 %v3159_v18  ;;  %2977 = vset.pattern.permute.xlu0 %v3159_v18 }
  0x36   : > { %489 = vperm.xlu1 %2978, %v402_v7   ;;  %485 = vperm.xlu0 %2977, %v401_v1  }
  0x3a   : > { %493 = vperm.xlu1 %2978, %v403_v0   ;;  %497 = vperm.xlu0 %2977, %v404_v6  }
  0x3e   : > { %2979 = vset.pattern.permute.xlu1 %v3160_v19  ;;  %2980 = vset.pattern.permute.xlu0 %v3160_v19 }
  0x3f   : > { %535 = vperm.xlu1 %2979, %v401_v1   ;;  %539 = vperm.xlu0 %2980, %v402_v7  }
  0x43   : > { %543 = vperm.xlu1 %2979, %v403_v0   ;;  %2981 = vset.pattern.permute.xlu0 %v3161_v20 }
  0x44   : > { %585 = vperm.xlu0 %2981, %v401_v1  }
  0x47   : > { %547 = vperm.xlu1 %2979, %v404_v6  }
  0x48   : > { %597 = vperm.xlu0 %2981, %v404_v6  }
  0x4b   : > { %2982 = vset.pattern.permute.xlu1 %v3161_v20 }
  0x4c   : > { %589 = vperm.xlu1 %2982, %v402_v7  }
  0x50   : > { %593 = vperm.xlu1 %2982, %v403_v0   ;;  %v3403_v0 = vrot.slane %v607_v54, %v3383_v43 }
  0xa0   : > { %v3358_v21 = vpop.permute.xlu1 %421  ;;  %v412_v22 = vpop.permute.xlu0 %411 }
  0xa1   : > { %v448_v55 = vmul.f32 %v443_v49, %v412_v22  ;;  %v449_v56 = vmul.f32 %v447_v50, %v412_v22  ;;  %v452_v54 = vmul.f32 %v443_v49, %v3358_v21 }
  0xa4   : > { %v427_v23 = vpop.permute.xlu1 %426  ;;  %v417_v24 = vpop.permute.xlu0 %416 }
  0xa5   : > { %v454_v5 = vmul.f32 %v443_v49, %v427_v23  ;;  %v455_v6 = vmul.f32 %v447_v50, %v427_v23  ;;  %v450_v7 = vmul.f32 %v443_v49, %v417_v24  ;;  %v451_v8 = vmul.f32 %v447_v50, %v417_v24 }
  0xa8   : > { %v3360_v25 = vpop.permute.xlu1 %463  ;;  %v459_v26 = vpop.permute.xlu0 %458 }
  0xa9   : > { %v476_v1 = vadd.f32 %v459_v26, %v448_v55  ;;  %v477_v2 = vadd.f32 %v459_v26, %v449_v56  ;;  %v478_v27 = vadd.f32 %v3360_v25, %v450_v7  ;;  %v479_v23 = vadd.f32 %v3360_v25, %v451_v8 }
  0xaa   : > { %v453_v55 = vmul.f32 %v447_v50, %v3358_v21 }
  0xac   : > { %v474_v28 = vpop.permute.xlu1 %473  ;;  %v3365_v29 = vpop.permute.xlu0 %468 }
  0xad   : > { %v482_v16 = vadd.f32 %v474_v28, %v454_v5  ;;  %v483_v17 = vadd.f32 %v474_v28, %v455_v6 }
  0xb1   : > { %v490_v37 = vpop.permute.xlu1 %489  ;;  %v486_v38 = vpop.permute.xlu0 %485 }
  0xb2   : > { %v518_v59 = vmul.f32 %v513_v51, %v486_v38  ;;  %v519_v60 = vmul.f32 %v517_v52, %v486_v38  ;;  %v520_v34 = vmul.f32 %v513_v51, %v490_v37  ;;  %v521_v24 = vmul.f32 %v517_v52, %v490_v37 }
  0xb4   : > { %v526_v9 = vadd.f32 %v518_v59, %v476_v1  ;;  %v527_v10 = vadd.f32 %v519_v60, %v477_v2  ;;  %v528_v56 = vadd.f32 %v520_v34, %v478_v27  ;;  %v529_v59 = vadd.f32 %v521_v24, %v479_v23 }
  0xb5   : > { %v3389_v47 = vpop.permute.xlu1 %493  ;;  %v498_v48 = vpop.permute.xlu0 %497  ;;  %v480_v1 = vadd.f32 %v3365_v29, %v452_v54  ;;  %v481_v2 = vadd.f32 %v3365_v29, %v453_v55 }
  0xb6   : > { %v524_v11 = vmul.f32 %v513_v51, %v498_v48  ;;  %v525_v12 = vmul.f32 %v517_v52, %v498_v48 }
  0xb8   : > { %v532_v38 = vadd.f32 %v524_v11, %v482_v16  ;;  %v533_v39 = vadd.f32 %v525_v12, %v483_v17 }
  0xba   : > { %v536_v61 = vpop.permute.xlu1 %535  ;;  %v540_v62 = vpop.permute.xlu0 %539 }
  0xbb   : > { %v568_v3 = vmul.f32 %v563_v57, %v536_v61  ;;  %v569_v4 = vmul.f32 %v567_v58, %v536_v61  ;;  %v570_v42 = vmul.f32 %v563_v57, %v540_v62  ;;  %v571_v45 = vmul.f32 %v567_v58, %v540_v62 }
  0xbc   : > { %v522_v62 = vmul.f32 %v513_v51, %v3389_v47 }
  0xbd   : > { %v576_v19 = vadd.f32 %v568_v3, %v526_v9  ;;  %v577_v20 = vadd.f32 %v569_v4, %v527_v10  ;;  %v523_v3 = vmul.f32 %v517_v52, %v3389_v47  ;;  %v578_v4 = vadd.f32 %v570_v42, %v528_v56 }
  0xbe   : > { %v544_v13 = vpop.permute.xlu1 %543  ;;  %v579_v49 = vadd.f32 %v571_v45, %v529_v59  ;;  %v530_v10 = vadd.f32 %v522_v62, %v480_v1 }
  0xbf   : > { %v586_v18 = vpop.permute.xlu0 %585  ;;  %v572_v6 = vmul.f32 %v563_v57, %v544_v13  ;;  %v573_v7 = vmul.f32 %v567_v58, %v544_v13  ;;  %v531_v29 = vadd.f32 %v523_v3, %v481_v2 }
  0xc0   : > { %v618_v22 = vmul.f32 %v3400_v63, %v586_v18  ;;  %v619_v26 = vmul.f32 %v3403_v0, %v586_v18 }
  0xc1   : > { %v580_v52 = vadd.f32 %v572_v6, %v530_v10  ;;  %v581_v12 = vadd.f32 %v573_v7, %v531_v29 }
  0xc2   : > { %v3409_v40 = vadd.f32 %v618_v22, %v576_v19  ;;  %v3411_v41 = vadd.f32 %v619_v26, %v577_v20  ;;  %v548_v28 = vpop.permute.xlu1 %547 }
  0xc3   : > { %v574_v46 = vmul.f32 %v563_v57, %v548_v28  ;;  %v575_v48 = vmul.f32 %v567_v58, %v548_v28  ;;  %v598_v53 = vpop.permute.xlu0 %597 }
  0xc4   : > { %v624_v25 = vmul.f32 %v3400_v63, %v598_v53  ;;  %v625_v37 = vmul.f32 %v3403_v0, %v598_v53 }
  0xc5   : > { %v582_v60 = vadd.f32 %v574_v46, %v532_v38  ;;  %v583_v61 = vadd.f32 %v575_v48, %v533_v39 }
  0xc7   : > { %v3421_v5 = vadd.f32 %v624_v25, %v582_v60  ;;  %v3423_v21 = vadd.f32 %v625_v37, %v583_v61  ;;  %v590_v50 = vpop.permute.xlu1 %589 }
  0xc8   : > { %v620_v8 = vmul.f32 %v3400_v63, %v590_v50  ;;  %v621_v9 = vmul.f32 %v3403_v0, %v590_v50 }
  0xca   : > { %v3427_v11 = vadd.f32 %v620_v8, %v578_v4  ;;  %v3429_v51 = vadd.f32 %v621_v9, %v579_v49  ;;  %650 = sbr.rel (%p2749_p13) target bundleno = 405 (0x195), region = 68 }
  0xcb   : > { %v594_v47 = vpop.permute.xlu1 %593 }
  0xcc   : > { %v622_v16 = vmul.f32 %v3400_v63, %v594_v47  ;;  %v623_v17 = vmul.f32 %v3403_v0, %v594_v47 }
  0xce   : > { %v3433_v18 = vadd.f32 %v622_v16, %v580_v52  ;;  %v3435_v57 = vadd.f32 %v623_v17, %v581_v12 }
  0xcf   : > { %654 = sbr.rel (%p2750_p0) target bundleno = 219 (0xdb), region = 72 }
  0xd4   : > { %vm655_vm2 = vcmask 7168   ;;  %v3162_v58 = vmov 0.0  }
  0xd5   : > { %656 = vst.msk [vmem:[#allocation2] sm:$0xff] %vm655_vm2, %v3162_v58  ;;  %657 = vst.msk [vmem:[#allocation2 + $0x8] sm:$0xff] %vm655_vm2, %v3162_v58 }
  0xd6   : > { %658 = vst.msk [vmem:[#allocation2 + $0x10] sm:$0xff] %vm655_vm2, %v3162_v58  ;;  %659 = vst.msk [vmem:[#allocation2 + $0x18] sm:$0xff] %vm655_vm2, %v3162_v58 }
  0xd7   : > { %660 = vst.msk [vmem:[#allocation3] sm:$0xff] %vm655_vm2, %v3162_v58  ;;  %661 = vst.msk [vmem:[#allocation3 + $0x8] sm:$0xff] %vm655_vm2, %v3162_v58 }
  0xd8   : > { %662 = vst.msk [vmem:[#allocation3 + $0x10] sm:$0xff] %vm655_vm2, %v3162_v58  ;;  %663 = vst.msk [vmem:[#allocation3 + $0x18] sm:$0xff] %vm655_vm2, %v3162_v58 }
  0xd9   : > { %664 = vst.msk [vmem:[#allocation4] sm:$0xff] %vm655_vm2, %v3162_v58  ;;  %665 = vst.msk [vmem:[#allocation4 + $0x8] sm:$0xff] %vm655_vm2, %v3162_v58 }
  0xda   : > { %666 = vst.msk [vmem:[#allocation5] sm:$0xff] %vm655_vm2, %v3162_v58  ;;  %667 = vst.msk [vmem:[#allocation5 + $0x8] sm:$0xff] %vm655_vm2, %v3162_v58 }
  0xdb PF: > { %v672_v63 = vmul.f32 %v3342_v14, %v3433_v18  ;;  %v673_v0 = vmul.f32 %v3344_v15, %v3435_v57  ;;  %v668_v13 = vmul.f32 %v3342_v14, %v3409_v40  ;;  %v669_v19 = vmul.f32 %v3344_v15, %v3411_v41  ;;  %p2751_p1 = scmp.ne.s32.totalorder %s3139_s20, 3 }
  0xdc   : > { %v674_v20 = vmul.f32 %v3342_v14, %v3421_v5  ;;  %v675_v22 = vmul.f32 %v3344_v15, %v3423_v21  ;;  %v670_v26 = vmul.f32 %v3342_v14, %v3427_v11  ;;  %v671_v27 = vmul.f32 %v3344_v15, %v3429_v51  ;;  %v676_v60 = vld [vmem:[#allocation2] sm:$0xff]  ;;  %v677_v4 = vld [vmem:[#allocation2 + $0x8] sm:$0xff] }
  0xdd   : > { %v686_v23 = vadd.f32 %v673_v0, %v672_v63  ;;  %v680_v34 = vadd.f32 %v669_v19, %v668_v13  ;;  %v705_v38 = vmul.f32 %v668_v13, %v3409_v40  ;;  %v706_v39 = vmul.f32 %v669_v19, %v3411_v41  ;;  %v678_v59 = vld [vmem:[#allocation2 + $0x10] sm:$0xff]  ;;  %v679_v3 = vld [vmem:[#allocation2 + $0x18] sm:$0xff] }
  0xde   : > { %v689_v24 = vadd.f32 %v675_v22, %v674_v20  ;;  %v683_v28 = vadd.f32 %v671_v27, %v670_v26  ;;  %v707_v42 = vmul.f32 %v670_v26, %v3427_v11  ;;  %v708_v45 = vmul.f32 %v671_v27, %v3429_v51  ;;  %v702_v8 = vld [vmem:[#allocation3 + $0x8] sm:$0xff]  ;;  %v701_v9 = vld [vmem:[#allocation3] sm:$0xff] }
  0xdf   : > { %687 = vadd.xlane.f32.xlu1 %v686_v23  ;;  %681 = vadd.xlane.f32.xlu0 %v680_v34  ;;  %v713_v46 = vadd.f32 %v706_v39, %v705_v38  ;;  %v711_v48 = vmul.f32 %v674_v20, %v3421_v5  ;;  %v712_v53 = vmul.f32 %v675_v22, %v3423_v21  ;;  %vm696_vm3 = vcmask 7168   ;;  %v704_v12 = vld [vmem:[#allocation3 + $0x18] sm:$0xff]  ;;  %v703_v16 = vld [vmem:[#allocation3 + $0x10] sm:$0xff] }
  0xe0   : > { %v716_v54 = vadd.f32 %v708_v45, %v707_v42  ;;  %v709_v55 = vmul.f32 %v672_v63, %v3433_v18  ;;  %v710_v25 = vmul.f32 %v673_v0, %v3435_v57 }
  0xe1   : > { %v722_v37 = vadd.f32 %v712_v53, %v711_v48 }
  0xe2   : > { %v719_v56 = vadd.f32 %v710_v25, %v709_v55 }
  0xe3   : > { %690 = vadd.xlane.f32.xlu1 %v689_v24  ;;  %684 = vadd.xlane.f32.xlu0 %v683_v28 }
  0xe7   : > { %717 = vadd.xlane.f32.xlu1 %v716_v54  ;;  %714 = vadd.xlane.f32.xlu0 %v713_v46 }
  0xeb   : > { %723 = vadd.xlane.f32.xlu1 %v722_v37  ;;  %720 = vadd.xlane.f32.xlu0 %v719_v56 }
 0x168   : > { %v688_v61 = vpop.xlane.xlu1 %687  ;;  %v682_v1 = vpop.xlane.xlu0 %681 }
 0x169   : > { %v694_v2 = vadd.f32 %v688_v61, %v678_v59  ;;  %v692_v62 = vadd.f32 %v682_v1, %v676_v60 }
 0x16b   : > { %699 = vst.msk [vmem:[#allocation2 + $0x10] sm:$0xff] %vm696_vm3, %v694_v2  ;;  %697 = vst.msk [vmem:[#allocation2] sm:$0xff] %vm696_vm3, %v692_v62 }
 0x16c   : > { %v691_v49 = vpop.xlane.xlu1 %690  ;;  %v685_v50 = vpop.xlane.xlu0 %684 }
 0x16d   : > { %v695_v6 = vadd.f32 %v691_v49, %v679_v3  ;;  %v693_v7 = vadd.f32 %v685_v50, %v677_v4 }
 0x16f   : > { %700 = vst.msk [vmem:[#allocation2 + $0x18] sm:$0xff] %vm696_vm3, %v695_v6  ;;  %698 = vst.msk [vmem:[#allocation2 + $0x8] sm:$0xff] %vm696_vm3, %v693_v7 }
 0x170   : > { %v718_v10 = vpop.xlane.xlu1 %717  ;;  %v715_v29 = vpop.xlane.xlu0 %714 }
 0x171   : > { %v726_v47 = vadd.f32 %v718_v10, %v702_v8  ;;  %v725_v52 = vadd.f32 %v715_v29, %v701_v9 }
 0x173   : > { %730 = vst.msk [vmem:[#allocation3 + $0x8] sm:$0xff] %vm696_vm3, %v726_v47  ;;  %729 = vst.msk [vmem:[#allocation3] sm:$0xff] %vm696_vm3, %v725_v52  ;;  %736 = sbr.rel (%p2751_p1) target bundleno = 405 (0x195), region = 76 }
 0x174   : > { %v724_v17 = vpop.xlane.xlu1 %723  ;;  %v721_v58 = vpop.xlane.xlu0 %720 }
 0x175   : > { %v728_v63 = vadd.f32 %v724_v17, %v704_v12  ;;  %v727_v0 = vadd.f32 %v721_v58, %v703_v16 }
 0x177   : > { %732 = vst.msk [vmem:[#allocation3 + $0x18] sm:$0xff] %vm696_vm3, %v728_v63  ;;  %731 = vst.msk [vmem:[#allocation3 + $0x10] sm:$0xff] %vm696_vm3, %v727_v0 }
 0x178   : > { %v737_v13 = vld [vmem:[#allocation2] sm:$0xff]  ;;  %v738_v19 = vld [vmem:[#allocation2 + $0x8] sm:$0xff]  ;;  %v739_v20 = vld [vmem:[#allocation2 + $0x10] sm:$0xff] }
 0x179   : > { %v741_v22 = vmul.f32 0.001, %v737_v13  ;;  %v742_v26 = vmul.f32 0.001, %v738_v19  ;;  %v743_v27 = vmul.f32 0.001, %v739_v20 }
 0x17a   : > { %v740_v23 = vld [vmem:[#allocation2 + $0x18] sm:$0xff]  ;;  %v745_v34 = vld [vmem:[#allocation3] sm:$0xff]  ;;  %v746_v24 = vld [vmem:[#allocation3 + $0x8] sm:$0xff] }
 0x17b   : > { %v753_v38 = vmul.f32 %v741_v22, %v741_v22  ;;  %761 = vst.msk [vmem:[#allocation2] sm:$0xff] %vm696_vm3, %v741_v22  ;;  %v754_v39 = vmul.f32 %v742_v26, %v742_v26  ;;  %762 = vst.msk [vmem:[#allocation2 + $0x8] sm:$0xff] %vm696_vm3, %v742_v26  ;;  %v755_v28 = vmul.f32 %v743_v27, %v743_v27  ;;  %v744_v42 = vmul.f32 0.001, %v740_v23 }
 0x17c   : > { %763 = vst.msk [vmem:[#allocation2 + $0x10] sm:$0xff] %vm696_vm3, %v743_v27  ;;  %v749_v48 = vmul.f32 0.001, %v745_v34  ;;  %v750_v53 = vmul.f32 0.001, %v746_v24 }
 0x17d   : > { %v756_v55 = vmul.f32 %v744_v42, %v744_v42  ;;  %764 = vst.msk [vmem:[#allocation2 + $0x18] sm:$0xff] %vm696_vm3, %v744_v42 }
 0x17e   : > { %v747_v45 = vld [vmem:[#allocation3 + $0x10] sm:$0xff]  ;;  %v748_v46 = vld [vmem:[#allocation3 + $0x18] sm:$0xff]  ;;  %v757_v37 = vsub.f32 %v749_v48, %v753_v38  ;;  %v758_v56 = vsub.f32 %v750_v53, %v754_v39 }
 0x17f   : > { %v751_v54 = vmul.f32 0.001, %v747_v45  ;;  %v752_v25 = vmul.f32 0.001, %v748_v46 }
 0x180   : > { %v765_v61 = vadd.f32 1e-05, %v757_v37  ;;  %v766_v1 = vadd.f32 1e-05, %v758_v56 }
 0x181   : > { %v759_v59 = vsub.f32 %v751_v54, %v755_v28  ;;  %v760_v60 = vsub.f32 %v752_v25, %v756_v55 }
 0x182   : > { %2983 = vrsqrt.f32 %v765_v61 }
 0x183   : > { %v767_v2 = vadd.f32 1e-05, %v759_v59  ;;  %v768_v62 = vadd.f32 1e-05, %v760_v60  ;;  %2985 = vrsqrt.f32 %v766_v1 }
 0x185   : > { %2987 = vrsqrt.f32 %v767_v2 }
 0x186   : > { %2989 = vrsqrt.f32 %v768_v62 }
 0x18f   : > { %v2984_v3 = vpop.eup %2983 }
 0x190   : > { %v2986_v4 = vpop.eup %2985  ;;  %773 = vst.msk [vmem:[#allocation3] sm:$0xff] %vm696_vm3, %v2984_v3 }
 0x191   : > { %774 = vst.msk [vmem:[#allocation3 + $0x8] sm:$0xff] %vm696_vm3, %v2986_v4 }
 0x192   : > { %v2988_v49 = vpop.eup %2987 }
 0x193   : > { %v2990_v50 = vpop.eup %2989  ;;  %775 = vst.msk [vmem:[#allocation3 + $0x10] sm:$0xff] %vm696_vm3, %v2988_v49 }
 0x194   : > { %776 = vst.msk [vmem:[#allocation3 + $0x18] sm:$0xff] %vm696_vm3, %v2990_v50 }
 0x195 PF: > { %p2752_p2 = scmp.lt.s32.totalorder %s3143_s21, 1 }
 0x197   : > { %780 = sbr.rel (%p2752_p2) target bundleno = 1475 (0x5c3), region = 80 }
 0x19c   : > { %v816_v6 = vld [vmem:[#allocation3 + $0x18] sm:$0xff]  ;;  %v3163_v8 = vmov 0   ;;  %v783_v9 = vld [vmem:[#allocation2 + $0x10] sm:$0xff]  ;;  %v782_v10 = vld [vmem:[#allocation2 + $0x8] sm:$0xff]  ;;  %s4977_s3 = sld [smem:[#allocation37_spill]]  ;;  %p2787_p4 = scmp.ne.s32.totalorder %s3143_s21, 1 }
 0x19d   : > { %v784_v7 = vld [vmem:[#allocation2 + $0x18] sm:$0xff]  ;;  %2992 = vset.pattern.permute.xlu1 %v3163_v8  ;;  %2991 = vset.pattern.permute.xlu0 %v3163_v8  ;;  %v815_v29 = vld [vmem:[#allocation3 + $0x10] sm:$0xff]  ;;  %v814_v52 = vld [vmem:[#allocation3 + $0x8] sm:$0xff]  ;;  %v4989_v31 = vmov 2131351028   ;;  %p2788_p5 = scmp.ne.s32.totalorder (!%p2787_p4), %s3139_s20, 3 }
 0x19e   : > { %834 = vperm.xlu1 %2992, %v816_v6   ;;  %802 = vperm.xlu0 %2991, %v784_v7   ;;  %v781_v12 = vld [vmem:[#allocation2] sm:$0xff]  ;;  %v880_v16 = vld [vmem:[%s4893_s4 + $0x18] sm:$0xff]  ;;  %v879_v13 = vld [vmem:[%s4893_s4 + $0x10] sm:$0xff]  ;;  %v4990_v35 = vmov 2102212464  }
 0x19f   : > { %v813_v63 = vld [vmem:[#allocation3] sm:$0xff]  ;;  %v878_v20 = vld [vmem:[%s4893_s4 + $0x8] sm:$0xff] }
 0x1a0   : > { %v877_v19 = vld [vmem:[%s4893_s4] sm:$0xff]  ;;  %v1744_v22 = vld [vmem:[%s4895_s6 + $0x8] sm:$0xff] }
 0x1a1   : > { %v1743_v26 = vld [vmem:[%s4895_s6] sm:$0xff] }
 0x1a2   : > { %797 = vperm.xlu0 %2991, %v783_v9   ;;  %792 = vperm.xlu1 %2992, %v782_v10   ;;  %v848_v47 = vld [vmem:[%s4977_s3 + $0x18] sm:$0xff]  ;;  %v847_v17 = vld [vmem:[%s4977_s3 + $0x10] sm:$0xff]  ;;  %v846_v58 = vld [vmem:[%s4977_s3 + $0x8] sm:$0xff] }
 0x1a3   : > { %v845_v0 = vld [vmem:[%s4977_s3] sm:$0xff] }
 0x1a6   : > { %829 = vperm.xlu0 %2991, %v815_v29   ;;  %866 = vperm.xlu1 %2992, %v848_v47  }
 0x1aa   : > { %824 = vperm.xlu1 %2992, %v814_v52   ;;  %787 = vperm.xlu0 %2991, %v781_v12  }
 0x1ae   : > { %898 = vperm.xlu1 %2992, %v880_v16   ;;  %861 = vperm.xlu0 %2991, %v847_v17  }
 0x1b2   : > { %856 = vperm.xlu1 %2992, %v846_v58   ;;  %819 = vperm.xlu0 %2991, %v813_v63  }
 0x1b6   : > { %851 = vperm.xlu1 %2992, %v845_v0   ;;  %893 = vperm.xlu0 %2991, %v879_v13  }
 0x1ba   : > { %883 = vperm.xlu1 %2992, %v877_v19   ;;  %888 = vperm.xlu0 %2991, %v878_v20  }
 0x1be   : > { %1752 = vperm.xlu1 %2992, %v1744_v22   ;;  %1747 = vperm.xlu0 %2991, %v1743_v26  }
 0x219   : > { %v835_v27 = vpop.permute.xlu1 %834  ;;  %v803_v23 = vpop.permute.xlu0 %802 }
 0x21a   : > { %v811_v28 = vsub.f32 %v3421_v5, %v803_v23  ;;  %v812_v42 = vsub.f32 %v3423_v21, %v803_v23 }
 0x21c   : > { %v843_v54 = vmul.f32 %v835_v27, %v811_v28  ;;  %v844_v55 = vmul.f32 %v835_v27, %v812_v42 }
 0x21d   : > { %v798_v34 = vpop.permute.xlu0 %797  ;;  %v793_v24 = vpop.permute.xlu1 %792 }
 0x21e   : > { %v807_v45 = vsub.f32 %v3427_v11, %v793_v24  ;;  %v808_v46 = vsub.f32 %v3429_v51, %v793_v24  ;;  %v809_v11 = vsub.f32 %v3433_v18, %v798_v34  ;;  %v810_v51 = vsub.f32 %v3435_v57, %v798_v34 }
 0x221   : > { %v830_v38 = vpop.permute.xlu0 %829  ;;  %v867_v39 = vpop.permute.xlu1 %866 }
 0x222   : > { %v875_v56 = vmul.f32 %v867_v39, %v843_v54  ;;  %v876_v59 = vmul.f32 %v867_v39, %v844_v55  ;;  %v841_v6 = vmul.f32 %v830_v38, %v809_v11  ;;  %v842_v7 = vmul.f32 %v830_v38, %v810_v51 }
 0x225   : > { %v825_v48 = vpop.permute.xlu1 %824  ;;  %v788_v53 = vpop.permute.xlu0 %787 }
 0x226   : > { %v839_v25 = vmul.f32 %v825_v48, %v807_v45  ;;  %v840_v37 = vmul.f32 %v825_v48, %v808_v46  ;;  %v805_v62 = vsub.f32 %v3409_v40, %v788_v53  ;;  %v806_v3 = vsub.f32 %v3411_v41, %v788_v53 }
 0x229   : > { %v899_v60 = vpop.permute.xlu1 %898  ;;  %v862_v61 = vpop.permute.xlu0 %861 }
 0x22a   : > { %v3516_v1 = vadd.f32 %v899_v60, %v875_v56  ;;  %v3518_v2 = vadd.f32 %v899_v60, %v876_v59  ;;  %v873_v47 = vmul.f32 %v862_v61, %v841_v6  ;;  %v874_v52 = vmul.f32 %v862_v61, %v842_v7 }
 0x22c   : > { %v1536_v5 = vand.u32 2139095040, %v3516_v1  ;;  %v1640_v21 = vand.u32 2139095040, %v3518_v2 }
 0x22d   : > { %v857_v4 = vpop.permute.xlu1 %856  ;;  %v820_v49 = vpop.permute.xlu0 %819 }
 0x22e   : > { %v1641_v50 = vshrl.u32 %v1640_v21, 23  ;;  %v837_v8 = vmul.f32 %v820_v49, %v805_v62  ;;  %v838_v9 = vmul.f32 %v820_v49, %v806_v3  ;;  %v1537_v10 = vshrl.u32 %v1536_v5, 23 }
 0x22f   : > { %v871_v20 = vmul.f32 %v857_v4, %v839_v25  ;;  %v872_v22 = vmul.f32 %v857_v4, %v840_v37  ;;  %v4904_v25 = vand.u32 2147483647, %v3518_v2  ;;  %v4903_v3 = vand.u32 2147483647, %v3516_v1 }
 0x230   : > { %v2781_v29 = vadd.s32 4294967169, %v1641_v50  ;;  %v2777_v40 = vadd.s32 4294967169, %v1537_v10 }
 0x231   : > { %v852_v12 = vpop.permute.xlu1 %851  ;;  %v894_v16 = vpop.permute.xlu0 %893  ;;  %v1644_v11 = vand.u32 8388607, %v4904_v25  ;;  %v3556_v10 = vand.u32 8388607, %v4903_v3 }
 0x232   : > { %v3526_v18 = vadd.f32 %v894_v16, %v873_v47  ;;  %v3528_v57 = vadd.f32 %v894_v16, %v874_v52  ;;  %v1647_v17 = vadd.s32 1, %v2781_v29  ;;  %v869_v41 = vmul.f32 %v852_v12, %v837_v8 }
 0x233   : > { %v870_v58 = vmul.f32 %v852_v12, %v838_v9  ;;  %v1543_v39 = vadd.s32 1, %v2777_v40  ;;  %v1645_v7 = vor.u32 8388608, %v1644_v11  ;;  %v4905_v11 = vmov 2475754826  }
 0x234   : > { %v1328_v63 = vand.u32 2139095040, %v3526_v18  ;;  %v1432_v0 = vand.u32 2139095040, %v3528_v57  ;;  %vm1648_vm4 = vcmp.gt.s32.totalorder %v1647_v17, 0 }
 0x235   : > { %v884_v13 = vpop.permute.xlu1 %883  ;;  %v889_v19 = vpop.permute.xlu0 %888  ;;  %vm1544_vm5 = vcmp.gt.s32.totalorder %v1543_v39, 0  ;;  %v1649_v37 = vsel %vm1648_vm4, %v1647_v17, 0 }
 0x236   : > { %v1329_v26 = vshrl.u32 %v1328_v63, 23  ;;  %v1433_v27 = vshrl.u32 %v1432_v0, 23  ;;  %v3532_v23 = vadd.f32 %v884_v13, %v869_v41  ;;  %v3534_v34 = vadd.f32 %v884_v13, %v870_v58 }
 0x237   : > { %v3536_v24 = vadd.f32 %v889_v19, %v871_v20  ;;  %v3538_v38 = vadd.f32 %v889_v19, %v872_v22  ;;  %v1545_v4 = vsel %vm1544_vm5, %v1543_v39, 0  ;;  %v3548_v49 = vand.u32 31, %v1649_v37 }
 0x238   : > { %4978 = vst [vmem:[#allocation21_spill] sm:$0xff] %v3532_v23  ;;  %4979 = vst [vmem:[#allocation22_spill] sm:$0xff] %v3534_v34  ;;  %v912_v28 = vand.u32 2139095040, %v3532_v23  ;;  %v1016_v42 = vand.u32 2139095040, %v3534_v34  ;;  %v2769_v45 = vadd.s32 4294967169, %v1329_v26  ;;  %v2773_v46 = vadd.s32 4294967169, %v1433_v27 }
 0x239   : > { %4980 = vst [vmem:[#allocation23_spill] sm:$0xff] %v3536_v24  ;;  %4981 = vst [vmem:[#allocation24_spill] sm:$0xff] %v3538_v38  ;;  %v1120_v48 = vand.u32 2139095040, %v3536_v24  ;;  %v1224_v53 = vand.u32 2139095040, %v3538_v38  ;;  %v3558_v29 = vand.u32 31, %v1545_v4  ;;  %v3564_v16 = vsub.s32 32, %v3548_v49 }
 0x23a   : > { %v913_v54 = vshrl.u32 %v912_v28, 23  ;;  %v1017_v55 = vshrl.u32 %v1016_v42, 23  ;;  %v1335_v60 = vadd.s32 1, %v2769_v45  ;;  %v1439_v61 = vadd.s32 1, %v2773_v46 }
 0x23b   : > { %v1121_v5 = vshrl.u32 %v1120_v48, 23  ;;  %v1225_v21 = vshrl.u32 %v1224_v53, 23  ;;  %v3572_v63 = vshll.u32 %v1645_v7, 8  ;;  %v3574_v0 = vshrl.u32 %v1545_v4, 5 }
 0x23c   : > { %v2753_v56 = vadd.s32 4294967169, %v913_v54  ;;  %v2757_v59 = vadd.s32 4294967169, %v1017_v55  ;;  %vm1336_vm6 = vcmp.gt.s32.totalorder %v1335_v60, 0  ;;  %vm1440_vm7 = vcmp.gt.s32.totalorder %v1439_v61, 0 }
 0x23d   : > { %v2761_v50 = vadd.s32 4294967169, %v1121_v5  ;;  %v2765_v6 = vadd.s32 4294967169, %v1225_v21  ;;  %v1337_v47 = vsel %vm1336_vm6, %v1335_v60, 0  ;;  %v1441_v52 = vsel %vm1440_vm7, %v1439_v61, 0 }
 0x23e   : > { %v919_v51 = vadd.s32 1, %v2753_v56  ;;  %v1023_v62 = vadd.s32 1, %v2757_v59  ;;  %v3576_v13 = vand.u32 31, %v1337_v47  ;;  %v3578_v19 = vand.u32 31, %v1441_v52 }
 0x23f   : > { %v1127_v17 = vadd.s32 1, %v2761_v50  ;;  %v1231_v41 = vadd.s32 1, %v2765_v6  ;;  %v3581_v22 = vshrl.u32 %v1649_v37, 5  ;;  %v4945_v26 = vmov 920167782  }
 0x240   : > { %vm920_vm8 = vcmp.gt.s32.totalorder %v919_v51, 0  ;;  %vm1024_vm9 = vcmp.gt.s32.totalorder %v1023_v62, 0  ;;  %v3165_v39 = vmov 1326507024   ;;  %v3595_v45 = vsub.s32 32, %v3558_v29 }
 0x241   : > { %v3550_v8 = vsel %vm920_vm8, %v919_v51, 0  ;;  %v3552_v9 = vsel %vm1024_vm9, %v1023_v62, 0  ;;  %vm1128_vm10 = vcmp.gt.s32.totalorder %v1127_v17, 0  ;;  %vm1232_vm11 = vcmp.gt.s32.totalorder %v1231_v41, 0 }
 0x242   : > { %v3561_v12 = vand.u32 31, %v3550_v8  ;;  %v3567_v40 = vand.u32 31, %v3552_v9  ;;  %v4907_v46 = vmov 683565275   ;;  %v3612_v56 = vsub.s32 32, %v3576_v13 }
 0x243   : > { %v1653_v48 = vshrl.u32 %v4907_v46, %v3564_v16  ;;  %v1654_v37 = vshll.u32 %v4907_v46, %v3548_v49  ;;  %v3615_v59 = vsub.s32 32, %v3578_v19  ;;  %v3617_v60 = vsel %vm1128_vm10, %v1127_v17, 0 }
 0x244   : > { %4982 = vst [vmem:[#allocation25_spill] sm:$0xff] %v3561_v12  ;;  %4983 = vst [vmem:[#allocation26_spill] sm:$0xff] %v3567_v40  ;;  %v3570_v58 = vsub.s32 32, %v3561_v12  ;;  %v3585_v27 = vshll.u32 %v4945_v26, %v3561_v12  ;;  %v3592_v42 = vsub.s32 32, %v3567_v40  ;;  %v3603_v54 = vshll.u32 %v4945_v26, %v3567_v40 }
 0x245   : > { %v3619_v61 = vsel %vm1232_vm11, %v1231_v41, 0  ;;  %v3621_v5 = vshrl.u32 %v1337_v47, 5  ;;  %v1655_v51 = vshrl.u32 %v4905_v11, %v3564_v16  ;;  %v4911_v62 = vmov 2131351028  }
 0x246   : > { %4984 = vst [vmem:[#allocation27_spill] sm:$0xff] %v3570_v58  ;;  %4985 = vst [vmem:[#allocation28_spill] sm:$0xff] %v3585_v27  ;;  %v3589_v28 = vshrl.u32 %v3165_v39, %v3570_v58  ;;  %v3607_v55 = vshrl.u32 %v3165_v39, %v3592_v42  ;;  %v1658_v4 = vshrl.u32 %v4911_v62, %v3564_v16  ;;  %v3629_v50 = vshrl.u32 %v1441_v52, 5 }
 0x247   : > { %4987 = vst [vmem:[#allocation30_spill] sm:$0xff] %v3592_v42  ;;  %v3632_v6 = vand.u32 31, %v3617_v60  ;;  %v3635_v7 = vand.u32 31, %v3619_v61  ;;  %v1657_v47 = vshll.u32 %v4905_v11, %v3548_v49  ;;  %v4909_v17 = vmov 2102212464  }
 0x248   : > { %4986 = vst [vmem:[#allocation29_spill] sm:$0xff] %v3589_v28  ;;  %v1351_v41 = vshll.u32 %v4909_v17, %v3576_v13  ;;  %v1354_v53 = vshll.u32 %v4945_v26, %v3576_v13  ;;  %v1455_v52 = vshll.u32 %v4909_v17, %v3578_v19  ;;  %v3647_v21 = vshll.u32 %v4945_v26, %v3578_v19 }
 0x249   : > { %v1352_v3 = vshrl.u32 %v4945_v26, %v3612_v56  ;;  %v1355_v25 = vshrl.u32 %v3165_v39, %v3612_v56  ;;  %v1456_v20 = vshrl.u32 %v4945_v26, %v3615_v59  ;;  %v3656_v11 = vsub.s32 32, %v3632_v6 }
 0x24a   : > { %vm1360_vm12 = vcmp.lt.s32.totalorder %v3621_v5, 4  ;;  %v3661_v46 = vshrl.u32 %v3165_v39, %v3615_v59  ;;  %v3664_v17 = vsub.s32 32, %v3635_v7  ;;  %v1656_v62 = vor.u32 %v1655_v51, %v1654_v37 }
 0x24b   : > { %v1659_v44 = vor.u32 %v1658_v4, %v1657_v47  ;;  %v3668_v36 = vshll.u32 %v4945_v26, %v3632_v6  ;;  %v3672_v33 = vshrl.u32 %v3165_v39, %v3656_v11  ;;  %v1660_v43 = vshll.u32 %v4989_v31, %v3548_v49 }
 0x24c   : > { %v1661_v32 = vshrl.u32 %v4990_v35, %v3564_v16  ;;  %v3680_v30 = vshll.u32 %v4945_v26, %v3635_v7  ;;  %v3684_v37 = vshrl.u32 %v3165_v39, %v3664_v17  ;;  %v1663_v51 = vshll.u32 %v4990_v35, %v3548_v49 }
 0x24d   : > { %4988 = vst [vmem:[#allocation31_spill] sm:$0xff] %v3668_v36  ;;  %v1664_v4 = vshrl.u32 %v4945_v26, %v3564_v16  ;;  %v1666_v14 = vshll.u32 %v4945_v26, %v3548_v49  ;;  %v1667_v27 = vshrl.u32 %v3165_v39, %v3564_v16  ;;  %v3696_v28 = vor.u32 %v1352_v3, %v1351_v41 }
 0x24e   : > { %v1662_v15 = vor.u32 %v1661_v32, %v1660_v43  ;;  %v1356_v12 = vor.u32 %v1355_v25, %v1354_v53  ;;  %v3700_v24 = vor.u32 %v1456_v20, %v1455_v52  ;;  %v3705_v32 = vshrl.u32 %v3550_v8, 5 }
 0x24f   : > { %v1665_v34 = vor.u32 %v1664_v4, %v1663_v51  ;;  %v1668_v43 = vor.u32 %v1667_v27, %v1666_v14  ;;  %vm1464_vm13 = vcmp.lt.s32.totalorder %v3629_v50, 4  ;;  %vm1669_vm14 = vcmp.lt.s32.totalorder %v3581_v22, 1 }
 0x250   : > { %4991 = vst [vmem:[#allocation32_spill] sm:$0xff] %v3705_v32  ;;  %vm1670_vm15 = vcmp.lt.s32.totalorder %v3581_v22, 2  ;;  %vm1671_vm0 = vcmp.lt.s32.totalorder %v3581_v22, 3  ;;  %vm1672_vm1 = vcmp.lt.s32.totalorder %v3581_v22, 4  ;;  %v1673_v25 = vsel %vm1669_vm14, %v1653_v48, %v1656_v62 }
 0x251   : > { %v1674_v3 = vsel %vm1672_vm1, %v1662_v15, 2102212464  ;;  %v1677_v49 = vsel %vm1669_vm14, %v1656_v62, %v1659_v44  ;;  %v1678_v16 = vsel %vm1672_vm1, %v1665_v34, 920167782  ;;  %v1681_v41 = vsel %vm1669_vm14, %v1659_v44, %v1662_v15 }
 0x252   : > { %v1675_v20 = vsel %vm1671_vm0, %v1659_v44, %v1674_v3  ;;  %v1679_v53 = vsel %vm1671_vm0, %v1662_v15, %v1678_v16  ;;  %v1682_v8 = vsel %vm1672_vm1, %v1668_v43, 1326507024  ;;  %v3715_v14 = vsel %vm1360_vm12, %v3696_v28, 920167782 }
 0x253   : > { %v3719_v27 = vsel %vm1360_vm12, %v1356_v12, 1326507024  ;;  %v1680_v52 = vsel %vm1670_vm15, %v1677_v49, %v1679_v53  ;;  %v1683_v48 = vsel %vm1671_vm0, %v1665_v34, %v1682_v8  ;;  %v1676_v62 = vsel %vm1670_vm15, %v1673_v25, %v1675_v20 }
 0x254   : > { %v1684_v15 = vsel %vm1670_vm15, %v1681_v41, %v1683_v48  ;;  %v3728_v44 = vmul.u32.u64.low %v3572_v63, %v1680_v52  ;;  %v3729_v51 = vmul.u32.u64.high %v3572_v63, %v1680_v52, %v3728_v44  ;;  %v4992_v12 = vmov 683565275  }
 0x255   : > { %v3733_v4 = vmul.u32.u64.low %v3572_v63, %v1684_v15  ;;  %v3734_v43 = vmul.u32.u64.high %v3572_v63, %v1684_v15, %v3733_v4  ;;  %v1550_v3 = vshll.u32 %v4992_v12, %v3558_v29  ;;  %v4993_v34 = vmov 2475754826  }
 0x256   : > { %v1551_v49 = vshrl.u32 %v4993_v34, %v3595_v45  ;;  %v1553_v25 = vshll.u32 %v4993_v34, %v3558_v29  ;;  %v1554_v22 = vshrl.u32 %v4989_v31, %v3595_v45  ;;  %v1556_v16 = vshll.u32 %v4989_v31, %v3558_v29 }
 0x257   : > { %v1557_v20 = vshrl.u32 %v4990_v35, %v3595_v45  ;;  %v1559_v41 = vshll.u32 %v4990_v35, %v3558_v29  ;;  %v1560_v8 = vshrl.u32 %v4945_v26, %v3595_v45  ;;  %v1562_v52 = vshll.u32 %v4945_v26, %v3558_v29 }
 0x258   : > { %v1552_v53 = vor.u32 %v1551_v49, %v1550_v3  ;;  %v1695_v48 = vadd.s32 1, %v3729_v51  ;;  %v1555_v15 = vor.u32 %v1554_v22, %v1553_v25  ;;  %v1563_v47 = vshrl.u32 %v3165_v39, %v3595_v45 }
 0x259   : > { %v1558_v4 = vor.u32 %v1557_v20, %v1556_v16  ;;  %v3760_v3 = vsel %vm1464_vm13, %v3700_v24, 920167782  ;;  %v1692_v49 = vmul.u32 %v3572_v63, %v1676_v62  ;;  %vm1694_vm2 = vc.u32 %v3734_v43, %v3728_v44 }
 0x25a   : > { %v1561_v23 = vor.u32 %v1560_v8, %v1559_v41  ;;  %v1696_v29 = vsel %vm1694_vm2, %v1695_v48, %v3729_v51  ;;  %v1549_v25 = vshrl.u32 %v4992_v12, %v3595_v45  ;;  %v1564_v22 = vor.u32 %v1563_v47, %v1562_v52 }
 0x25b   : > { %vm1565_vm3 = vcmp.lt.s32.totalorder %v3574_v0, 1  ;;  %v1697_v39 = vadd.s32 %v1696_v29, %v1692_v49  ;;  %vm1567_vm4 = vcmp.lt.s32.totalorder %v3574_v0, 3  ;;  %vm1568_vm5 = vcmp.lt.s32.totalorder %v3574_v0, 4 }
 0x25c   : > { %v1573_v63 = vsel %vm1565_vm3, %v1552_v53, %v1555_v15  ;;  %v1570_v62 = vsel %vm1568_vm5, %v1558_v4, 2102212464  ;;  %v1574_v16 = vsel %vm1568_vm5, %v1561_v23, 920167782  ;;  %v1577_v20 = vsel %vm1565_vm3, %v1555_v15, %v1558_v4 }
 0x25d   : > { %v1578_v51 = vsel %vm1568_vm5, %v1564_v22, 1326507024  ;;  %v1698_v41 = vadd.s32 536870912, %v1697_v39  ;;  %vm1566_vm6 = vcmp.lt.s32.totalorder %v3574_v0, 2  ;;  %v1575_v45 = vsel %vm1567_vm4, %v1558_v4, %v1574_v16 }
 0x25e   : > { %v1579_v47 = vsel %vm1567_vm4, %v1561_v23, %v1578_v51  ;;  %v1040_v8 = vshrl.u32 %v4945_v26, %v3592_v42  ;;  %v1576_v52 = vsel %vm1566_vm6, %v1573_v63, %v1575_v45  ;;  %v4994_v49 = vor.u32 8388608, %v3556_v10 }
 0x25f   : > { %v1580_v48 = vsel %vm1566_vm6, %v1577_v20, %v1579_v47  ;;  %v1039_v22 = vshll.u32 %v4990_v35, %v3567_v40  ;;  %v1699_v38 = vshrl.u32 %v1698_v41, 30  ;;  %v1569_v4 = vsel %vm1565_vm3, %v1549_v25, %v1552_v53 }
 0x260   : > { %v1581_v29 = vshll.u32 %v4994_v49, 8  ;;  %v1571_v23 = vsel %vm1567_vm4, %v1555_v15, %v1570_v62  ;;  %vm1639_vm7 = vcmp.lt.s32.totalorder %v3518_v2, 0  ;;  %v4995_v10 = vor.u32 %v3661_v46, %v3647_v21 }
 0x261   : > { %v3808_v53 = vshrl.u32 %v3552_v9, 5  ;;  %v1700_v25 = vshll.u32 %v1699_v38, 30  ;;  %v4947_v15 = vand.u32 2147483647, %v3528_v57  ;;  %v3813_v62 = vshrl.u32 %v4945_v26, %v3570_v58 }
 0x262   : > { %v3795_v16 = vmul.u32.u64.low %v1581_v29, %v1580_v48  ;;  %v3796_v63 = vmul.u32.u64.high %v1581_v29, %v1580_v48, %v3795_v16  ;;  %v3798_v51 = vmul.u32.u64.low %v1581_v29, %v1576_v52  ;;  %v3799_v20 = vmul.u32.u64.high %v1581_v29, %v1576_v52, %v3798_v51 }
 0x263   : > { %v1474_v41 = vsel %vm1464_vm13, %v4995_v10, 1326507024  ;;  %4996 = vst [vmem:[#allocation33_spill] sm:$0xff] %v3813_v62  ;;  %v3815_v45 = vor.u32 %v1040_v8, %v1039_v22  ;;  %v3818_v47 = vshrl.u32 %v3617_v60, 5  ;;  %v1572_v46 = vsel %vm1566_vm6, %v1569_v4, %v1571_v23 }
 0x264   : > { %v3823_v21 = vshrl.u32 %v3619_v61, 5  ;;  %v3825_v9 = vsub.s32 %v1697_v39, %v1700_v25  ;;  %v1723_v52 = vsub.s32 4, %v1699_v38  ;;  %v1450_v48 = vshrl.u32 %v4989_v31, %v3615_v59 }
 0x265   : > { %v4997_v49 = vand.u32 2147483647, %v3518_v2  ;;  %vm1590_vm9 = vc.u32 %v3796_v63, %v3798_v51  ;;  %v1591_v0 = vadd.s32 1, %v3799_v20  ;;  %v1447_v60 = vshrl.u32 %v4993_v34, %v3615_v59 }
 0x266   : > { %v1449_v61 = vshll.u32 %v4993_v34, %v3578_v19  ;;  %v1703_v39 = vsub.s32 0, %v3825_v9  ;;  %v1588_v22 = vmul.u32 %v1581_v29, %v1572_v46  ;;  %v1436_v4 = vand.u32 8388607, %v4947_v15 }
 0x267   : > { %vm3831_vm8 = vcmp.le.f32.partialorder %v4997_v49, 0.7853982  ;;  %v1446_v23 = vshll.u32 %v4992_v12, %v3578_v19  ;;  %v1592_v16 = vsel %vm1590_vm9, %v1591_v0, %v3799_v20  ;;  %v1452_v25 = vshll.u32 %v4989_v31, %v3578_v19 }
 0x268   : > { %v1451_v10 = vor.u32 %v1450_v48, %v1449_v61  ;;  %v1453_v49 = vshrl.u32 %v4990_v35, %v3615_v59  ;;  %v1143_v26 = vshll.u32 %v4990_v35, %v3632_v6  ;;  %v1247_v29 = vshll.u32 %v4990_v35, %v3635_v7 }
 0x269   : > { %v2782_v46 = vmin.u32 %v1703_v39, %v3825_v9  ;;  %v1593_v15 = vadd.s32 %v1592_v16, %v1588_v22  ;;  %v5000_v58 = vmov 920167782   ;;  %v1448_v48 = vor.u32 %v1447_v60, %v1446_v23 }
 0x26a   : > { %v1144_v32 = vshrl.u32 %v5000_v58, %v3656_v11  ;;  %v1248_v20 = vshrl.u32 %v5000_v58, %v3664_v17  ;;  %v1454_v19 = vor.u32 %v1453_v49, %v1452_v25  ;;  %v1693_v0 = vadd.s32 %v3728_v44, %v3734_v43 }
 0x26b   : > { %v1705_v61 = vclz %v2782_v46  ;;  %v1724_v62 = vsel %vm1639_vm7, %v1723_v52, %v1699_v38  ;;  %vm1461_vm10 = vcmp.lt.s32.totalorder %v3629_v50, 1  ;;  %vm1048_vm11 = vcmp.lt.s32.totalorder %v3808_v53, 4 }
 0x26c   : > { %vm1535_vm14 = vcmp.lt.s32.totalorder %v3516_v1, 0  ;;  %v1594_v39 = vadd.s32 536870912, %v1593_v15  ;;  %v1437_v22 = vor.u32 8388608, %v1436_v4  ;;  %vm1463_vm15 = vcmp.lt.s32.totalorder %v3629_v50, 3 }
 0x26d   : > { %v1473_v58 = vsel %vm1461_vm10, %v1451_v10, %v1454_v19  ;;  %v2783_v60 = vadd.s32 4294967294, %v1705_v61  ;;  %v1445_v44 = vshrl.u32 %v4992_v12, %v3615_v59  ;;  %v1466_v38 = vsel %vm1464_vm13, %v1454_v19, 2102212464 }
 0x26e   : > { %v1475_v43 = vsel %vm1463_vm15, %v3700_v24, %v1474_v41  ;;  %v1595_v52 = vshrl.u32 %v1594_v39, 30  ;;  %vm1462_vm0 = vcmp.lt.s32.totalorder %v3629_v50, 2  ;;  %v1469_v4 = vsel %vm1461_vm10, %v1448_v48, %v1451_v10 }
 0x26f   : > { %v1471_v23 = vsel %vm1463_vm15, %v1454_v19, %v3760_v3  ;;  %vm2784_vm1 = vcmp.lt.s32.totalorder %v2783_v60, 0  ;;  %v1726_v59 = vsel %vm3831_vm8, 0, %v1724_v62  ;;  %v5001_v16 = vand.u32 2147483647, %v3516_v1 }
 0x270   : > { %v1465_v24 = vsel %vm1461_vm10, %v1445_v44, %v1448_v48  ;;  %v1476_v41 = vsel %vm1462_vm0, %v1473_v58, %v1475_v43  ;;  %v1708_v49 = vsel %vm2784_vm1, 0, %v2783_v60  ;;  %v1596_v46 = vshll.u32 %v1595_v52, 30 }
 0x271   : > { %vm3888_vm13 = vcmp.le.f32.partialorder %v5001_v16, 0.7853982  ;;  %v1467_v3 = vsel %vm1463_vm15, %v1451_v10, %v1466_v38  ;;  %v1477_v19 = vshll.u32 %v1437_v22, 8  ;;  %v1709_v61 = vsub.s32 32, %v1708_v49 }
 0x272   : > { %v1713_v62 = vsub.s32 4294967266, %v1708_v49  ;;  %v1619_v39 = vsub.s32 4, %v1595_v52  ;;  %v1472_v16 = vsel %vm1462_vm0, %v1469_v4, %v1471_v23  ;;  %v1730_v42 = vadd.s32 3, %v1726_v59 }
 0x273   : > { %v3900_v40 = vsub.s32 %v1593_v15, %v1596_v46  ;;  %v3902_v36 = vmul.u32.u64.low %v1477_v19, %v1476_v41  ;;  %v3903_v48 = vmul.u32.u64.high %v1477_v19, %v1476_v41, %v3902_v36  ;;  %v1710_v58 = vshll.u32 %v3825_v9, %v1708_v49 }
 0x274   : > { %v1711_v60 = vshrl.u32 %v1693_v0, %v1709_v61  ;;  %v1714_v44 = vadd.s32 127, %v1713_v62  ;;  %v1468_v10 = vsel %vm1462_vm0, %v1465_v24, %v1467_v3  ;;  %v1325_v4 = vand.u32 2147483647, %v3526_v18 }
 0x275   : > { %v1599_v22 = vsub.s32 0, %v3900_v40  ;;  %v3909_v38 = vmul.u32.u64.low %v1477_v19, %v1472_v16  ;;  %v3910_v43 = vmul.u32.u64.high %v1477_v19, %v1472_v16, %v3909_v38  ;;  %v3917_v15 = vsel %vm1048_vm11, %v3815_v45, 920167782 }
 0x276   : > { %v1712_v36 = vor.u32 %v1711_v60, %v1710_v58  ;;  %v1715_v9 = vshll.u32 %v1714_v44, 23  ;;  %v3921_v0 = vsel %vm1535_vm14, %v1619_v39, %v1595_v52  ;;  %v5004_v50 = vor.u32 %v3607_v55, %v3603_v54 }
 0x277   : > { %v3930_v59 = vor.u32 %v1144_v32, %v1143_v26  ;;  %v3932_v24 = vor.u32 %v1248_v20, %v1247_v29  ;;  %v2778_v41 = vmin.u32 %v1599_v22, %v3900_v40  ;;  %v3935_v46 = vand.u32 3, %v1730_v42 }
 0x278   : > { %v3928_v23 = vsel %vm1048_vm11, %v5004_v50, 1326507024  ;;  %v1716_v49 = vor.u32 4788187, %v1715_v9  ;;  %v1589_v52 = vadd.s32 %v3798_v51, %v3796_v63  ;;  %v1484_v3 = vmul.u32 %v1477_v19, %v1468_v10 }
 0x279   : > { %v1601_v61 = vclz %v2778_v41  ;;  %v1622_v54 = vsel %vm3888_vm13, 0, %v3921_v0  ;;  %vm1486_vm2 = vc.u32 %v3903_v48, %v3909_v38  ;;  %v1332_v26 = vand.u32 8388607, %v1325_v4 }
 0x27a   : > { %v1717_v55 = vand.u32 2147483647, %v1716_v49  ;;  %v1719_v32 = vcvt.s32.f32 %v1712_v36  ;;  %v1487_v42 = vadd.s32 1, %v3910_v43  ;;  %v1343_v29 = vshrl.u32 %v4993_v34, %v3612_v56 }
 0x27b   : > { %v2779_v63 = vadd.s32 4294967294, %v1601_v61  ;;  %v1346_v51 = vshrl.u32 %v4989_v31, %v3612_v56  ;;  %v1348_v20 = vshll.u32 %v4989_v31, %v3576_v13  ;;  %v1349_v19 = vshrl.u32 %v4990_v35, %v3612_v56 }
 0x27c   : > { %v1720_v62 = vmul.f32 %v1719_v32, %v1717_v55  ;;  %v1488_v39 = vsel %vm1486_vm2, %v1487_v42, %v3910_v43  ;;  %v1342_v16 = vshll.u32 %v4992_v12, %v3576_v13  ;;  %v1345_v58 = vshll.u32 %v4993_v34, %v3576_v13 }
 0x27d   : > { %vm2780_vm3 = vcmp.lt.s32.totalorder %v2779_v63, 0  ;;  %v1489_v60 = vadd.s32 %v1488_v39, %v1484_v3  ;;  %v1333_v44 = vor.u32 8388608, %v1332_v26  ;;  %v1350_v10 = vor.u32 %v1349_v19, %v1348_v20 }
 0x27e   : > { %v1721_v22 = vxor.u32 2147483648, %v1720_v62  ;;  %v1604_v36 = vsel %vm2780_vm3, 0, %v2779_v63  ;;  %v1344_v9 = vor.u32 %v1343_v29, %v1342_v16  ;;  %v1347_v0 = vor.u32 %v1346_v51, %v1345_v58 }
 0x27f   : > { %vm1152_vm4 = vcmp.lt.s32.totalorder %v3818_v47, 4  ;;  %v1605_v50 = vsub.s32 32, %v1604_v36  ;;  %v1609_v41 = vsub.s32 4294967266, %v1604_v36  ;;  %v1490_v49 = vadd.s32 536870912, %v1489_v60 }
 0x280   : > { %vm1357_vm5 = vcmp.lt.s32.totalorder %v3621_v5, 1  ;;  %v1722_v43 = vsel %vm1639_vm7, %v1721_v22, %v1720_v62  ;;  %v1606_v13 = vshll.u32 %v3900_v40, %v1604_v36  ;;  %vm1359_vm6 = vcmp.lt.s32.totalorder %v3621_v5, 3 }
 0x281   : > { %v1362_v3 = vsel %vm1360_vm12, %v1350_v10, 2102212464  ;;  %v1725_v61 = vsel %vm3831_vm8, %v3518_v2, %v1722_v43  ;;  %v1607_v26 = vshrl.u32 %v1589_v52, %v1605_v50  ;;  %v1610_v55 = vadd.s32 127, %v1609_v41 }
 0x282   : > { %v3971_v32 = vshrl.u32 %v1490_v49, 30  ;;  %2993 = vcosq.f32 %v1725_v61  ;;  %v1365_v42 = vsel %vm1357_vm5, %v1344_v9, %v1347_v0  ;;  %v1367_v40 = vsel %vm1359_vm6, %v1350_v10, %v3715_v14 }
 0x283   : > { %v1369_v29 = vsel %vm1357_vm5, %v1347_v0, %v1350_v10  ;;  %2995 = vsinq.f32 %v1725_v61  ;;  %v1608_v63 = vor.u32 %v1607_v26, %v1606_v13  ;;  %v1611_v51 = vshll.u32 %v1610_v55, 23 }
 0x284   : > { %v1492_v8 = vshll.u32 %v3971_v32, 30  ;;  %v1341_v52 = vshrl.u32 %v4992_v12, %v3612_v56  ;;  %vm1358_vm12 = vcmp.lt.s32.totalorder %v3621_v5, 2  ;;  %v1371_v20 = vsel %vm1359_vm6, %v3696_v28, %v3719_v27 }
 0x285   : > { %v1373_v19 = vshll.u32 %v1333_v44, 8  ;;  %v1612_v14 = vor.u32 4788187, %v1611_v51  ;;  %v1368_v39 = vsel %vm1358_vm12, %v1365_v42, %v1367_v40  ;;  %v1372_v16 = vsel %vm1358_vm12, %v1369_v29, %v1371_v20 }
 0x286   : > { %v3988_v62 = vsub.s32 %v1489_v60, %v1492_v8  ;;  %v1361_v56 = vsel %vm1357_vm5, %v1341_v52, %v1344_v9  ;;  %v1363_v58 = vsel %vm1359_vm6, %v1347_v0, %v1362_v3  ;;  %v1615_v27 = vcvt.s32.f32 %v1608_v63 }
 0x287   : > { %v3998_v10 = vmul.u32.u64.low %v1373_v19, %v1372_v16  ;;  %v3999_v22 = vmul.u32.u64.high %v1373_v19, %v1372_v16, %v3998_v10  ;;  %v1613_v28 = vand.u32 2147483647, %v1612_v14  ;;  %v1626_v44 = vadd.s32 3, %v1622_v54  ;;  %v5005_v54 = vld [vmem:[#allocation24_spill] sm:$0xff] }
 0x288   : > { %v1495_v60 = vsub.s32 0, %v3988_v62  ;;  %v4005_v36 = vsel %vm1152_vm4, %v3930_v59, 920167782  ;;  %vm1256_vm7 = vcmp.lt.s32.totalorder %v3823_v21, 4  ;;  %v1364_v49 = vsel %vm1358_vm12, %v1361_v56, %v1363_v58 }
 0x289   : > { %v4008_v50 = vmul.u32.u64.low %v1373_v19, %v1368_v39  ;;  %v4009_v9 = vmul.u32.u64.high %v1373_v19, %v1368_v39, %v4008_v50  ;;  %v1616_v0 = vmul.f32 %v1615_v27, %v1613_v28  ;;  %v1221_v43 = vand.u32 2147483647, %v5005_v54 }
 0x28a   : > { %v2774_v41 = vmin.u32 %v1495_v60, %v3988_v62  ;;  %v4019_v13 = vsel %vm1256_vm7, %v3932_v24, 920167782  ;;  %v5006_v3 = vor.u32 %v3684_v37, %v3680_v30  ;;  %vm1733_vm8 = vcmp.eq.s32.totalorder %v3935_v46, 0 }
 0x28b   : > { %vm1736_vm9 = vcmp.eq.s32.totalorder %v3935_v46, 2  ;;  %vm1732_vm10 = vcmp.lt.s32.totalorder %v3935_v46, 2  ;;  %v1617_v5 = vxor.u32 2147483648, %v1616_v0  ;;  %v4031_v26 = vand.u32 3, %v1626_v44 }
 0x28c   : > { %v4026_v61 = vsel %vm1256_vm7, %v5006_v3, 1326507024  ;;  %v1497_v55 = vclz %v2774_v41  ;;  %vm1382_vm15 = vc.u32 %v3999_v22, %v4008_v50  ;;  %vm1729_vm0 = vweird.f32 %v3518_v2 }
 0x28d   : > { %v1485_v30 = vadd.s32 %v3909_v38, %v3903_v48  ;;  %v1515_v37 = vsub.s32 4, %v3971_v32  ;;  %v1380_v42 = vmul.u32 %v1373_v19, %v1364_v49  ;;  %v1383_v40 = vadd.s32 1, %v4009_v9 }
 0x28e   : > { %v1618_v29 = vsel %vm1535_vm14, %v1617_v5, %v1616_v0  ;;  %v2775_v63 = vadd.s32 4294967294, %v1497_v55  ;;  %v1228_v51 = vand.u32 8388607, %v1221_v43  ;;  %v1239_v8 = vshrl.u32 %v4993_v34, %v3664_v17 }
 0x28f   : > { %v1621_v52 = vsel %vm3888_vm13, %v3516_v1, %v1618_v29  ;;  %v1384_v48 = vsel %vm1382_vm15, %v1383_v40, %v4009_v9  ;;  %v1238_v38 = vshll.u32 %v4992_v12, %v3635_v7  ;;  %v1242_v20 = vshrl.u32 %v4989_v31, %v3664_v17  ;;  %v2994_v19 = vpop.eup %2993 }
 0x290   : > { %2997 = vcosq.f32 %v1621_v52  ;;  %vm2776_vm14 = vcmp.lt.s32.totalorder %v2775_v63, 0  ;;  %v1385_v14 = vadd.s32 %v1384_v48, %v1380_v42  ;;  %v1241_v39 = vshll.u32 %v4993_v34, %v3635_v7  ;;  %v2996_v16 = vpop.eup %2995 }
 0x291   : > { %v1737_v56 = vxor.u32 2147483648, %v2994_v19  ;;  %2999 = vsinq.f32 %v1621_v52  ;;  %v1500_v25 = vsel %vm2776_vm14, 0, %v2775_v63  ;;  %v1240_v58 = vor.u32 %v1239_v8, %v1238_v38 }
 0x292   : > { %v1734_v10 = vxor.u32 2147483648, %v2996_v16  ;;  %v1501_v28 = vsub.s32 32, %v1500_v25  ;;  %v1505_v27 = vsub.s32 4294967266, %v1500_v25  ;;  %v1243_v44 = vor.u32 %v1242_v20, %v1241_v39 }
 0x293   : > { %v1738_v60 = vsel %vm1736_vm9, %v1737_v56, %v2996_v16  ;;  %v1386_v9 = vadd.s32 536870912, %v1385_v14  ;;  %v1244_v0 = vshll.u32 %v4989_v31, %v3635_v7  ;;  %v1245_v41 = vshrl.u32 %v4990_v35, %v3664_v17 }
 0x294   : > { %v1735_v49 = vsel %vm1733_vm8, %v2994_v19, %v1734_v10  ;;  %v1502_v3 = vshll.u32 %v3988_v62, %v1500_v25  ;;  %v1503_v5 = vshrl.u32 %v1485_v30, %v1501_v28  ;;  %v1506_v55 = vadd.s32 127, %v1505_v27 }
 0x295   : > { %v1739_v42 = vsel %vm1732_vm10, %v1735_v49, %v1738_v60  ;;  %vm1431_vm1 = vcmp.lt.s32.totalorder %v3528_v57, 0  ;;  %v4068_v40 = vshrl.u32 %v1386_v9, 30  ;;  %v1246_v29 = vor.u32 %v1245_v41, %v1244_v0 }
 0x296   : > { %v1740_v7 = vsel %vm1729_vm0, nan, %v1739_v42  ;;  %v5007_v63 = vand.u32 2147483647, %v3528_v57  ;;  %v1504_v62 = vor.u32 %v1503_v5, %v1502_v3  ;;  %v1507_v30 = vshll.u32 %v1506_v55, 23 }
 0x297   : > { %1786 = vmatprep.subr.mxu0 %v1740_v7  ;;  %2812 = vmatprep.subr.mxu1 %v1740_v7  ;;  %vm1632_vm2 = vcmp.eq.s32.totalorder %v4031_v26, 2  ;;  %v1388_v46 = vshll.u32 %v4068_v40, 30  ;;  %v1229_v52 = vor.u32 8388608, %v1228_v51  ;;  %vm1253_vm3 = vcmp.lt.s32.totalorder %v3823_v21, 1 }
 0x298   : > { %vm4074_vm13 = vcmp.le.f32.partialorder %v5007_v63, 0.7853982  ;;  %vm1629_vm5 = vcmp.eq.s32.totalorder %v4031_v26, 0  ;;  %v1508_v2 = vor.u32 4788187, %v1507_v30  ;;  %v1516_v48 = vsel %vm1431_vm1, %v1515_v37, %v3971_v32  ;;  %v5010_v30 = vld [vmem:[#allocation23_spill] sm:$0xff] }
 0x299   : > { %vm1255_vm6 = vcmp.lt.s32.totalorder %v3823_v21, 3  ;;  %v1261_v38 = vsel %vm1253_vm3, %v1240_v58, %v1243_v44  ;;  %vm1628_vm12 = vcmp.lt.s32.totalorder %v4031_v26, 2  ;;  %v4089_v20 = vsub.s32 %v1385_v14, %v1388_v46 }
 0x29a   : > { %v1237_v51 = vshrl.u32 %v4992_v12, %v3664_v17  ;;  %vm1254_vm8 = vcmp.lt.s32.totalorder %v3823_v21, 2  ;;  %v1263_v19 = vsel %vm1255_vm6, %v1246_v29, %v4019_v13  ;;  %vm1625_vm9 = vweird.f32 %v3516_v1 }
 0x29b   : > { %v1509_v32 = vand.u32 2147483647, %v1508_v2  ;;  %v1511_v37 = vcvt.s32.f32 %v1504_v62  ;;  %v1258_v39 = vsel %vm1256_vm7, %v1246_v29, 2102212464  ;;  %v1265_v14 = vsel %vm1253_vm3, %v1243_v44, %v1246_v29 }
 0x29c   : > { %v1391_v16 = vsub.s32 0, %v4089_v20  ;;  %v1264_v17 = vsel %vm1254_vm8, %v1261_v38, %v1263_v19  ;;  %v1267_v13 = vsel %vm1255_vm6, %v3932_v24, %v4026_v61  ;;  %v1269_v56 = vshll.u32 %v1229_v52, 8 }
 0x29d   : > { %v1512_v25 = vmul.f32 %v1511_v37, %v1509_v32  ;;  %v1518_v10 = vsel %vm4074_vm13, 0, %v1516_v48  ;;  %v1257_v28 = vsel %vm1253_vm3, %v1237_v51, %v1240_v58  ;;  %v1268_v27 = vsel %vm1254_vm8, %v1265_v14, %v1267_v13  ;;  %v2998_v60 = vpop.eup %2997 }
 0x29e   : > { %vm1327_vm7 = vcmp.lt.s32.totalorder %v3526_v18, 0  ;;  %v2770_v9 = vmin.u32 %v1391_v16, %v4089_v20  ;;  %v1259_v0 = vsel %vm1255_vm6, %v1243_v44, %v1258_v39  ;;  %v3000_v41 = vpop.eup %2999  ;;  %v1633_v49 = vxor.u32 2147483648, %v2998_v60 }
 0x29f   : > { %v4119_v24 = vmul.u32.u64.low %v1269_v56, %v1268_v27  ;;  %v4120_v61 = vmul.u32.u64.high %v1269_v56, %v1268_v27, %v4119_v24  ;;  %v1513_v3 = vxor.u32 2147483648, %v1512_v25  ;;  %v1630_v58 = vxor.u32 2147483648, %v3000_v41 }
 0x2a0   : > { %v4122_v5 = vmul.u32.u64.low %v1269_v56, %v1264_v17  ;;  %v4123_v55 = vmul.u32.u64.high %v1269_v56, %v1264_v17, %v4122_v5  ;;  %v1522_v42 = vadd.s32 3, %v1518_v10  ;;  %v1393_v29 = vclz %v2770_v9 }
 0x2a1   : > { %v1411_v7 = vsub.s32 4, %v4068_v40  ;;  %v1634_v63 = vsel %vm1632_vm2, %v1633_v49, %v3000_v41  ;;  %v1514_v44 = vsel %vm1431_vm1, %v1513_v3, %v1512_v25  ;;  %v1260_v62 = vsel %vm1254_vm8, %v1257_v28, %v1259_v0  ;;  %v5013_v41 = vld [vmem:[#allocation31_spill] sm:$0xff] }
 0x2a2   : > { %v1117_v46 = vand.u32 2147483647, %v5010_v30  ;;  %v1631_v52 = vsel %vm1629_vm5, %v2998_v60, %v1630_v58  ;;  %v1517_v2 = vsel %vm4074_vm13, %v3528_v57, %v1514_v44  ;;  %v2771_v48 = vadd.s32 4294967294, %v1393_v29 }
 0x2a3   : > { %v4139_v38 = vadd.s32 %v4122_v5, %v4120_v61  ;;  %v1635_v51 = vsel %vm1628_vm12, %v1631_v52, %v1634_v63  ;;  %3001 = vcosq.f32 %v1517_v2  ;;  %vm1278_vm10 = vc.u32 %v4120_v61, %v4122_v5 }
 0x2a4   : > { %v1279_v21 = vadd.s32 1, %v4123_v55  ;;  %v1636_v19 = vsel %vm1625_vm9, nan, %v1635_v51  ;;  %3003 = vsinq.f32 %v1517_v2  ;;  %vm2772_vm15 = vcmp.lt.s32.totalorder %v2771_v48, 0 }
 0x2a5   : > { %v1276_v32 = vmul.u32 %v1269_v56, %v1260_v62  ;;  %1787 = vmatpush1.msra.mxu0 %v1636_v19  ;;  %2816 = vmatpush1.msra.mxu1 %v1636_v19  ;;  %v4147_v8 = vand.u32 3, %v1522_v42  ;;  %vm4151_vm0 = vcmp.le.f32.partialorder %v1325_v4, 0.7853982  ;;  %v1396_v37 = vsel %vm2772_vm15, 0, %v2771_v48 }
 0x2a6   : > { %v1280_v39 = vsel %vm1278_vm10, %v1279_v21, %v4123_v55  ;;  %v1381_v1 = vadd.s32 %v4008_v50, %v3999_v22  ;;  %v1397_v14 = vsub.s32 32, %v1396_v37  ;;  %v1401_v16 = vsub.s32 4294967266, %v1396_v37 }
 0x2a7   : > { %v1281_v17 = vadd.s32 %v1280_v39, %v1276_v32  ;;  %v1398_v13 = vshll.u32 %v4089_v20, %v1396_v37  ;;  %v1412_v56 = vsel %vm1327_vm7, %v1411_v7, %v4068_v40  ;;  %v1124_v4 = vand.u32 8388607, %v1117_v46 }
 0x2a8   : > { %v1135_v25 = vshrl.u32 %v4993_v34, %v3656_v11  ;;  %v1399_v10 = vshrl.u32 %v1381_v1, %v1397_v14  ;;  %v1402_v28 = vadd.s32 127, %v1401_v16  ;;  %v1134_v22 = vshll.u32 %v4992_v12, %v3632_v6 }
 0x2a9   : > { %v1282_v27 = vadd.s32 536870912, %v1281_v17  ;;  %v1137_v50 = vshll.u32 %v4993_v34, %v3632_v6  ;;  %v1138_v20 = vshrl.u32 %v4989_v31, %v3656_v11  ;;  %v1140_v40 = vshll.u32 %v4989_v31, %v3632_v6 }
 0x2aa   : > { %v1141_v60 = vshrl.u32 %v4990_v35, %v3656_v11  ;;  %v1400_v9 = vor.u32 %v1399_v10, %v1398_v13  ;;  %v1403_v0 = vshll.u32 %v1402_v28, 23  ;;  %v1414_v24 = vsel %vm4151_vm0, 0, %v1412_v56 }
 0x2ab   : > { %v1283_v61 = vshrl.u32 %v1282_v27, 30  ;;  %v5014_v49 = vor.u32 %v3672_v33, %v5013_v41  ;;  %v1136_v5 = vor.u32 %v1135_v25, %v1134_v22  ;;  %v1139_v55 = vor.u32 %v1138_v20, %v1137_v50 }
 0x2ac   : > { %v1142_v58 = vor.u32 %v1141_v60, %v1140_v40  ;;  %vm1524_vm14 = vcmp.lt.s32.totalorder %v4147_v8, 2  ;;  %vm1525_vm1 = vcmp.eq.s32.totalorder %v4147_v8, 0  ;;  %vm1528_vm13 = vcmp.eq.s32.totalorder %v4147_v8, 2 }
 0x2ad   : > { %v1162_v3 = vsel %vm1152_vm4, %v5014_v49, 1326507024  ;;  %v1404_v6 = vor.u32 4788187, %v1403_v0  ;;  %v1284_v42 = vshll.u32 %v1283_v61, 30  ;;  %v1418_v29 = vadd.s32 3, %v1414_v24 }
 0x2ae   : > { %v1125_v7 = vor.u32 8388608, %v1124_v4  ;;  %v1133_v63 = vshrl.u32 %v4992_v12, %v3656_v11  ;;  %vm1149_vm2 = vcmp.lt.s32.totalorder %v3818_v47, 1  ;;  %v1407_v44 = vcvt.s32.f32 %v1400_v9  ;;  %v5015_v24 = vld [vmem:[#allocation22_spill] sm:$0xff] }
 0x2af   : > { %v1405_v33 = vand.u32 2147483647, %v1404_v6  ;;  %v4189_v62 = vsub.s32 %v1281_v17, %v1284_v42  ;;  %vm1150_vm3 = vcmp.lt.s32.totalorder %v3818_v47, 2  ;;  %vm1151_vm5 = vcmp.lt.s32.totalorder %v3818_v47, 3 }
 0x2b0   : > { %v1153_v52 = vsel %vm1149_vm2, %v1133_v63, %v1136_v5  ;;  %v1154_v2 = vsel %vm1152_vm4, %v1142_v58, 2102212464  ;;  %v1161_v48 = vsel %vm1149_vm2, %v1139_v55, %v1142_v58  ;;  %v3002_v51 = vpop.eup %3001  ;;  %v1157_v11 = vsel %vm1149_vm2, %v1136_v5, %v1139_v55 }
 0x2b1   : > { %v1408_v21 = vmul.f32 %v1407_v44, %v1405_v33  ;;  %v1287_v19 = vsub.s32 0, %v4189_v62  ;;  %v1163_v32 = vsel %vm1151_vm5, %v3930_v59, %v1162_v3  ;;  %v3004_v37 = vpop.eup %3003  ;;  %v1529_v39 = vxor.u32 2147483648, %v3002_v51 }
 0x2b2   : > { %v1159_v1 = vsel %vm1151_vm5, %v1142_v58, %v4005_v36  ;;  %v1164_v14 = vsel %vm1150_vm3, %v1161_v48, %v1163_v32  ;;  %v1165_v16 = vshll.u32 %v1125_v7, 8  ;;  %v1526_v17 = vxor.u32 2147483648, %v3004_v37 }
 0x2b3   : > { %v1409_v13 = vxor.u32 2147483648, %v1408_v21  ;;  %v2766_v56 = vmin.u32 %v1287_v19, %v4189_v62  ;;  %v1155_v4 = vsel %vm1151_vm5, %v1139_v55, %v1154_v2  ;;  %v1530_v59 = vsel %vm1528_vm13, %v1529_v39, %v3004_v37 }
 0x2b4   : > { %v1307_v25 = vsub.s32 4, %v1283_v61  ;;  %v4209_v10 = vmul.u32.u64.low %v1165_v16, %v1164_v14  ;;  %v4210_v28 = vmul.u32.u64.high %v1165_v16, %v1164_v14, %v4209_v10  ;;  %v1527_v36 = vsel %vm1525_vm1, %v3002_v51, %v1526_v17 }
 0x2b5   : > { %v1410_v27 = vsel %vm1327_vm7, %v1409_v13, %v1408_v21  ;;  %v1289_v22 = vclz %v2766_v56  ;;  %v1160_v50 = vsel %vm1150_vm3, %v1157_v11, %v1159_v1  ;;  %vm1521_vm4 = vweird.f32 %v3528_v57 }
 0x2b6   : > { %v1531_v20 = vsel %vm1524_vm14, %v1527_v36, %v1530_v59  ;;  %v1413_v40 = vsel %vm4151_vm0, %v3526_v18, %v1410_v27  ;;  %v1156_v60 = vsel %vm1150_vm3, %v1153_v52, %v1155_v4  ;;  %v1013_v41 = vand.u32 2147483647, %v5015_v24 }
 0x2b7   : > { %v1532_v9 = vsel %vm1521_vm4, nan, %v1531_v20  ;;  %3005 = vcosq.f32 %v1413_v40  ;;  %v2767_v0 = vadd.s32 4294967294, %v1289_v22  ;;  %vm1223_vm6 = vcmp.lt.s32.totalorder %v5005_v54, 0 }
 0x2b8   : > { %1788 = vmatprep.subr.mxu0 %v1532_v9  ;;  %2813 = vmatprep.subr.mxu1 %v1532_v9  ;;  %3007 = vsinq.f32 %v1413_v40  ;;  %v4228_v57 = vmul.u32.u64.low %v1165_v16, %v1160_v50  ;;  %v4229_v8 = vmul.u32.u64.high %v1165_v16, %v1160_v50, %v4228_v57  ;;  %v4231_v49 = vand.u32 3, %v1418_v29  ;;  %v5016_v29 = vld [vmem:[#allocation26_spill] sm:$0xff] }
 0x2b9   : > { %vm2768_vm12 = vcmp.lt.s32.totalorder %v2767_v0, 0  ;;  %v1308_v47 = vsel %vm1223_vm6, %v1307_v25, %v1283_v61  ;;  %v1172_v26 = vmul.u32 %v1165_v16, %v1156_v60  ;;  %v1020_v55 = vand.u32 8388607, %v1013_v41  ;;  %v5017_v61 = vld [vmem:[#allocation30_spill] sm:$0xff] }
 0x2ba   : > { %v1292_v3 = vsel %vm2768_vm12, 0, %v2767_v0  ;;  %v4236_v5 = vadd.s32 %v4228_v57, %v4210_v28  ;;  %vm1174_vm8 = vc.u32 %v4210_v28, %v4228_v57  ;;  %v1030_v7 = vshll.u32 %v4992_v12, %v5016_v29 }
 0x2bb   : > { %v1293_v58 = vsub.s32 32, %v1292_v3  ;;  %v1294_v6 = vshll.u32 %v4189_v62, %v1292_v3  ;;  %v1297_v42 = vsub.s32 4294967266, %v1292_v3  ;;  %v1175_v63 = vadd.s32 1, %v4229_v8 }
 0x2bc   : > { %v1031_v33 = vshrl.u32 %v4993_v34, %v5017_v61  ;;  %v1033_v44 = vshll.u32 %v4993_v34, %v5016_v29  ;;  %v1034_v52 = vshrl.u32 %v4989_v31, %v5017_v61  ;;  %v1036_v62 = vshll.u32 %v4989_v31, %v5016_v29 }
 0x2bd   : > { %v1295_v2 = vshrl.u32 %v4139_v38, %v1293_v58  ;;  %v1298_v48 = vadd.s32 127, %v1297_v42  ;;  %v1037_v51 = vshrl.u32 %v4990_v35, %v5017_v61  ;;  %vm4258_vm9 = vcmp.le.f32.partialorder %v1221_v43, 0.7853982 }
 0x2be   : > { %v1176_v19 = vsel %vm1174_vm8, %v1175_v63, %v4229_v8  ;;  %v1032_v11 = vor.u32 %v1031_v33, %v1030_v7  ;;  %v1035_v32 = vor.u32 %v1034_v52, %v1033_v44  ;;  %vm1421_vm7 = vcmp.eq.s32.totalorder %v4231_v49, 0  ;;  %v5020_v44 = vld [vmem:[#allocation21_spill] sm:$0xff] }
 0x2bf   : > { %v1296_v38 = vor.u32 %v1295_v2, %v1294_v6  ;;  %v1299_v37 = vshll.u32 %v1298_v48, 23  ;;  %v1177_v39 = vadd.s32 %v1176_v19, %v1172_v26  ;;  %v1038_v1 = vor.u32 %v1037_v51, %v1036_v62  ;;  %v5022_v19 = vld [vmem:[#allocation33_spill] sm:$0xff] }
 0x2c0   : > { %vm1420_vm10 = vcmp.lt.s32.totalorder %v4231_v49, 2  ;;  %v1310_v14 = vsel %vm4258_vm9, 0, %v1308_v47  ;;  %v1021_v16 = vor.u32 8388608, %v1020_v55  ;;  %v1029_v43 = vshrl.u32 %v4992_v12, %v5017_v61 }
 0x2c1   : > { %vm1045_vm15 = vcmp.lt.s32.totalorder %v3808_v53, 1  ;;  %vm1417_vm0 = vweird.f32 %v3526_v18  ;;  %v1300_v17 = vor.u32 4788187, %v1299_v37  ;;  %v1178_v13 = vadd.s32 536870912, %v1177_v39 }
 0x2c2   : > { %vm1047_vm14 = vcmp.lt.s32.totalorder %v3808_v53, 3  ;;  %v1050_v56 = vsel %vm1048_vm11, %v1038_v1, 2102212464  ;;  %v1053_v4 = vsel %vm1045_vm15, %v1032_v11, %v1035_v32  ;;  %v1057_v25 = vsel %vm1045_vm15, %v1035_v32, %v1038_v1 }
 0x2c3   : > { %v1055_v59 = vsel %vm1047_vm14, %v1038_v1, %v3917_v15  ;;  %v1059_v10 = vsel %vm1047_vm14, %v3815_v45, %v3928_v23  ;;  %v1301_v28 = vand.u32 2147483647, %v1300_v17  ;;  %v1303_v36 = vcvt.s32.f32 %v1296_v38  ;;  %v5023_v38 = vld [vmem:[#allocation32_spill] sm:$0xff]  ;;  %v5024_v17 = vld [vmem:[#allocation27_spill] sm:$0xff] }
 0x2c4   : > { %v4277_v27 = vshrl.u32 %v1178_v13, 30  ;;  %vm1046_vm1 = vcmp.lt.s32.totalorder %v3808_v53, 2  ;;  %v3006_v22 = vpop.eup %3005  ;;  %v1049_v50 = vsel %vm1045_vm15, %v1029_v43, %v1032_v11  ;;  %v1051_v20 = vsel %vm1047_vm14, %v1035_v32, %v1050_v56 }
 0x2c5   : > { %v1060_v40 = vsel %vm1046_vm1, %v1057_v25, %v1059_v10  ;;  %v1061_v60 = vshll.u32 %v1021_v16, 8  ;;  %v3008_v9 = vpop.eup %3007  ;;  %v1425_v0 = vxor.u32 2147483648, %v3006_v22  ;;  %v1304_v15 = vmul.f32 %v1303_v36, %v1301_v28  ;;  %v5025_v28 = vld [vmem:[#allocation29_spill] sm:$0xff]  ;;  %v5026_v36 = vld [vmem:[#allocation28_spill] sm:$0xff] }
 0x2c6   : > { %v1180_v57 = vshll.u32 %v4277_v27, 30  ;;  %v1056_v45 = vsel %vm1046_vm1, %v1053_v4, %v1055_v59  ;;  %v1422_v23 = vxor.u32 2147483648, %v3008_v9  ;;  %vm1424_vm11 = vcmp.eq.s32.totalorder %v4231_v49, 2  ;;  %v5021_v49 = vld [vmem:[#allocation25_spill] sm:$0xff] }
 0x2c7   : > { %v4286_v8 = vmul.u32.u64.low %v1061_v60, %v1060_v40  ;;  %v4287_v47 = vmul.u32.u64.high %v1061_v60, %v1060_v40, %v4286_v8  ;;  %v1426_v26 = vsel %vm1424_vm11, %v1425_v0, %v3008_v9  ;;  %v1305_v3 = vxor.u32 2147483648, %v1304_v15 }
 0x2c8   : > { %v1314_v55 = vadd.s32 3, %v1310_v14  ;;  %v1181_v58 = vsub.s32 %v1177_v39, %v1180_v57  ;;  %v1423_v6 = vsel %vm1421_vm7, %v3006_v22, %v1422_v23  ;;  %v1052_v42 = vsel %vm1046_vm1, %v1049_v50, %v1051_v20 }
 0x2c9   : > { %v4293_v29 = vmul.u32.u64.low %v1061_v60, %v1056_v45  ;;  %v4294_v7 = vmul.u32.u64.high %v1061_v60, %v1056_v45, %v4293_v29  ;;  %v1427_v63 = vsel %vm1420_vm10, %v1423_v6, %v1426_v26  ;;  %v1306_v61 = vsel %vm1223_vm6, %v1305_v3, %v1304_v15 }
 0x2ca   : > { %v1183_v33 = vsub.s32 0, %v1181_v58  ;;  %v909_v52 = vand.u32 2147483647, %v5020_v44  ;;  %v1428_v2 = vsel %vm1417_vm0, nan, %v1427_v63  ;;  %v1309_v53 = vsel %vm4258_vm9, %v5005_v54, %v1306_v61 }
 0x2cb   : > { %v4307_v48 = vadd.s32 %v4293_v29, %v4287_v47  ;;  %vm1070_vm13 = vc.u32 %v4287_v47, %v4293_v29  ;;  %v935_v62 = vshll.u32 %v4990_v35, %v5021_v49  ;;  %1789 = vmatpush1.msra.mxu0 %v1428_v2  ;;  %2817 = vmatpush1.msra.mxu1 %v1428_v2  ;;  %3009 = vcosq.f32 %v1309_v53 }
 0x2cc   : > { %v2762_v51 = vmin.u32 %v1183_v33, %v1181_v58  ;;  %3011 = vsinq.f32 %v1309_v53  ;;  %v1071_v18 = vadd.s32 1, %v4294_v7  ;;  %v1068_v21 = vmul.u32 %v1061_v60, %v1052_v42 }
 0x2cd   : > { %v937_v11 = vor.u32 %v5022_v19, %v935_v62  ;;  %vm944_vm2 = vcmp.lt.s32.totalorder %v5023_v38, 4  ;;  %v4315_v37 = vand.u32 3, %v1314_v55  ;;  %v916_v1 = vand.u32 8388607, %v909_v52 }
 0x2ce   : > { %v1185_v32 = vclz %v2762_v51  ;;  %v1072_v39 = vsel %vm1070_vm13, %v1071_v18, %v4294_v7  ;;  %v926_v43 = vshll.u32 %v4992_v12, %v5021_v49  ;;  %v927_v13 = vshrl.u32 %v4993_v34, %v5024_v17 }
 0x2cf   : > { %v1073_v16 = vadd.s32 %v1072_v39, %v1068_v21  ;;  %v929_v56 = vshll.u32 %v4993_v34, %v5021_v49  ;;  %v930_v4 = vshrl.u32 %v4989_v31, %v5024_v17  ;;  %v932_v59 = vshll.u32 %v4989_v31, %v5021_v49 }
 0x2d0   : > { %v2763_v14 = vadd.s32 4294967294, %v1185_v32  ;;  %v933_v25 = vshrl.u32 %v4990_v35, %v5024_v17  ;;  %v950_v10 = vsel %vm944_vm2, %v937_v11, 920167782  ;;  %v5027_v22 = vor.u32 %v5025_v28, %v5026_v36 }
 0x2d1   : > { %v1074_v34 = vadd.s32 536870912, %v1073_v16  ;;  %v928_v40 = vor.u32 %v927_v13, %v926_v43  ;;  %v931_v60 = vor.u32 %v930_v4, %v929_v56  ;;  %vm1317_vm5 = vcmp.eq.s32.totalorder %v4315_v37, 0 }
 0x2d2   : > { %v954_v50 = vsel %vm944_vm2, %v5027_v22, 1326507024  ;;  %vm2764_vm3 = vcmp.lt.s32.totalorder %v2763_v14, 0  ;;  %v934_v9 = vor.u32 %v933_v25, %v932_v59  ;;  %v917_v15 = vor.u32 8388608, %v916_v1 }
 0x2d3   : > { %v1188_v20 = vsel %vm2764_vm3, 0, %v2763_v14  ;;  %v4340_v35 = vshrl.u32 %v1074_v34, 30  ;;  %v925_v57 = vshrl.u32 %v4992_v12, %v5024_v17  ;;  %vm941_vm4 = vcmp.lt.s32.totalorder %v5023_v38, 1 }
 0x2d4   : > { %v1189_v31 = vsub.s32 32, %v1188_v20  ;;  %v1193_v0 = vsub.s32 4294967266, %v1188_v20  ;;  %vm942_vm6 = vcmp.lt.s32.totalorder %v5023_v38, 2  ;;  %vm943_vm12 = vcmp.lt.s32.totalorder %v5023_v38, 3 }
 0x2d5   : > { %v1190_v45 = vshll.u32 %v1181_v58, %v1188_v20  ;;  %v1076_v47 = vshll.u32 %v4340_v35, 30  ;;  %v949_v26 = vsel %vm941_vm4, %v928_v40, %v931_v60  ;;  %v951_v3 = vsel %vm943_vm12, %v934_v9, %v950_v10 }
 0x2d6   : > { %v1191_v23 = vshrl.u32 %v4236_v5, %v1189_v31  ;;  %v1194_v8 = vadd.s32 127, %v1193_v0  ;;  %v953_v12 = vsel %vm941_vm4, %v931_v60, %v934_v9  ;;  %v955_v55 = vsel %vm943_vm12, %v937_v11, %v954_v50 }
 0x2d7   : > { %v1077_v58 = vsub.s32 %v1073_v16, %v1076_v47  ;;  %v946_v5 = vsel %vm944_vm2, %v934_v9, 2102212464  ;;  %vm1320_vm8 = vcmp.eq.s32.totalorder %v4315_v37, 2  ;;  %v945_v7 = vsel %vm941_vm4, %v925_v57, %v928_v40 }
 0x2d8   : > { %v1192_v6 = vor.u32 %v1191_v23, %v1190_v45  ;;  %v1195_v42 = vshll.u32 %v1194_v8, 23  ;;  %v3010_v29 = vpop.eup %3009  ;;  %v956_v63 = vsel %vm942_vm6, %v953_v12, %v955_v55  ;;  %v957_v61 = vshll.u32 %v917_v15, 8 }
 0x2d9   : > { %v3012_v33 = vpop.eup %3011  ;;  %v1321_v2 = vxor.u32 2147483648, %v3010_v29  ;;  %v1079_v49 = vsub.s32 0, %v1077_v58  ;;  %v952_v62 = vsel %vm942_vm6, %v949_v26, %v951_v3  ;;  %v947_v18 = vsel %vm943_vm12, %v931_v60, %v946_v5 }
 0x2da   : > { %v1196_v53 = vor.u32 4788187, %v1195_v42  ;;  %v1318_v51 = vxor.u32 2147483648, %v3012_v33  ;;  %v4368_v19 = vmul.u32.u64.low %v957_v61, %v956_v63  ;;  %v4369_v11 = vmul.u32.u64.high %v957_v61, %v956_v63, %v4368_v19 }
 0x2db   : > { %v1322_v32 = vsel %vm1320_vm8, %v1321_v2, %v3012_v33  ;;  %v1199_v39 = vcvt.s32.f32 %v1192_v6  ;;  %v2758_v1 = vmin.u32 %v1079_v49, %v1077_v58  ;;  %vm1316_vm9 = vcmp.lt.s32.totalorder %v4315_v37, 2 }
 0x2dc   : > { %v1197_v21 = vand.u32 2147483647, %v1196_v53  ;;  %v1319_v14 = vsel %vm1317_vm5, %v3010_v29, %v1318_v51  ;;  %v4374_v16 = vmul.u32.u64.low %v957_v61, %v952_v62  ;;  %v4375_v43 = vmul.u32.u64.high %v957_v61, %v952_v62, %v4374_v16 }
 0x2dd   : > { %vm1313_vm7 = vweird.f32 %v5005_v54  ;;  %v1323_v17 = vsel %vm1316_vm9, %v1319_v14, %v1322_v32  ;;  %v1081_v56 = vclz %v2758_v1  ;;  %v948_v59 = vsel %vm942_vm6, %v945_v7, %v947_v18 }
 0x2de   : > { %v1200_v13 = vmul.f32 %v1199_v39, %v1197_v21  ;;  %v1324_v4 = vsel %vm1313_vm7, nan, %v1323_v17  ;;  %v4381_v28 = vadd.s32 %v4374_v16, %v4369_v11  ;;  %vm966_vm10 = vc.u32 %v4369_v11, %v4374_v16 }
 0x2df   : > { %1790 = vmatprep.subr.mxu0 %v1324_v4  ;;  %2814 = vmatprep.subr.mxu1 %v1324_v4  ;;  %v2759_v10 = vadd.s32 4294967294, %v1081_v56  ;;  %vm1119_vm15 = vcmp.lt.s32.totalorder %v5010_v30, 0  ;;  %v1203_v54 = vsub.s32 4, %v4277_v27  ;;  %v967_v37 = vadd.s32 1, %v4375_v43 }
 0x2e0   : > { %v1201_v25 = vxor.u32 2147483648, %v1200_v13  ;;  %vm4389_vm0 = vcmp.le.f32.partialorder %v1117_v46, 0.7853982  ;;  %v3170_v22 = vmov 0.0   ;;  %v964_v20 = vmul.u32 %v957_v61, %v948_v59 }
 0x2e1   : > { %vm2760_vm14 = vcmp.lt.s32.totalorder %v2759_v10, 0  ;;  %1826 = vmatprep.mubr.f32.mxu0 %v3170_v22  ;;  %1832 = vmatprep.mubr.f32.mxu1 %v3170_v22  ;;  %v968_v40 = vsel %vm966_vm10, %v967_v37, %v4375_v43  ;;  %v1204_v9 = vsel %vm1119_vm15, %v1203_v54, %v4277_v27  ;;  %vm1015_vm1 = vcmp.lt.s32.totalorder %v5015_v24, 0 }
 0x2e2   : > { %v1202_v36 = vsel %vm1119_vm15, %v1201_v25, %v1200_v13  ;;  %v1084_v34 = vsel %vm2760_vm14, 0, %v2759_v10  ;;  %v969_v31 = vadd.s32 %v968_v40, %v964_v20  ;;  %v1206_v23 = vsel %vm4389_vm0, 0, %v1204_v9 }
 0x2e3   : > { %v1205_v50 = vsel %vm4389_vm0, %v5010_v30, %v1202_v36  ;;  %v1085_v46 = vsub.s32 32, %v1084_v34  ;;  %v1089_v60 = vsub.s32 4294967266, %v1084_v34  ;;  %v1086_v0 = vshll.u32 %v1077_v58, %v1084_v34 }
 0x2e4   : > { %3013 = vcosq.f32 %v1205_v50  ;;  %v970_v45 = vadd.s32 536870912, %v969_v31  ;;  %v1210_v12 = vadd.s32 3, %v1206_v23  ;;  %v1099_v63 = vsub.s32 4, %v4340_v35 }
 0x2e5   : > { %3015 = vsinq.f32 %v1205_v50  ;;  %v1087_v15 = vshrl.u32 %v4307_v48, %v1085_v46  ;;  %v1090_v57 = vadd.s32 127, %v1089_v60  ;;  %vm4412_vm11 = vcmp.le.f32.partialorder %v1013_v41, 0.7853982 }
 0x2e6   : > { %v4405_v26 = vshrl.u32 %v970_v45, 30  ;;  %v1211_v58 = vand.u32 3, %v1210_v12  ;;  %v1100_v41 = vsel %vm1015_vm1, %v1099_v63, %v4340_v35  ;;  %vm1209_vm5 = vweird.f32 %v5010_v30 }
 0x2e7   : > { %v1088_v8 = vor.u32 %v1087_v15, %v1086_v0  ;;  %v1091_v47 = vshll.u32 %v1090_v57, 23  ;;  %v1102_v1 = vsel %vm4412_vm11, 0, %v1100_v41  ;;  %vm1105_vm9 = vweird.f32 %v5015_v24 }
 0x2e8   : > { %v972_v55 = vshll.u32 %v4405_v26, 30  ;;  %vm1216_vm13 = vcmp.eq.s32.totalorder %v1211_v58, 2  ;;  %vm1212_vm2 = vcmp.lt.s32.totalorder %v1211_v58, 2  ;;  %vm1213_vm3 = vcmp.eq.s32.totalorder %v1211_v58, 0 }
 0x2e9   : > { %v1092_v3 = vor.u32 4788187, %v1091_v47  ;;  %v1095_v27 = vcvt.s32.f32 %v1088_v8  ;;  %v1106_v17 = vadd.s32 3, %v1102_v1  ;;  %vm911_vm7 = vcmp.lt.s32.totalorder %v5020_v44, 0 }
 0x2ea   : > { %v973_v42 = vsub.s32 %v969_v31, %v972_v55  ;;  %v995_v46 = vsub.s32 4, %v4405_v26  ;;  %vm910_vm10 = vcmp.le.f32.partialorder %v909_v52, 0.7853982  ;;  %v1742_v55 = vld [vmem:[%s4894_s5 + $0x8] sm:$0xff] }
 0x2eb   : > { %v1093_v6 = vand.u32 2147483647, %v1092_v3  ;;  %v1107_v25 = vand.u32 3, %v1106_v17 }
 0x2ec   : > { %v975_v29 = vsub.s32 0, %v973_v42  ;;  %v996_v0 = vsel %vm911_vm7, %v995_v46, %v4405_v26  ;;  %v1741_v26 = vld [vmem:[%s4894_s5] sm:$0xff] }
 0x2ed   : > { %v1096_v5 = vmul.f32 %v1095_v27, %v1093_v6  ;;  %vm1112_vm6 = vcmp.eq.s32.totalorder %v1107_v25, 2  ;;  %vm1109_vm12 = vcmp.eq.s32.totalorder %v1107_v25, 0  ;;  %vm1108_vm8 = vcmp.lt.s32.totalorder %v1107_v25, 2  ;;  %v1753_v27 = vpop.permute.xlu1 %1752 }
 0x2ee   : > { %v2754_v61 = vmin.u32 %v975_v29, %v973_v42  ;;  %v998_v15 = vsel %vm910_vm10, 0, %v996_v0 }
 0x2ef   : > { %v1097_v48 = vxor.u32 2147483648, %v1096_v5 }
 0x2f0   : > { %v977_v18 = vclz %v2754_v61 }
 0x2f1   : > { %v3014_v7 = vpop.eup %3013  ;;  %v1098_v49 = vsel %vm1015_vm1, %v1097_v48, %v1096_v5  ;;  %vm1001_vm1 = vweird.f32 %v5020_v44 }
 0x2f2   : > { %v3016_v33 = vpop.eup %3015  ;;  %v1217_v2 = vxor.u32 2147483648, %v3014_v7  ;;  %v1101_v51 = vsel %vm4412_vm11, %v5015_v24, %v1098_v49  ;;  %v2755_v32 = vadd.s32 4294967294, %v977_v18  ;;  %v1002_v24 = vadd.s32 3, %v998_v15 }
 0x2f3   : > { %v1214_v62 = vxor.u32 2147483648, %v3016_v33  ;;  %3017 = vcosq.f32 %v1101_v51  ;;  %vm1755_vm11 = vcmask 261120  }
 0x2f4   : > { %v1218_v19 = vsel %vm1216_vm13, %v1217_v2, %v3016_v33  ;;  %3019 = vsinq.f32 %v1101_v51  ;;  %vm2756_vm4 = vcmp.lt.s32.totalorder %v2755_v32, 0  ;;  %v1003_v57 = vand.u32 3, %v1002_v24 }
 0x2f5   : > { %v1215_v11 = vsel %vm1213_vm3, %v3014_v7, %v1214_v62  ;;  %v980_v14 = vsel %vm2756_vm4, 0, %v2755_v32 }
 0x2f6   : > { %v1219_v21 = vsel %vm1212_vm2, %v1215_v11, %v1218_v19  ;;  %v981_v16 = vsub.s32 32, %v980_v14  ;;  %v985_v43 = vsub.s32 4294967266, %v980_v14  ;;  %v982_v13 = vshll.u32 %v973_v42, %v980_v14  ;;  %v1748_v42 = vpop.permute.xlu0 %1747 }
 0x2f7   : > { %v1220_v39 = vsel %vm1209_vm5, nan, %v1219_v21  ;;  %vm1008_vm15 = vcmp.eq.s32.totalorder %v1003_v57, 2  ;;  %vm1005_vm0 = vcmp.eq.s32.totalorder %v1003_v57, 0  ;;  %vm1004_vm14 = vcmp.lt.s32.totalorder %v1003_v57, 2 }
 0x2f8   : > { %1791 = vmatpush1.msra.mxu0 %v1220_v39  ;;  %2818 = vmatpush1.msra.mxu1 %v1220_v39  ;;  %v983_v56 = vshrl.u32 %v4381_v28, %v981_v16  ;;  %v986_v35 = vadd.s32 127, %v985_v43 }
 0x2fa   : > { %v984_v4 = vor.u32 %v983_v56, %v982_v13  ;;  %v987_v59 = vshll.u32 %v986_v35, 23 }
 0x2fc   : > { %v988_v30 = vor.u32 4788187, %v987_v59  ;;  %v991_v37 = vcvt.s32.f32 %v984_v4 }
 0x2fe   : > { %v989_v54 = vand.u32 2147483647, %v988_v30 }
 0x300   : > { %v3018_v10 = vpop.eup %3017  ;;  %v992_v50 = vmul.f32 %v991_v37, %v989_v54 }
 0x301   : > { %v3020_v38 = vpop.eup %3019  ;;  %v1113_v36 = vxor.u32 2147483648, %v3018_v10 }
 0x302   : > { %v1110_v22 = vxor.u32 2147483648, %v3020_v38  ;;  %v993_v40 = vxor.u32 2147483648, %v992_v50 }
 0x303   : > { %v1114_v34 = vsel %vm1112_vm6, %v1113_v36, %v3020_v38 }
 0x304   : > { %v1111_v20 = vsel %vm1109_vm12, %v3018_v10, %v1110_v22  ;;  %v994_v9 = vsel %vm911_vm7, %v993_v40, %v992_v50 }
 0x305   : > { %v1115_v28 = vsel %vm1108_vm8, %v1111_v20, %v1114_v34  ;;  %v997_v31 = vsel %vm910_vm10, %v5020_v44, %v994_v9 }
 0x306   : > { %v1116_v60 = vsel %vm1105_vm9, nan, %v1115_v28  ;;  %3021 = vcosq.f32 %v997_v31 }
 0x307   : > { %1792 = vmatprep.subr.mxu0 %v1116_v60  ;;  %2815 = vmatprep.subr.mxu1 %v1116_v60  ;;  %3023 = vsinq.f32 %v997_v31 }
 0x313   : > { %v3022_v45 = vpop.eup %3021 }
 0x314   : > { %v3024_v23 = vpop.eup %3023  ;;  %v1009_v8 = vxor.u32 2147483648, %v3022_v45 }
 0x315   : > { %v1006_v47 = vxor.u32 2147483648, %v3024_v23 }
 0x316   : > { %v1010_v3 = vsel %vm1008_vm15, %v1009_v8, %v3024_v23 }
 0x317   : > { %v1007_v52 = vsel %vm1005_vm0, %v3022_v45, %v1006_v47 }
 0x318   : > { %v1011_v12 = vsel %vm1004_vm14, %v1007_v52, %v1010_v3 }
 0x319   : > { %v1012_v6 = vsel %vm1001_vm1, nan, %v1011_v12 }
 0x31a   : > { %1793 = vmatpush1.msra.mxu0 %v1012_v6  ;;  %2819 = vmatpush1.msra.mxu1 %v1012_v6 }
 0x31b   : > { %2785 = vmatmul.mubr.msk.f32.vlgmr.msra.gmra.mxu0 %vm1755_vm11, %v1741_v26  ;;  %2786 = vmatmul.mubr.msk.f32.vlgmr.msra.gmra.mxu1 %vm1755_vm11, %v1742_v55 }
 0x3da   : > { %1842 = sbr.rel (%p2787_p4) target bundleno = 1171 (0x493), region = 84 }
 0x3db   : > { %v1828_v5 = vpop.f32.mrf.mxu0  ;;  %v1834_v58 = vpop.f32.mrf.mxu1 }
 0x3dc   : > { %v4442_v44 = vadd.f32 %v1828_v5, %v1748_v42  ;;  %v4444_v29 = vadd.f32 %v1834_v58, %v1753_v27 }
 0x3dd   : > { %v1830_v48 = vpop.f32.mrf.mxu0  ;;  %v1836_v7 = vpop.f32.mrf.mxu1 }
 0x3de   : > { %v4446_v63 = vadd.f32 %v1830_v48, %v1748_v42  ;;  %v4448_v61 = vadd.f32 %v1836_v7, %v1753_v27 }
 0x3df   : > { %v5032_v33 = vld [vmem:[#allocation11_spill] sm:$0xff]  ;;  %v5033_v53 = vld [vmem:[#allocation12_spill] sm:$0xff]  ;;  %v1847_v14 = vld [vmem:[#allocation4] sm:$0xff]  ;;  %vm1857_vm13 = vcmask 7168  }
 0x3e0   : > { %v1843_v2 = vmul.f32 %v5032_v33, %v4442_v44  ;;  %v1844_v49 = vmul.f32 %v5033_v53, %v4446_v63  ;;  %v1845_v62 = vmul.f32 %v5032_v33, %v4444_v29  ;;  %v1846_v51 = vmul.f32 %v5033_v53, %v4448_v61  ;;  %v1860_v16 = vld [vmem:[#allocation5] sm:$0xff]  ;;  %v1848_v56 = vld [vmem:[#allocation4 + $0x8] sm:$0xff]  ;;  %v1861_v4 = vld [vmem:[#allocation5 + $0x8] sm:$0xff] }
 0x3e2   : > { %v1862_v18 = vmul.f32 %v1843_v2, %v4442_v44  ;;  %v1863_v19 = vmul.f32 %v1844_v49, %v4446_v63  ;;  %v1849_v11 = vadd.f32 %v1844_v49, %v1843_v2  ;;  %v1864_v41 = vmul.f32 %v1845_v62, %v4444_v29 }
 0x3e3   : > { %v1865_v32 = vmul.f32 %v1846_v51, %v4448_v61  ;;  %v1852_v39 = vadd.f32 %v1846_v51, %v1845_v62 }
 0x3e4   : > { %v1866_v21 = vadd.f32 %v1863_v19, %v1862_v18  ;;  %1850 = vadd.xlane.f32.xlu0 %v1849_v11 }
 0x3e5   : > { %v1869_v1 = vadd.f32 %v1865_v32, %v1864_v41 }
 0x3e6   : > { %1867 = vadd.xlane.f32.xlu1 %v1866_v21 }
 0x3e8   : > { %1853 = vadd.xlane.f32.xlu0 %v1852_v39 }
 0x3ea   : > { %1870 = vadd.xlane.f32.xlu1 %v1869_v1 }
 0x46d   : > { %v1851_v43 = vpop.xlane.xlu0 %1850 }
 0x46e   : > { %v1855_v17 = vadd.f32 %v1851_v43, %v1847_v14 }
 0x46f   : > { %v1868_v13 = vpop.xlane.xlu1 %1867 }
 0x470   : > { %v1872_v35 = vadd.f32 %v1868_v13, %v1860_v16  ;;  %1858 = vst.msk [vmem:[#allocation4] sm:$0xff] %vm1857_vm13, %v1855_v17 }
 0x471   : > { %v1854_v59 = vpop.xlane.xlu0 %1853 }
 0x472   : > { %1874 = vst.msk [vmem:[#allocation5] sm:$0xff] %vm1857_vm13, %v1872_v35  ;;  %v1856_v25 = vadd.f32 %v1854_v59, %v1848_v56  ;;  %1879 = sbr.rel (%p2788_p5) target bundleno = 1171 (0x493), region = 88 }
 0x473   : > { %v1871_v30 = vpop.xlane.xlu1 %1870 }
 0x474   : > { %v1873_v10 = vadd.f32 %v1871_v30, %v1861_v4  ;;  %1859 = vst.msk [vmem:[#allocation4 + $0x8] sm:$0xff] %vm1857_vm13, %v1856_v25 }
 0x476   : > { %1875 = vst.msk [vmem:[#allocation5 + $0x8] sm:$0xff] %vm1857_vm13, %v1873_v10 }
 0x477   : > { %v1880_v54 = vld [vmem:[#allocation4] sm:$0xff] }
 0x478   : > { %v1882_v36 = vmul.f32 0.001, %v1880_v54 }
 0x479   : > { %v1884_v38 = vld [vmem:[#allocation5] sm:$0xff] }
 0x47a   : > { %v1886_v50 = vmul.f32 0.001, %v1884_v38  ;;  %v1888_v20 = vmul.f32 %v1882_v36, %v1882_v36  ;;  %1892 = vst.msk [vmem:[#allocation4] sm:$0xff] %vm1857_vm13, %v1882_v36 }
 0x47b   : > { %v1881_v37 = vld [vmem:[#allocation4 + $0x8] sm:$0xff] }
 0x47c   : > { %v1883_v22 = vmul.f32 0.001, %v1881_v37  ;;  %v1890_v46 = vsub.f32 %v1886_v50, %v1888_v20 }
 0x47d   : > { %v1885_v34 = vld [vmem:[#allocation5 + $0x8] sm:$0xff] }
 0x47e   : > { %v1889_v40 = vmul.f32 %v1883_v22, %v1883_v22  ;;  %1893 = vst.msk [vmem:[#allocation4 + $0x8] sm:$0xff] %vm1857_vm13, %v1883_v22  ;;  %v1887_v28 = vmul.f32 0.001, %v1885_v34  ;;  %v1894_v9 = vadd.f32 1e-05, %v1890_v46 }
 0x480   : > { %v1891_v60 = vsub.f32 %v1887_v28, %v1889_v40  ;;  %3025 = vrsqrt.f32 %v1894_v9 }
 0x482   : > { %v1895_v31 = vadd.f32 1e-05, %v1891_v60 }
 0x484   : > { %3027 = vrsqrt.f32 %v1895_v31 }
 0x48d   : > { %v3026_v0 = vpop.eup %3025 }
 0x48e   : > { %1898 = vst.msk [vmem:[#allocation5] sm:$0xff] %vm1857_vm13, %v3026_v0 }
 0x491   : > { %v3028_v15 = vpop.eup %3027 }
 0x492   : > { %1899 = vst.msk [vmem:[#allocation5 + $0x8] sm:$0xff] %vm1857_vm13, %v3028_v15 }
 0x493 PF: > { %p2789_p6 = scmp.ne.s32.totalorder %s3143_s21, 2 }
 0x494   : > { %s5048_s15 = scalar_lea.vmem (!%p2789_p6), [#allocation6], %s3355_s25 }
 0x495   : > { %1903 = sbr.rel (%p2789_p6) target bundleno = 1475 (0x5c3), region = 92 }
 0x49a   : > { %v1936_v24 = vld [vmem:[%s4896_s7] sm:$0xff]  ;;  %v3171_v45 = vmov 0   ;;  %v1920_v8 = vld [vmem:[#allocation5] sm:$0xff]  ;;  %v1921_v47 = vld [vmem:[#allocation5 + $0x8] sm:$0xff]  ;;  %v3172_v6 = vmov 2   ;;  %v3173_v27 = vmov 1  }
 0x49b   : > { %v1904_v57 = vld [vmem:[#allocation4] sm:$0xff]  ;;  %3030 = vset.pattern.permute.xlu1 %v3171_v45  ;;  %3029 = vset.pattern.permute.xlu0 %v3171_v45  ;;  %v1905_v3 = vld [vmem:[#allocation4 + $0x8] sm:$0xff]  ;;  %v3174_v42 = vmov 3   ;;  %v3175_v5 = vmov 4   ;;  %v3176_v58 = vmov 5   ;;  %v3177_v48 = vmov 7  }
 0x49c   : > { %1940 = vperm.xlu1 %3030, %v1936_v24   ;;  %1908 = vperm.xlu0 %3029, %v1904_v57   ;;  %v1952_v23 = vld [vmem:[%s4897_s8] sm:$0xff]  ;;  %v1953_v52 = vld [vmem:[%s4897_s8 + $0x8] sm:$0xff]  ;;  %v3178_v7 = vmov 6   ;;  %v3179_v33 = vmov 10   ;;  %v3180_v2 = vmov 8   ;;  %v3181_v53 = vmov 13  }
 0x49d   : > { %v1937_v12 = vld [vmem:[%s4896_s7 + $0x8] sm:$0xff]  ;;  %v2385_v26 = vld [vmem:[%s4899_s10] sm:$0x7]  ;;  %v3182_v49 = vmov 9   ;;  %v3183_v62 = vmov 15   ;;  %v3184_v51 = vmov 11  }
 0x49e   : > { %v2384_v55 = vld [vmem:[%s4898_s9] sm:$0x7]  ;;  %v3185_v18 = vmov 12   ;;  %v3186_v19 = vmov 14  }
 0x4a0   : > { %1956 = vperm.xlu1 %3030, %v1952_v23   ;;  %1924 = vperm.xlu0 %3029, %v1920_v8  }
 0x4a4   : > { %1929 = vperm.xlu1 %3030, %v1921_v47   ;;  %1913 = vperm.xlu0 %3029, %v1905_v3  }
 0x4a8   : > { %1961 = vperm.xlu1 %3030, %v1953_v52   ;;  %1945 = vperm.xlu0 %3029, %v1937_v12  }
 0x4ac   : > { %2403 = vperm.xlu1 %3030, %v2385_v26   ;;  %2388 = vperm.xlu0 %3029, %v2384_v55   ;;  %v3187_v26 = vmov 683565275  }
 0x4b0   : > { %3032 = vset.pattern.permute.xlu1 %v3172_v6  ;;  %3031 = vset.pattern.permute.xlu0 %v3173_v27 }
 0x4b1   : > { %2425 = vperm.xlu1 %3032, %v2384_v55   ;;  %2409 = vperm.xlu0 %3031, %v2384_v55  }
 0x4b5   : > { %3033 = vset.pattern.permute.xlu1 %v3174_v42  ;;  %3034 = vset.pattern.permute.xlu0 %v3175_v5  ;;  %v3188_v42 = vmov 2475754826  }
 0x4b6   : > { %2441 = vperm.xlu1 %3033, %v2384_v55   ;;  %2457 = vperm.xlu0 %3034, %v2384_v55  }
 0x4ba   : > { %3035 = vset.pattern.permute.xlu1 %v3176_v58  ;;  %3037 = vset.pattern.permute.xlu0 %v3177_v48  ;;  %v3189_v58 = vmov 2131351028  }
 0x4bb   : > { %2473 = vperm.xlu1 %3035, %v2384_v55   ;;  %2505 = vperm.xlu0 %3037, %v2384_v55  }
 0x4bf   : > { %3036 = vset.pattern.permute.xlu1 %v3178_v7  ;;  %3040 = vset.pattern.permute.xlu0 %v3179_v33  ;;  %v3190_v7 = vmov 2102212464  }
 0x4c0   : > { %2489 = vperm.xlu1 %3036, %v2384_v55   ;;  %2553 = vperm.xlu0 %3040, %v2384_v55  }
 0x4c4   : > { %3038 = vset.pattern.permute.xlu1 %v3180_v2  ;;  %3043 = vset.pattern.permute.xlu0 %v3181_v53  ;;  %v3191_v2 = vmov 920167782  }
 0x4c5   : > { %2521 = vperm.xlu1 %3038, %v2384_v55   ;;  %2601 = vperm.xlu0 %3043, %v2384_v55  }
 0x4c9   : > { %3039 = vset.pattern.permute.xlu1 %v3182_v49  ;;  %3046 = vset.pattern.permute.xlu0 %v3183_v62 }
 0x4ca   : > { %2537 = vperm.xlu1 %3039, %v2384_v55  }
 0x4ce   : > { %3041 = vset.pattern.permute.xlu1 %v3184_v51 }
 0x4cf   : > { %2569 = vperm.xlu1 %3041, %v2384_v55  }
 0x4d3   : > { %3042 = vset.pattern.permute.xlu1 %v3185_v18 }
 0x4d4   : > { %2585 = vperm.xlu1 %3042, %v2384_v55  }
 0x4d8   : > { %3044 = vset.pattern.permute.xlu1 %v3186_v19 }
 0x4d9   : > { %2617 = vperm.xlu1 %3044, %v2384_v55  }
 0x4dd   : > { %3045 = vset.pattern.permute.xlu1 %v3183_v62 }
 0x4de   : > { %2633 = vperm.xlu1 %3045, %v2384_v55  }
 0x517   : > { %v1941_v11 = vpop.permute.xlu1 %1940  ;;  %v1909_v41 = vpop.permute.xlu0 %1908 }
 0x518   : > { %v1916_v32 = vsub.f32 %v4442_v44, %v1909_v41  ;;  %v1917_v21 = vsub.f32 %v4446_v63, %v1909_v41 }
 0x51b   : > { %v1957_v39 = vpop.permute.xlu1 %1956  ;;  %v1925_v1 = vpop.permute.xlu0 %1924 }
 0x51c   : > { %v1932_v14 = vmul.f32 %v1925_v1, %v1916_v32  ;;  %v1933_v16 = vmul.f32 %v1925_v1, %v1917_v21 }
 0x51e   : > { %v1948_v43 = vmul.f32 %v1941_v11, %v1932_v14  ;;  %v1949_v17 = vmul.f32 %v1941_v11, %v1933_v16  ;;  %v3192_v11 = vmov 1326507024  }
 0x51f   : > { %v1914_v13 = vpop.permute.xlu0 %1913  ;;  %v1930_v59 = vpop.permute.xlu1 %1929 }
 0x520   : > { %v4493_v56 = vadd.f32 %v1957_v39, %v1948_v43  ;;  %v4495_v35 = vadd.f32 %v1957_v39, %v1949_v17  ;;  %v1918_v4 = vsub.f32 %v4444_v29, %v1914_v13  ;;  %v1919_v37 = vsub.f32 %v4448_v61, %v1914_v13 }
 0x522   : > { %v1968_v25 = vand.u32 2147483647, %v4493_v56  ;;  %v1971_v44 = vand.u32 2139095040, %v4493_v56  ;;  %v2072_v63 = vand.u32 2147483647, %v4495_v35  ;;  %v2075_v30 = vand.u32 2139095040, %v4495_v35 }
 0x523   : > { %v1946_v10 = vpop.permute.xlu0 %1945  ;;  %v1934_v38 = vmul.f32 %v1930_v59, %v1918_v4  ;;  %v4507_v40 = vpop.permute.xlu1 %1961  ;;  %v1935_v46 = vmul.f32 %v1930_v59, %v1919_v37 }
 0x524   : > { %v1972_v54 = vshrl.u32 %v1971_v44, 23  ;;  %v1975_v36 = vand.u32 8388607, %v1968_v25  ;;  %v2076_v22 = vshrl.u32 %v2075_v30, 23  ;;  %v2079_v29 = vand.u32 8388607, %v2072_v63 }
 0x525   : > { %v1950_v34 = vmul.f32 %v1946_v10, %v1934_v38  ;;  %v4513_v23 = vmul.f32 %v1946_v10, %v1935_v46 }
 0x526   : > { %v2790_v50 = vadd.s32 4294967169, %v1972_v54  ;;  %v2794_v20 = vadd.s32 4294967169, %v2076_v22  ;;  %v1976_v9 = vor.u32 8388608, %v1975_v36  ;;  %v2080_v61 = vor.u32 8388608, %v2079_v29 }
 0x527   : > { %v4510_v60 = vadd.f32 %v4507_v40, %v1950_v34 }
 0x528   : > { %v1978_v28 = vadd.s32 1, %v2790_v50  ;;  %v2082_v31 = vadd.s32 1, %v2794_v20  ;;  %v4515_v8 = vshll.u32 %v1976_v9, 8  ;;  %v4519_v3 = vshll.u32 %v2080_v61, 8 }
 0x529   : > { %v2179_v0 = vand.u32 2139095040, %v4510_v60  ;;  %v2176_v52 = vand.u32 2147483647, %v4510_v60 }
 0x52a   : > { %vm1979_vm2 = vcmp.gt.s32.totalorder %v1978_v28, 0  ;;  %vm2083_vm3 = vcmp.gt.s32.totalorder %v2082_v31, 0 }
 0x52b   : > { %v1980_v15 = vsel %vm1979_vm2, %v1978_v28, 0  ;;  %v2084_v45 = vsel %vm2083_vm3, %v2082_v31, 0  ;;  %v4523_v27 = vshrl.u32 %v2179_v0, 23  ;;  %vm1970_vm2 = vcmp.lt.s32.totalorder %v4493_v56, 0 }
 0x52c   : > { %v1981_v24 = vshrl.u32 %v1980_v15, 5  ;;  %v1982_v57 = vand.u32 31, %v1980_v15  ;;  %v4517_v47 = vshrl.u32 %v2084_v45, 5  ;;  %v2086_v6 = vand.u32 31, %v2084_v45 }
 0x52e   : > { %v1983_v12 = vsub.s32 32, %v1982_v57  ;;  %v1985_v55 = vshll.u32 %v3187_v26, %v1982_v57  ;;  %v1988_v5 = vshll.u32 %v3188_v42, %v1982_v57  ;;  %v1991_v48 = vshll.u32 %v3189_v58, %v1982_v57 }
 0x52f   : > { %v1994_v33 = vshll.u32 %v3190_v7, %v1982_v57  ;;  %v1997_v53 = vshll.u32 %v3191_v2, %v1982_v57  ;;  %vm2000_vm5 = vcmp.lt.s32.totalorder %v1981_v24, 1  ;;  %vm2001_vm4 = vcmp.lt.s32.totalorder %v1981_v24, 2 }
 0x530   : > { %v1986_v49 = vshrl.u32 %v3188_v42, %v1983_v12  ;;  %v1989_v62 = vshrl.u32 %v3189_v58, %v1983_v12  ;;  %v1992_v51 = vshrl.u32 %v3190_v7, %v1983_v12  ;;  %v1984_v18 = vshrl.u32 %v3187_v26, %v1983_v12 }
 0x531   : > { %v1995_v19 = vshrl.u32 %v3191_v2, %v1983_v12  ;;  %v1998_v41 = vshrl.u32 %v3192_v11, %v1983_v12  ;;  %v2087_v1 = vsub.s32 32, %v2086_v6  ;;  %vm2002_vm6 = vcmp.lt.s32.totalorder %v1981_v24, 3 }
 0x532   : > { %v1987_v32 = vor.u32 %v1986_v49, %v1985_v55  ;;  %v1990_v21 = vor.u32 %v1989_v62, %v1988_v5  ;;  %v1993_v39 = vor.u32 %v1992_v51, %v1991_v48  ;;  %vm2003_vm12 = vcmp.lt.s32.totalorder %v1981_v24, 4 }
 0x533   : > { %v1996_v14 = vor.u32 %v1995_v19, %v1994_v33  ;;  %v1999_v16 = vor.u32 %v1998_v41, %v1997_v53  ;;  %v2089_v10 = vshll.u32 %v3187_v26, %v2086_v6  ;;  %v2090_v38 = vshrl.u32 %v3188_v42, %v2087_v1 }
 0x534   : > { %v2004_v43 = vsel %vm2000_vm5, %v1984_v18, %v1987_v32  ;;  %v2005_v17 = vsel %vm2003_vm12, %v1993_v39, 2102212464  ;;  %v2008_v13 = vsel %vm2000_vm5, %v1987_v32, %v1990_v21  ;;  %v2012_v4 = vsel %vm2000_vm5, %v1990_v21, %v1993_v39 }
 0x535   : > { %v2006_v59 = vsel %vm2002_vm6, %v1990_v21, %v2005_v17  ;;  %v2009_v44 = vsel %vm2003_vm12, %v1996_v14, 920167782  ;;  %v2013_v30 = vsel %vm2003_vm12, %v1999_v16, 1326507024  ;;  %v2092_v36 = vshll.u32 %v3188_v42, %v2086_v6 }
 0x536   : > { %v2010_v54 = vsel %vm2002_vm6, %v1993_v39, %v2009_v44  ;;  %v2014_v37 = vsel %vm2002_vm6, %v1996_v14, %v2013_v30  ;;  %v2007_v22 = vsel %vm2001_vm4, %v2004_v43, %v2006_v59  ;;  %v2093_v34 = vshrl.u32 %v3189_v58, %v2087_v1 }
 0x537   : > { %v2011_v29 = vsel %vm2001_vm4, %v2008_v13, %v2010_v54  ;;  %v2015_v50 = vsel %vm2001_vm4, %v2012_v4, %v2014_v37  ;;  %v2091_v61 = vor.u32 %v2090_v38, %v2089_v10  ;;  %v2095_v0 = vshll.u32 %v3189_v58, %v2086_v6 }
 0x538   : > { %v4546_v20 = vmul.u32.u64.low %v4515_v8, %v2015_v50  ;;  %v4547_v28 = vmul.u32.u64.high %v4515_v8, %v2015_v50, %v4546_v20  ;;  %v4550_v46 = vmul.u32.u64.low %v4515_v8, %v2011_v29  ;;  %v4551_v9 = vmul.u32.u64.high %v4515_v8, %v2011_v29, %v4550_v46 }
 0x539   : > { %v2094_v31 = vor.u32 %v2093_v34, %v2092_v36  ;;  %v2096_v15 = vshrl.u32 %v3190_v7, %v2087_v1  ;;  %v2088_v24 = vshrl.u32 %v3187_v26, %v2087_v1  ;;  %v2098_v57 = vshll.u32 %v3190_v7, %v2086_v6 }
 0x53a   : > { %v2099_v45 = vshrl.u32 %v3191_v2, %v2087_v1  ;;  %v2102_v12 = vshrl.u32 %v3192_v11, %v2087_v1  ;;  %v2023_v55 = vmul.u32 %v4515_v8, %v2007_v22  ;;  %v2101_v48 = vshll.u32 %v3191_v2, %v2086_v6 }
 0x53b   : > { %v2097_v5 = vor.u32 %v2096_v15, %v2095_v0  ;;  %vm2104_vm8 = vcmp.lt.s32.totalorder %v4517_v47, 1  ;;  %vm2025_vm9 = vc.u32 %v4547_v28, %v4550_v46  ;;  %v2026_v33 = vadd.s32 1, %v4551_v9 }
 0x53c   : > { %v2100_v53 = vor.u32 %v2099_v45, %v2098_v57  ;;  %vm2105_vm7 = vcmp.lt.s32.totalorder %v4517_v47, 2  ;;  %v2103_v49 = vor.u32 %v2102_v12, %v2101_v48  ;;  %vm2106_vm10 = vcmp.lt.s32.totalorder %v4517_v47, 3 }
 0x53d   : > { %vm2107_vm15 = vcmp.lt.s32.totalorder %v4517_v47, 4  ;;  %v2112_v62 = vsel %vm2104_vm8, %v2091_v61, %v2094_v31  ;;  %v2027_v8 = vsel %vm2025_vm9, %v2026_v33, %v4551_v9  ;;  %v2116_v18 = vsel %vm2104_vm8, %v2094_v31, %v2097_v5 }
 0x53e   : > { %v2109_v51 = vsel %vm2107_vm15, %v2097_v5, 2102212464  ;;  %v2113_v6 = vsel %vm2107_vm15, %v2100_v53, 920167782  ;;  %v2028_v19 = vadd.s32 %v2027_v8, %v2023_v55  ;;  %v2108_v41 = vsel %vm2104_vm8, %v2088_v24, %v2091_v61 }
 0x53f   : > { %v2114_v32 = vsel %vm2106_vm10, %v2097_v5, %v2113_v6  ;;  %v2117_v21 = vsel %vm2107_vm15, %v2103_v49, 1326507024  ;;  %v2110_v39 = vsel %vm2106_vm10, %v2094_v31, %v2109_v51  ;;  %v2798_v16 = vadd.s32 4294967169, %v4523_v27 }
 0x540   : > { %v2115_v1 = vsel %vm2105_vm7, %v2112_v62, %v2114_v32  ;;  %v2118_v14 = vsel %vm2106_vm10, %v2100_v53, %v2117_v21  ;;  %v2029_v43 = vadd.s32 536870912, %v2028_v19  ;;  %v4586_v30 = vadd.f32 %v4507_v40, %v4513_v23 }
 0x541   : > { %v2119_v17 = vsel %vm2105_vm7, %v2116_v18, %v2118_v14  ;;  %v4576_v13 = vmul.u32.u64.low %v4519_v3, %v2115_v1  ;;  %v4577_v4 = vmul.u32.u64.high %v4519_v3, %v2115_v1, %v4576_v13  ;;  %v2111_v27 = vsel %vm2105_vm7, %v2108_v41, %v2110_v39 }
 0x542   : > { %v4581_v59 = vmul.u32.u64.low %v4519_v3, %v2119_v17  ;;  %v4582_v44 = vmul.u32.u64.high %v4519_v3, %v2119_v17, %v4581_v59  ;;  %v4588_v10 = vshrl.u32 %v2029_v43, 30  ;;  %v2186_v54 = vadd.s32 1, %v2798_v16 }
 0x543   : > { %v2130_v38 = vadd.s32 1, %v4577_v4  ;;  %v2183_v36 = vand.u32 8388607, %v2176_v52  ;;  %v2127_v22 = vmul.u32 %v4519_v3, %v2111_v27  ;;  %v2283_v23 = vand.u32 2139095040, %v4586_v30 }
 0x544   : > { %v2031_v37 = vshll.u32 %v4588_v10, 30  ;;  %vm2187_vm0 = vcmp.gt.s32.totalorder %v2186_v54, 0  ;;  %vm2129_vm14 = vc.u32 %v4582_v44, %v4576_v13  ;;  %v2024_v3 = vadd.s32 %v4550_v46, %v4547_v28 }
 0x545   : > { %v2188_v40 = vsel %vm2187_vm0, %v2186_v54, 0  ;;  %v2131_v47 = vsel %vm2129_vm14, %v2130_v38, %v4577_v4  ;;  %v2184_v9 = vor.u32 8388608, %v2183_v36  ;;  %v2284_v0 = vshrl.u32 %v2283_v23, 23 }
 0x546   : > { %v2032_v29 = vsub.s32 %v2028_v19, %v2031_v37  ;;  %v2132_v50 = vadd.s32 %v2131_v47, %v2127_v22  ;;  %v2190_v34 = vand.u32 31, %v2188_v40  ;;  %v4605_v57 = vshrl.u32 %v2188_v40, 5 }
 0x547   : > { %v2054_v12 = vsub.s32 4, %v4588_v10  ;;  %v4609_v5 = vshll.u32 %v2184_v9, 8  ;;  %v2802_v49 = vadd.s32 4294967169, %v2284_v0  ;;  %vm1969_vm8 = vcmp.le.f32.partialorder %v1968_v25, 0.7853982 }
 0x548   : > { %v2034_v20 = vsub.s32 0, %v2032_v29  ;;  %v2133_v61 = vadd.s32 536870912, %v2132_v50  ;;  %v2191_v31 = vsub.s32 32, %v2190_v34  ;;  %v2193_v33 = vshll.u32 %v3187_v26, %v2190_v34 }
 0x549   : > { %v2199_v28 = vshll.u32 %v3189_v58, %v2190_v34  ;;  %v2196_v6 = vshll.u32 %v3188_v42, %v2190_v34  ;;  %vm2208_vm1 = vcmp.lt.s32.totalorder %v4605_v57, 1  ;;  %v2202_v32 = vshll.u32 %v3190_v7, %v2190_v34 }
 0x54a   : > { %v2791_v15 = vmin.u32 %v2034_v20, %v2032_v29  ;;  %v4603_v24 = vshrl.u32 %v2133_v61, 30  ;;  %v2194_v55 = vshrl.u32 %v3188_v42, %v2191_v31  ;;  %v2197_v53 = vshrl.u32 %v3189_v58, %v2191_v31 }
 0x54b   : > { %v2200_v46 = vshrl.u32 %v3190_v7, %v2191_v31  ;;  %v2203_v8 = vshrl.u32 %v3191_v2, %v2191_v31  ;;  %v2206_v18 = vshrl.u32 %v3192_v11, %v2191_v31  ;;  %v2205_v14 = vshll.u32 %v3191_v2, %v2190_v34 }
 0x54c   : > { %v2036_v45 = vclz %v2791_v15  ;;  %v2135_v48 = vshll.u32 %v4603_v24, 30  ;;  %v2195_v19 = vor.u32 %v2194_v55, %v2193_v33  ;;  %v2198_v1 = vor.u32 %v2197_v53, %v2196_v6 }
 0x54d   : > { %v2201_v41 = vor.u32 %v2200_v46, %v2199_v28  ;;  %v2204_v17 = vor.u32 %v2203_v8, %v2202_v32  ;;  %vm2211_vm13 = vcmp.lt.s32.totalorder %v4605_v57, 4  ;;  %v2192_v59 = vshrl.u32 %v3187_v26, %v2191_v31 }
 0x54e   : > { %v2792_v62 = vadd.s32 4294967294, %v2036_v45  ;;  %v4617_v51 = vsub.s32 %v2132_v50, %v2135_v48  ;;  %v2207_v27 = vor.u32 %v2206_v18, %v2205_v14  ;;  %vm2209_vm3 = vcmp.lt.s32.totalorder %v4605_v57, 2 }
 0x54f   : > { %v2213_v54 = vsel %vm2211_vm13, %v2201_v41, 2102212464  ;;  %vm2210_vm5 = vcmp.lt.s32.totalorder %v4605_v57, 3  ;;  %v2212_v40 = vsel %vm2208_vm1, %v2192_v59, %v2195_v19  ;;  %v2216_v23 = vsel %vm2208_vm1, %v2195_v19, %v2198_v1 }
 0x550   : > { %vm2793_vm11 = vcmp.lt.s32.totalorder %v2792_v62, 0  ;;  %v2138_v39 = vsub.s32 0, %v4617_v51  ;;  %v2214_v34 = vsel %vm2210_vm5, %v2198_v1, %v2213_v54  ;;  %v2217_v20 = vsel %vm2211_vm13, %v2204_v17, 920167782 }
 0x551   : > { %v2039_v21 = vsel %vm2793_vm11, 0, %v2792_v62  ;;  %v2218_v9 = vsel %vm2210_vm5, %v2201_v41, %v2217_v20  ;;  %v2220_v61 = vsel %vm2208_vm1, %v2198_v1, %v2201_v41  ;;  %v2221_v31 = vsel %vm2211_vm13, %v2207_v27, 1326507024 }
 0x552   : > { %v2040_v16 = vsub.s32 32, %v2039_v21  ;;  %v2044_v43 = vsub.s32 4294967266, %v2039_v21  ;;  %v2795_v4 = vmin.u32 %v2138_v39, %v4617_v51  ;;  %v2041_v37 = vshll.u32 %v2032_v29, %v2039_v21 }
 0x553   : > { %v2222_v45 = vsel %vm2210_vm5, %v2204_v17, %v2221_v31  ;;  %v2128_v8 = vadd.s32 %v4576_v13, %v4582_v44  ;;  %v2215_v19 = vsel %vm2209_vm3, %v2212_v40, %v2214_v34  ;;  %v2055_v32 = vsel %vm1970_vm2, %v2054_v12, %v4588_v10  ;;  %v5036_v40 = vld [vmem:[#allocation13_spill] sm:$0xff] }
 0x554   : > { %v2042_v38 = vshrl.u32 %v2024_v3, %v2040_v16  ;;  %v2045_v36 = vadd.s32 127, %v2044_v43  ;;  %v2140_v22 = vclz %v2795_v4  ;;  %v2219_v3 = vsel %vm2209_vm3, %v2216_v23, %v2218_v9 }
 0x555   : > { %v2223_v55 = vsel %vm2209_vm3, %v2220_v61, %v2222_v45  ;;  %v4648_v48 = vmul.u32.u64.low %v4609_v5, %v2219_v3  ;;  %v4649_v33 = vmul.u32.u64.high %v4609_v5, %v2219_v3, %v4648_v48  ;;  %v2280_v21 = vand.u32 2147483647, %v4586_v30 }
 0x556   : > { %v2043_v47 = vor.u32 %v2042_v38, %v2041_v37  ;;  %v2046_v50 = vshll.u32 %v2045_v36, 23  ;;  %v2796_v29 = vadd.s32 4294967294, %v2140_v22  ;;  %v2290_v39 = vadd.s32 1, %v2802_v49 }
 0x557   : > { %v4653_v28 = vmul.u32.u64.low %v4609_v5, %v2223_v55  ;;  %v4654_v46 = vmul.u32.u64.high %v4609_v5, %v2223_v55, %v4653_v28  ;;  %v2234_v13 = vadd.s32 1, %v4649_v33  ;;  %v2231_v57 = vmul.u32 %v4609_v5, %v2215_v19 }
 0x558   : > { %v2047_v0 = vor.u32 4788187, %v2046_v50  ;;  %v2050_v15 = vcvt.s32.f32 %v2043_v47  ;;  %vm2797_vm4 = vcmp.lt.s32.totalorder %v2796_v29, 0  ;;  %vm2291_vm12 = vcmp.gt.s32.totalorder %v2290_v39, 0 }
 0x559   : > { %v2143_v62 = vsel %vm2797_vm4, 0, %v2796_v29  ;;  %vm2233_vm6 = vc.u32 %v4654_v46, %v4648_v48  ;;  %v2292_v12 = vsel %vm2291_vm12, %v2290_v39, 0  ;;  %v2057_v5 = vsel %vm1969_vm8, 0, %v2055_v32 }
 0x55a   : > { %v2048_v53 = vand.u32 2147483647, %v2047_v0  ;;  %v2144_v6 = vsub.s32 32, %v2143_v62  ;;  %v2148_v18 = vsub.s32 4294967266, %v2143_v62  ;;  %v2145_v1 = vshll.u32 %v4617_v51, %v2143_v62 }
 0x55b   : > { %v2235_v10 = vsel %vm2233_vm6, %v2234_v13, %v4649_v33  ;;  %v2294_v4 = vand.u32 31, %v2292_v12  ;;  %v2287_v37 = vand.u32 8388607, %v2280_v21  ;;  %vm2074_vm9 = vcmp.lt.s32.totalorder %v4495_v35, 0 }
 0x55c   : > { %v2051_v41 = vmul.f32 %v2050_v15, %v2048_v53  ;;  %v2146_v14 = vshrl.u32 %v2128_v8, %v2144_v6  ;;  %v2149_v16 = vadd.s32 127, %v2148_v18  ;;  %v2236_v51 = vadd.s32 %v2235_v10, %v2231_v57 }
 0x55d   : > { %v2295_v38 = vsub.s32 32, %v2294_v4  ;;  %v2061_v22 = vadd.s32 3, %v2057_v5  ;;  %vm4682_vm7 = vcmp.le.f32.partialorder %v2072_v63, 0.7853982  ;;  %v2288_v61 = vor.u32 8388608, %v2287_v37 }
 0x55e   : > { %v2052_v44 = vxor.u32 2147483648, %v2051_v41  ;;  %v2147_v43 = vor.u32 %v2146_v14, %v2145_v1  ;;  %v2150_v17 = vshll.u32 %v2149_v16, 23  ;;  %v2237_v54 = vadd.s32 536870912, %v2236_v51 }
 0x55f   : > { %v2298_v47 = vshrl.u32 %v3188_v42, %v2295_v38  ;;  %v2301_v34 = vshrl.u32 %v3189_v58, %v2295_v38  ;;  %v2304_v20 = vshrl.u32 %v3190_v7, %v2295_v38  ;;  %v2307_v29 = vshrl.u32 %v3191_v2, %v2295_v38 }
 0x560   : > { %v2053_v49 = vsel %vm1970_vm2, %v2052_v44, %v2051_v41  ;;  %v2151_v27 = vor.u32 4788187, %v2150_v17  ;;  %v2154_v25 = vcvt.s32.f32 %v2147_v43  ;;  %v4686_v23 = vshrl.u32 %v2237_v54, 30 }
 0x561   : > { %v2056_v59 = vsel %vm1969_vm8, %v4493_v56, %v2053_v49  ;;  %v2293_v31 = vshrl.u32 %v2292_v12, 5  ;;  %v2303_v63 = vshll.u32 %v3189_v58, %v2294_v4  ;;  %v2297_v15 = vshll.u32 %v3187_v26, %v2294_v4 }
 0x562   : > { %3047 = vcosq.f32 %v2056_v59  ;;  %v2152_v36 = vand.u32 2147483647, %v2151_v27  ;;  %v2239_v9 = vshll.u32 %v4686_v23, 30  ;;  %v2300_v3 = vshll.u32 %v3188_v42, %v2294_v4 }
 0x563   : > { %3049 = vsinq.f32 %v2056_v59  ;;  %v2306_v45 = vshll.u32 %v3190_v7, %v2294_v4  ;;  %v2305_v33 = vor.u32 %v2304_v20, %v2303_v63  ;;  %v2309_v53 = vshll.u32 %v3191_v2, %v2294_v4 }
 0x564   : > { %v2155_v50 = vmul.f32 %v2154_v25, %v2152_v36  ;;  %v4697_v55 = vsub.s32 %v2236_v51, %v2239_v9  ;;  %v2310_v62 = vshrl.u32 %v3192_v11, %v2295_v38  ;;  %v2299_v8 = vor.u32 %v2298_v47, %v2297_v15 }
 0x565   : > { %v2302_v6 = vor.u32 %v2301_v34, %v2300_v3  ;;  %v2308_v58 = vor.u32 %v2307_v29, %v2306_v45  ;;  %v2062_v18 = vand.u32 3, %v2061_v22  ;;  %v2158_v19 = vsub.s32 4, %v4603_v24 }
 0x566   : > { %v2156_v0 = vxor.u32 2147483648, %v2155_v50  ;;  %v2242_v42 = vsub.s32 0, %v4697_v55  ;;  %v2311_v41 = vor.u32 %v2310_v62, %v2309_v53  ;;  %v2296_v2 = vshrl.u32 %v3187_v26, %v2295_v38 }
 0x567   : > { %vm2315_vm10 = vcmp.lt.s32.totalorder %v2293_v31, 4  ;;  %v2328_v11 = vshll.u32 %v2288_v61, 8  ;;  %vm2312_vm15 = vcmp.lt.s32.totalorder %v2293_v31, 1  ;;  %vm2313_vm0 = vcmp.lt.s32.totalorder %v2293_v31, 2 }
 0x568   : > { %v2157_v28 = vsel %vm2074_vm9, %v2156_v0, %v2155_v50  ;;  %v2799_v32 = vmin.u32 %v2242_v42, %v4697_v55  ;;  %v2317_v39 = vsel %vm2315_vm10, %v2305_v33, 2102212464  ;;  %v2320_v1 = vsel %vm2312_vm15, %v2299_v8, %v2302_v6 }
 0x569   : > { %v2160_v7 = vsel %vm4682_vm7, %v4495_v35, %v2157_v28  ;;  %v2321_v14 = vsel %vm2315_vm10, %v2308_v58, 920167782  ;;  %v2324_v16 = vsel %vm2312_vm15, %v2302_v6, %v2305_v33  ;;  %v2325_v13 = vsel %vm2315_vm10, %v2311_v41, 1326507024 }
 0x56a   : > { %3051 = vcosq.f32 %v2160_v7  ;;  %v2244_v44 = vclz %v2799_v32  ;;  %vm2314_vm14 = vcmp.lt.s32.totalorder %v2293_v31, 3  ;;  %v2316_v57 = vsel %vm2312_vm15, %v2296_v2, %v2299_v8  ;;  %v2389_v32 = vpop.permute.xlu0 %2388 }
 0x56b   : > { %3053 = vsinq.f32 %v2160_v7  ;;  %v2318_v17 = vsel %vm2314_vm14, %v2302_v6, %v2317_v39  ;;  %v2322_v10 = vsel %vm2314_vm14, %v2305_v33, %v2321_v14  ;;  %v2326_v26 = vsel %vm2314_vm14, %v2308_v58, %v2325_v13 }
 0x56c   : > { %v2800_v51 = vadd.s32 4294967294, %v2244_v44  ;;  %v2323_v4 = vsel %vm2313_vm0, %v2320_v1, %v2322_v10  ;;  %v2327_v59 = vsel %vm2313_vm0, %v2324_v16, %v2326_v26  ;;  %vm2064_vm1 = vcmp.eq.s32.totalorder %v2062_v18, 0  ;;  %v2404_v44 = vpop.permute.xlu1 %2403 }
 0x56d   : > { %v4712_v27 = vmul.u32.u64.low %v2328_v11, %v2327_v59  ;;  %v4713_v54 = vmul.u32.u64.high %v2328_v11, %v2327_v59, %v4712_v27  ;;  %vm2067_vm11 = vcmp.eq.s32.totalorder %v2062_v18, 2  ;;  %v2159_v36 = vsel %vm2074_vm9, %v2158_v19, %v4603_v24 }
 0x56e   : > { %vm2801_vm13 = vcmp.lt.s32.totalorder %v2800_v51, 0  ;;  %v4715_v37 = vmul.u32.u64.low %v2328_v11, %v2323_v4  ;;  %v4716_v38 = vmul.u32.u64.high %v2328_v11, %v2323_v4, %v4715_v37  ;;  %v2232_v25 = vadd.s32 %v4648_v48, %v4654_v46  ;;  %v2410_v59 = vpop.permute.xlu0 %2409 }
 0x56f   : > { %v3048_v43 = vpop.eup %3047  ;;  %v2247_v22 = vsel %vm2801_vm13, 0, %v2800_v51  ;;  %v2319_v47 = vsel %vm2313_vm0, %v2316_v57, %v2318_v17  ;;  %vm2063_vm2 = vcmp.lt.s32.totalorder %v2062_v18, 2  ;;  %v2161_v48 = vsel %vm4682_vm7, 0, %v2159_v36  ;;  %v5039_v17 = vld [vmem:[#allocation15_spill] sm:$0xff] }
 0x570   : > { %v3050_v12 = vpop.eup %3049  ;;  %v2068_v49 = vxor.u32 2147483648, %v3048_v43  ;;  %v2248_v20 = vsub.s32 32, %v2247_v22  ;;  %v2252_v29 = vsub.s32 4294967266, %v2247_v22  ;;  %vm2337_vm3 = vc.u32 %v4713_v54, %v4715_v37  ;;  %v4758_v4 = vpop.permute.xlu1 %2425 }
 0x571   : > { %v2065_v5 = vxor.u32 2147483648, %v3050_v12  ;;  %v2249_v9 = vshll.u32 %v4697_v55, %v2247_v22  ;;  %v2338_v24 = vadd.s32 1, %v4716_v38  ;;  %v2335_v46 = vmul.u32 %v2328_v11, %v2319_v47 }
 0x572   : > { %v2069_v34 = vsel %vm2067_vm11, %v2068_v49, %v3050_v12  ;;  %v2250_v61 = vshrl.u32 %v2232_v25, %v2248_v20  ;;  %v2253_v63 = vadd.s32 127, %v2252_v29  ;;  %vm2060_vm5 = vweird.f32 %v4493_v56  ;;  %v5041_v20 = vld [vmem:[#allocation19_spill] sm:$0xff] }
 0x573   : > { %v2066_v50 = vsel %vm2064_vm1, %v3048_v43, %v2065_v5  ;;  %v2339_v3 = vsel %vm2337_vm3, %v2338_v24, %v4716_v38  ;;  %v2165_v53 = vadd.s32 3, %v2161_v48  ;;  %vm2178_vm4 = vcmp.lt.s32.totalorder %v4510_v60, 0  ;;  %v5040_v38 = vld [vmem:[#allocation17_spill] sm:$0xff] }
 0x574   : > { %v2070_v0 = vsel %vm2063_vm2, %v2066_v50, %v2069_v34  ;;  %v2251_v31 = vor.u32 %v2250_v61, %v2249_v9  ;;  %v2254_v15 = vshll.u32 %v2253_v63, 23  ;;  %v2340_v45 = vadd.s32 %v2339_v3, %v2335_v46  ;;  %v2442_v24 = vpop.permute.xlu1 %2441 }
 0x575   : > { %v4733_v33 = vsel %vm2060_vm5, nan, %v2070_v0  ;;  %v2166_v42 = vand.u32 3, %v2165_v53  ;;  %vm4743_vm12 = vcmp.le.f32.partialorder %v2176_v52, 0.7853982  ;;  %v2262_v13 = vsub.s32 4, %v4686_v23  ;;  %v5042_v53 = vld [vmem:[#allocation14_spill] sm:$0xff] }
 0x576   : > { %v2255_v55 = vor.u32 4788187, %v2254_v15  ;;  %v2341_v28 = vadd.s32 536870912, %v2340_v45  ;;  %v2258_v58 = vcvt.s32.f32 %v2251_v31  ;;  %v2394_v19 = vrot.slane %v4733_v33, %v5036_v40 }
 0x577   : > { %v3052_v62 = vpop.eup %3051  ;;  %vm2168_vm6 = vcmp.eq.s32.totalorder %v2166_v42, 0  ;;  %vm2171_vm8 = vcmp.eq.s32.totalorder %v2166_v42, 2  ;;  %v2415_v10 = vrot.slane %v4733_v33, %v5039_v17  ;;  %vm2167_vm9 = vcmp.lt.s32.totalorder %v2166_v42, 2 }
 0x578   : > { %v3054_v8 = vpop.eup %3053  ;;  %v2256_v6 = vand.u32 2147483647, %v2255_v55  ;;  %v4735_v18 = vshrl.u32 %v2341_v28, 30  ;;  %v2172_v2 = vxor.u32 2147483648, %v3052_v62  ;;  %v2399_v1 = vmul.f32 %v2394_v19, %v2389_v32  ;;  %v2474_v42 = vpop.permute.xlu1 %2473 }
 0x579   : > { %v2169_v56 = vxor.u32 2147483648, %v3054_v8  ;;  %v2263_v51 = vsel %vm2178_vm4, %v2262_v13, %v4686_v23  ;;  %v2431_v36 = vrot.slane %v4733_v33, %v5040_v38  ;;  %v2420_v25 = vmul.f32 %v2415_v10, %v2410_v59  ;;  %v5044_v10 = vld [vmem:[#allocation18_spill] sm:$0xff] }
 0x57a   : > { %v2259_v41 = vmul.f32 %v2258_v58, %v2256_v6  ;;  %v2343_v7 = vshll.u32 %v4735_v18, 30  ;;  %v2173_v52 = vsel %vm2171_vm8, %v2172_v2, %v3054_v8  ;;  %v2406_v49 = vadd.f32 %v2404_v44, %v2399_v1 }
 0x57b   : > { %v2170_v26 = vsel %vm2168_vm6, %v3052_v62, %v2169_v56  ;;  %vm2164_vm7 = vweird.f32 %v4495_v35  ;;  %v2265_v22 = vsel %vm4743_vm12, 0, %v2263_v51  ;;  %v2447_v23 = vrot.slane %v4733_v33, %v5041_v20  ;;  %v2458_v56 = vpop.permute.xlu0 %2457 }
 0x57c   : > { %v2260_v11 = vxor.u32 2147483648, %v2259_v41  ;;  %v2344_v39 = vsub.s32 %v2340_v45, %v2343_v7  ;;  %v2174_v5 = vsel %vm2167_vm9, %v2170_v26, %v2173_v52  ;;  %v2422_v50 = vadd.f32 %v2420_v25, %v2406_v49 }
 0x57d   : > { %v4765_v34 = vsel %vm2164_vm7, nan, %v2174_v5  ;;  %v2436_v29 = vmul.f32 %v2431_v36, %v4758_v4  ;;  %v2269_v9 = vadd.s32 3, %v2265_v22  ;;  %v2336_v61 = vadd.s32 %v4715_v37, %v4713_v54  ;;  %v2490_v5 = vpop.permute.xlu1 %2489 }
 0x57e   : > { %v2261_v16 = vsel %vm2178_vm4, %v2260_v11, %v2259_v41  ;;  %v2346_v43 = vsub.s32 0, %v2344_v39  ;;  %v2398_v48 = vrot.slane %v4765_v34, %v5036_v40  ;;  %v2452_v31 = vmul.f32 %v2447_v23, %v2442_v24  ;;  %v5043_v41 = vld [vmem:[#allocation16_spill] sm:$0xff] }
 0x57f   : > { %v2264_v57 = vsel %vm4743_vm12, %v4510_v60, %v2261_v16  ;;  %v2438_v46 = vadd.f32 %v2436_v29, %v2422_v50  ;;  %v2463_v55 = vrot.slane %v4733_v33, %v5042_v53  ;;  %v2270_v62 = vand.u32 3, %v2269_v9  ;;  %v5047_v29 = vld [vmem:[#allocation20_spill] sm:$0xff] }
 0x580   : > { %3055 = vcosq.f32 %v2264_v57  ;;  %v2803_v12 = vmin.u32 %v2346_v43, %v2344_v39  ;;  %v2400_v54 = vmul.f32 %v2398_v48, %v2389_v32  ;;  %v2479_v7 = vrot.slane %v4733_v33, %v5043_v41 }
 0x581   : > { %3057 = vsinq.f32 %v2264_v57  ;;  %v2454_v37 = vadd.f32 %v2452_v31, %v2438_v46  ;;  %v2468_v1 = vmul.f32 %v2463_v55, %v2458_v56  ;;  %vm2272_vm15 = vcmp.eq.s32.totalorder %v2270_v62, 0  ;;  %v2522_v48 = vpop.permute.xlu1 %2521 }
 0x582   : > { %v2348_v27 = vclz %v2803_v12  ;;  %vm2275_vm0 = vcmp.eq.s32.totalorder %v2270_v62, 2  ;;  %v2407_v13 = vadd.f32 %v2404_v44, %v2400_v54  ;;  %v2495_v26 = vrot.slane %v4733_v33, %v5044_v10 }
 0x583   : > { %v2470_v32 = vadd.f32 %v2468_v1, %v2454_v37  ;;  %v2435_v12 = vrot.slane %v4765_v34, %v5040_v38  ;;  %v2484_v49 = vmul.f32 %v2479_v7, %v2474_v42  ;;  %vm2268_vm14 = vweird.f32 %v4510_v60 }
 0x584   : > { %v2804_v47 = vadd.s32 4294967294, %v2348_v27  ;;  %vm2271_vm1 = vcmp.lt.s32.totalorder %v2270_v62, 2  ;;  %vm4787_vm11 = vcmp.le.f32.partialorder %v2280_v21, 0.7853982  ;;  %vm2282_vm13 = vcmp.lt.s32.totalorder %v4586_v30, 0 }
 0x585   : > { %v2486_v44 = vadd.f32 %v2484_v49, %v2470_v32  ;;  %v2500_v50 = vmul.f32 %v2495_v26, %v2490_v5  ;;  %v2437_v60 = vmul.f32 %v2435_v12, %v4758_v4  ;;  %v2451_v23 = vrot.slane %v4765_v34, %v5041_v20  ;;  %v2506_v4 = vpop.permute.xlu0 %2505 }
 0x586   : > { %vm2805_vm10 = vcmp.lt.s32.totalorder %v2804_v47, 0  ;;  %v2511_v9 = vrot.slane %v4733_v33, %v5047_v29  ;;  %v2467_v33 = vrot.slane %v4765_v34, %v5042_v53  ;;  %v2483_v62 = vrot.slane %v4765_v34, %v5043_v41 }
 0x587   : > { %v2351_v63 = vsel %vm2805_vm10, 0, %v2804_v47  ;;  %v2366_v47 = vsub.s32 4, %v4735_v18  ;;  %v2453_v46 = vmul.f32 %v2451_v23, %v2442_v24  ;;  %v2515_v26 = vrot.slane %v4765_v34, %v5047_v29 }
 0x588   : > { %v2352_v35 = vsub.s32 32, %v2351_v63  ;;  %v2356_v0 = vsub.s32 4294967266, %v2351_v63  ;;  %v2353_v15 = vshll.u32 %v2344_v39, %v2351_v63  ;;  %v2419_v39 = vrot.slane %v4765_v34, %v5039_v17 }
 0x589   : > { %v2469_v24 = vmul.f32 %v2467_v33, %v2458_v56  ;;  %v2554_v32 = vpop.permute.xlu0 %2553  ;;  %vm2372_vm5 = vweird.f32 %v4586_v30 }
 0x58a   : > { %v2354_v3 = vshrl.u32 %v2336_v61, %v2352_v35  ;;  %v2357_v45 = vadd.s32 127, %v2356_v0  ;;  %v2421_v51 = vmul.f32 %v2419_v39, %v2410_v59  ;;  %v2502_v35 = vadd.f32 %v2500_v50, %v2486_v44 }
 0x58b   : > { %v2367_v0 = vsel %vm2282_vm13, %v2366_v47, %v4735_v18  ;;  %v2517_v44 = vmul.f32 %v2515_v26, %v2506_v4 }
 0x58c   : > { %v2355_v8 = vor.u32 %v2354_v3, %v2353_v15  ;;  %v2358_v6 = vshll.u32 %v2357_v45, 23  ;;  %v2423_v25 = vadd.f32 %v2421_v51, %v2407_v13  ;;  %v2516_v15 = vmul.f32 %v2511_v9, %v2506_v4 }
 0x58d   : > { %v3056_v28 = vpop.eup %3055  ;;  %v2369_v3 = vsel %vm4787_vm11, 0, %v2367_v0 }
 0x58e   : > { %v3058_v58 = vpop.eup %3057  ;;  %v2276_v19 = vxor.u32 2147483648, %v3056_v28  ;;  %v2359_v11 = vor.u32 4788187, %v2358_v6  ;;  %v2362_v16 = vcvt.s32.f32 %v2355_v8  ;;  %v2439_v63 = vadd.f32 %v2437_v60, %v2423_v25  ;;  %v2538_v6 = vpop.permute.xlu1 %2537 }
 0x58f   : > { %v2273_v2 = vxor.u32 2147483648, %v3058_v58  ;;  %v2518_v55 = vadd.f32 %v2516_v15, %v2502_v35  ;;  %v2373_v8 = vadd.s32 3, %v2369_v3 }
 0x590   : > { %v2360_v14 = vand.u32 2147483647, %v2359_v11  ;;  %v2277_v43 = vsel %vm2275_vm0, %v2276_v19, %v3058_v58  ;;  %v2455_v45 = vadd.f32 %v2453_v46, %v2439_v63  ;;  %v2499_v58 = vrot.slane %v4765_v34, %v5044_v10  ;;  %v2602_v63 = vpop.permute.xlu0 %2601 }
 0x591   : > { %v2274_v57 = vsel %vm2272_vm15, %v3056_v28, %v2273_v2  ;;  %v2485_v19 = vmul.f32 %v2483_v62, %v2474_v42  ;;  %v2374_v11 = vand.u32 3, %v2373_v8 }
 0x592   : > { %v2363_v52 = vmul.f32 %v2362_v16, %v2360_v14  ;;  %v2278_v27 = vsel %vm2271_vm1, %v2274_v57, %v2277_v43  ;;  %v2471_v54 = vadd.f32 %v2469_v24, %v2455_v45  ;;  %v2501_v16 = vmul.f32 %v2499_v58, %v2490_v5  ;;  %v2570_v13 = vpop.permute.xlu1 %2569 }
 0x593   : > { %v4798_v61 = vsel %vm2268_vm14, nan, %v2278_v27  ;;  %vm2379_vm2 = vcmp.eq.s32.totalorder %v2374_v11, 2  ;;  %vm2376_vm3 = vcmp.eq.s32.totalorder %v2374_v11, 0  ;;  %vm2375_vm4 = vcmp.lt.s32.totalorder %v2374_v11, 2 }
 0x594   : > { %v2364_v36 = vxor.u32 2147483648, %v2363_v52  ;;  %v2527_v31 = vrot.slane %v4798_v61, %v5036_v40  ;;  %v2543_v28 = vrot.slane %v4798_v61, %v5039_v17  ;;  %v2559_v2 = vrot.slane %v4798_v61, %v5040_v38 }
 0x595   : > { %v2487_v39 = vadd.f32 %v2485_v19, %v2471_v54  ;;  %v2575_v43 = vrot.slane %v4798_v61, %v5041_v20  ;;  %v2591_v25 = vrot.slane %v4798_v61, %v5042_v53  ;;  %v2639_v62 = vrot.slane %v4798_v61, %v5047_v29 }
 0x596   : > { %v2365_v59 = vsel %vm2282_vm13, %v2364_v36, %v2363_v52  ;;  %v2532_v18 = vmul.f32 %v2527_v31, %v2522_v48  ;;  %v2548_v7 = vmul.f32 %v2543_v28, %v2538_v6  ;;  %v2564_v42 = vmul.f32 %v2559_v2, %v2554_v32  ;;  %v2586_v47 = vpop.permute.xlu1 %2585 }
 0x597   : > { %v2368_v21 = vsel %vm4787_vm11, %v4586_v30, %v2365_v59  ;;  %v2503_v49 = vadd.f32 %v2501_v16, %v2487_v39  ;;  %v2580_v36 = vmul.f32 %v2575_v43, %v2570_v13  ;;  %v2596_v9 = vmul.f32 %v2591_v25, %v2586_v47 }
 0x598   : > { %3059 = vcosq.f32 %v2368_v21  ;;  %v2534_v37 = vadd.f32 %v2532_v18, %v2518_v55 }
 0x599   : > { %3061 = vsinq.f32 %v2368_v21  ;;  %v2519_v59 = vadd.f32 %v2517_v44, %v2503_v49  ;;  %v2607_v21 = vrot.slane %v4798_v61, %v5043_v41 }
 0x59a   : > { %v2550_v1 = vadd.f32 %v2548_v7, %v2534_v37  ;;  %v2618_v31 = vpop.permute.xlu1 %2617 }
 0x59b   : > { %v2612_v15 = vmul.f32 %v2607_v21, %v2602_v63 }
 0x59c   : > { %v2566_v51 = vadd.f32 %v2564_v42, %v2550_v1 }
 0x59e   : > { %v2582_v60 = vadd.f32 %v2580_v36, %v2566_v51  ;;  %v2634_v8 = vpop.permute.xlu1 %2633 }
 0x59f   : > { %v2644_v19 = vmul.f32 %v2639_v62, %v2634_v8 }
 0x5a0   : > { %v2598_v46 = vadd.f32 %v2596_v9, %v2582_v60 }
 0x5a2   : > { %v2614_v55 = vadd.f32 %v2612_v15, %v2598_v46 }
 0x5a5   : > { %v3060_v14 = vpop.eup %3059 }
 0x5a6   : > { %v3062_v56 = vpop.eup %3061  ;;  %v2380_v57 = vxor.u32 2147483648, %v3060_v14 }
 0x5a7   : > { %v2377_v52 = vxor.u32 2147483648, %v3062_v56 }
 0x5a8   : > { %v2381_v12 = vsel %vm2379_vm2, %v2380_v57, %v3062_v56 }
 0x5a9   : > { %v2378_v5 = vsel %vm2376_vm3, %v3060_v14, %v2377_v52 }
 0x5aa   : > { %v2382_v27 = vsel %vm2375_vm4, %v2378_v5, %v2381_v12 }
 0x5ab   : > { %v2383_v22 = vsel %vm2372_vm5, nan, %v2382_v27 }
 0x5ac   : > { %v2531_v34 = vrot.slane %v2383_v22, %v5036_v40  ;;  %v2547_v50 = vrot.slane %v2383_v22, %v5039_v17  ;;  %v2563_v30 = vrot.slane %v2383_v22, %v5040_v38  ;;  %v2579_v0 = vrot.slane %v2383_v22, %v5041_v20 }
 0x5ad   : > { %v2623_v40 = vrot.slane %v4798_v61, %v5044_v10  ;;  %v2595_v17 = vrot.slane %v2383_v22, %v5042_v53  ;;  %v2611_v45 = vrot.slane %v2383_v22, %v5043_v41  ;;  %v2627_v18 = vrot.slane %v2383_v22, %v5044_v10 }
 0x5ae   : > { %v2533_v23 = vmul.f32 %v2531_v34, %v2522_v48  ;;  %v2549_v35 = vmul.f32 %v2547_v50, %v2538_v6  ;;  %v2565_v48 = vmul.f32 %v2563_v30, %v2554_v32  ;;  %v2581_v3 = vmul.f32 %v2579_v0, %v2570_v13 }
 0x5af   : > { %v2597_v20 = vmul.f32 %v2595_v17, %v2586_v47  ;;  %v2628_v28 = vmul.f32 %v2623_v40, %v2618_v31  ;;  %v2643_v53 = vrot.slane %v2383_v22, %v5047_v29  ;;  %v2613_v54 = vmul.f32 %v2611_v45, %v2602_v63 }
 0x5b0   : > { %v2535_v4 = vadd.f32 %v2533_v23, %v2519_v59  ;;  %v2629_v58 = vmul.f32 %v2627_v18, %v2618_v31 }
 0x5b1   : > { %v2630_v37 = vadd.f32 %v2628_v28, %v2614_v55  ;;  %v2645_v41 = vmul.f32 %v2643_v53, %v2634_v8 }
 0x5b2   : > { %v2551_v33 = vadd.f32 %v2549_v35, %v2535_v4 }
 0x5b3   : > { %v2646_v11 = vadd.f32 %v2644_v19, %v2630_v37 }
 0x5b4   : > { %v2567_v38 = vadd.f32 %v2565_v48, %v2551_v33 }
 0x5b6   : > { %v2583_v24 = vadd.f32 %v2581_v3, %v2567_v38 }
 0x5b8   : > { %v2599_v6 = vadd.f32 %v2597_v20, %v2583_v24 }
 0x5ba   : > { %v2615_v7 = vadd.f32 %v2613_v54, %v2599_v6 }
 0x5bc   : > { %v2631_v2 = vadd.f32 %v2629_v58, %v2615_v7 }
 0x5be   : > { %v2647_v39 = vadd.f32 %v2645_v41, %v2631_v2 }
 0x5c0   : > { %v2650_v61 = vcombine.low %v2646_v11, %v2647_v39 }
 0x5c2   : > { %2652 = vst [vmem:[%s5048_s15] sm:$0x77] %v2650_v61 }
 0x5c3 PF: > { %s2811_s0 = sshll.u32 %s3139_s20, 7  ;;  %s5049_s26 = scalar_lea.vmem [#allocation6], %s3355_s25 }
 0x5c4   : > { %s2666_s30 = scalar_lea.hbm %s4900_s11, %s2811_s0  ;;  %s2668_s1 = sshll.u32 %s5049_s26, 4  ;;  %s2669_s1 = int_to_ptr.vmem [resolvable:$true] %s2668_s1 }
 0x5c5   : > { %s5050_s2 = sand.u32 1, %s3131_s18   ;;  %s3063_s27 = scalar_lea.vmem %s2669_s1, 128 }
 0x5c6   : > { %s2654_s28 = scalar_lea.sflag [#allocation7], %s5050_s2  ;;  %p3064_p7 = scmp.ne.s32.totalorder %s2669_s1, %s3063_s27 }
 0x5c7   : > { %s3193_s29 = smov [#allocation6]  }
 0x5c8   : > { %p3065_p9 = pnand %p3064_p7, %p3306_p3  ;;  %s3067_s15 = sshll.u32 %s3193_s29, 4  ;;  %s3068_s15 = int_to_ptr.vmem [resolvable:$false] %s3067_s15 }
 0x5c9   : > { %s3069_s3 = scalar_lea.vmem %s3068_s15, 256  ;;  %p3070_p11 = scmp.lt.s32.totalorder %s2669_s1, %s3068_s15 }
 0x5ca   : > { %p3066_p10 = pneg %p3065_p9  ;;  %p3071_p12 = scmp.lt.s32.totalorder %s3069_s3, %s3063_s27 }
 0x5cc   : > { %p3072_p13 = por %p3071_p12, %p3070_p11 }
 0x5ce   : > { %p3073_p0 = pnand %p3072_p13, %p3066_p10 }
 0x5d0   : > { %3076 = shalt.err (!%p3073_p0)
}
 0x5d1   : > { %s3077_s20 = scalar_lea.hbm %s2666_s30, 128  ;;  %s3081_s16 = scalar_lea.hbm %s4900_s11, 512 }
 0x5d2   : > { %p3078_p1 = scmp.ne.s32.totalorder %s2666_s30, %s3077_s20  ;;  %p3082_p5 = scmp.lt.s32.totalorder %s2666_s30, %s4900_s11 }
 0x5d3   : > { %p3083_p6 = scmp.lt.s32.totalorder %s3081_s16, %s3077_s20 }
 0x5d4   : > { %p3079_p2 = pnand %p3078_p1, %p3306_p3 }
 0x5d5   : > { %p3084_p7 = por %p3083_p6, %p3082_p5 }
 0x5d6   : > { %p3080_p4 = pneg %p3079_p2 }
 0x5d8   : > { %p3085_p9 = pnand %p3084_p7, %p3080_p4 }
 0x5da   : > { %3088 = shalt.err (!%p3085_p9)
}
 0x5db   : > { %2868 = dma.vmem_to_hbm [thread:$0]  (%p3306_p3), %s2669_s1, 128, %s2666_s30, %s2654_s28  }
 0x5dc PF: > { %p2874_p10 = scmp.ge.s32.totalorder %s3155_s24, 2  ;;  %s2680_s3 = sand.u32 1, %s3127_s17  }
 0x5dd   : > { %s2681_s2 = scalar_lea.sflag [#allocation7], %s2680_s3 }
 0x5de   : > { %p2871_p11 = pnand %p2874_p10, %p3317_p8 }
 0x5e0   : > { %p2872_p12 = pneg %p2871_p11 }
 0x5e2   : > { %3122 = dma.done.wait (%p2872_p12), %s2681_s2, 128  }
 0x5e3   : > { %3124 = vsyncadd (%p2872_p12), %s2681_s2, 4294967168  ;;  %s24_s24 = sadd.s32 1, %s3155_s24   ;;  %s5051_s12 = sld [smem:[#allocation9_spill]] }
 0x5e4   : > { %p21_p13 = scmp.ge.s32.totalorder %s24_s24, 14   ;;  %s5052_s30 = sld [smem:[#allocation10_spill]] }
 0x5e5   : > { %s5053_s17 = smov %s3131_s18  ;;  %s5054_s18 = smov %s3135_s19 }
 0x5e6   : > { %s5055_s19 = smov %s3315_s13  ;;  %s5056_s20 = smov %s3147_s22 }
 0x5e7   : > { %s5057_s21 = smov %s3151_s23  ;;  %23 = sbr.rel (!%p21_p13) target bundleno = 10 (0xa), region = 127 }
 0x5e9   : > { %s5058_s22 = smov %s5051_s12 }
 0x5ea   : > { %s5059_s23 = smov %s5052_s30 }
 0x5ec   :  { %2686 = vsyncpa [#allocation7], 1 }
 0x5ed   :  { %2688 = vsyncpa [#allocation7 + $0x1], 1 }

</bundles_post_ra>
